<compile_context>
chip_gen: v5e
topology: v5e:2x2
jax: 0.10.0
libtpu: 0.0.40
codegen_flags: <defaults>
</compile_context>

<pallas_src>
import functools
import math

import jax
import jax.numpy as jnp
from jax.experimental import pallas as pl
from jax.experimental.pallas import tpu as pltpu

# ---------------- configuration (small synthetic sizes) ----------------
B, S = 2, 8          # batch, sequence length
D = 32               # n_units (model dim)
H = 4                # attention heads
Dh = D // H          # head dim
FF = 64              # feed-forward hidden dim
V = 64               # vocab_size
L = 2                # number of encoder layers
VP = 128             # vocab padded to a full lane tile (dense vst; sliced outside)
M = B * S            # flattened row count


def _layer_norm(x, g, b, eps=1e-5):
    mu = jnp.mean(x, axis=-1, keepdims=True)
    var = jnp.mean(jnp.square(x - mu), axis=-1, keepdims=True)
    return (x - mu) * jax.lax.rsqrt(var + eps) * g + b


# ---------------- the single fused Pallas kernel ----------------
def _fused_transformer_kernel(
    x_emb_ref, mask_ref,
    wqh_ref, bqh_ref, wkh_ref, bkh_ref, wvh_ref, bvh_ref,
    woh_ref, bo_ref, g1_ref, be1_ref,
    w1_ref, b1_ref, w2_ref, b2_ref, g2_ref, be2_ref,
    wout_ref, bout_ref,
    out_ref,
    *, n_layers, n_batch, n_heads, seq, d_head,
):
    f32 = jnp.float32
    d_model = n_heads * d_head

    x = x_emb_ref[...]                       # [M, D] activation, lives in vregs
    mbias = mask_ref[...]                    # [B, S, S] additive mask bias (0 / -1e9)

    for l in range(n_layers):                # statically unrolled (L is tiny)
        # ---- multi-head self-attention (per-head weights: no lane slicing) ----
        attn = jnp.zeros((n_batch * seq, d_model), f32)
        for h in range(n_heads):
            # Q/K/V projections straight into per-head [M, Dh] slabs.
            # (score scale 1/sqrt(Dh) is pre-folded into wqh/bqh at init time)
            q = jnp.dot(x, wqh_ref[l, h], preferred_element_type=f32) + bqh_ref[l, h]
            k = jnp.dot(x, wkh_ref[l, h], preferred_element_type=f32) + bkh_ref[l, h]
            v = jnp.dot(x, wvh_ref[l, h], preferred_element_type=f32) + bvh_ref[l, h]
            q3 = q.reshape(n_batch, seq, d_head)
            k3 = k.reshape(n_batch, seq, d_head)
            v3 = v.reshape(n_batch, seq, d_head)

            # batched-over-batch scores + additive mask
            s = jnp.einsum('bqd,bkd->bqk', q3, k3,
                           preferred_element_type=f32) + mbias        # [B, S, S]
            s = s - jnp.max(s, axis=-1, keepdims=True)
            p = jnp.exp(s)
            p = p * pl.reciprocal(jnp.sum(p, axis=-1, keepdims=True), approx=True)

            o3 = jnp.einsum('bqk,bkd->bqd', p, v3,
                            preferred_element_type=f32)               # [B, S, Dh]
            # folded per-head output projection:
            #   merge_heads(o) @ Wo == sum_h o_h @ Wo[h*Dh:(h+1)*Dh, :]
            attn = attn + jnp.dot(o3.reshape(n_batch * seq, d_head), woh_ref[l, h],
                                  preferred_element_type=f32)          # [M, D]

        # attention out-proj bias + residual + LayerNorm (post-LN)
        x = _layer_norm(x + attn + bo_ref[l], g1_ref[l], be1_ref[l])

        # position-wise feed-forward + residual + LayerNorm
        h1 = jnp.maximum(
            jnp.dot(x, w1_ref[l], preferred_element_type=f32) + b1_ref[l], 0.0)
        ff = jnp.dot(h1, w2_ref[l], preferred_element_type=f32) + b2_ref[l]
        x = _layer_norm(x + ff, g2_ref[l], be2_ref[l])

    # ---- fused output projection + log_softmax (vocab padded to 128 lanes) ----
    logits = jnp.dot(x, wout_ref[...], preferred_element_type=f32) + bout_ref[...]
    z = logits - jnp.max(logits, axis=-1, keepdims=True)
    out_ref[...] = z - jnp.log(jnp.sum(jnp.exp(z), axis=-1, keepdims=True))


# ---------------- BlockSpec helper ----------------
def _const_spec(shape):
    """Whole-array block, same for every grid step."""
    nd = len(shape)
    return pl.BlockSpec(tuple(shape), lambda i, _n=nd: (0,) * _n)


# ---------------- forward pass (one pallas_call, tiny JAX glue) ----------------
@jax.jit
def full_transformer_forward(params, input_sequence, mask):
    """input_sequence: int32 [B, S]; mask: float [B, 1, S, S] (1=keep, 0=mask).

    Returns log-probs [B, S, V] == F.log_softmax(output_layer(stack(emb)), -1).
    """
    # Embedding lookup kept as one cheap XLA gather.
    # TODO(synk): a scalar-prefetch DMA-gather kernel could also fuse this, but
    # it is not worth it at these sizes.
    x_emb = jnp.take(params["emb"], input_sequence.reshape(-1), axis=0)     # [M, D]
    # additive mask bias: 0 where attended, -1e9 where masked
    mask_bias = (mask.reshape(B, S, S).astype(jnp.float32) - 1.0) * 1e9     # [B, S, S]

    kern = functools.partial(
        _fused_transformer_kernel,
        n_layers=L, n_batch=B, n_heads=H, seq=S, d_head=Dh,
    )

    args = (
        x_emb, mask_bias,
        params["wqh"], params["bqh"], params["wkh"], params["bkh"],
        params["wvh"], params["bvh"], params["woh"], params["bo"],
        params["g1"], params["be1"], params["w1"], params["b1"],
        params["w2"], params["b2"], params["g2"], params["be2"],
        params["wout"], params["bout"],
    )
    in_specs = [_const_spec(a.shape) for a in args]

    logp_padded = pl.pallas_call(
        kern,
        out_shape=jax.ShapeDtypeStruct((M, VP), jnp.float32),
        grid=(1,),                              # whole model in one grid step
        in_specs=in_specs,
        out_specs=_const_spec((M, VP)),
        compiler_params=pltpu.CompilerParams(
            dimension_semantics=("arbitrary",)),
    )(*args)
    return logp_padded[:, :V].reshape(B, S, V)


# ---------------- parameters (deterministic, PyTorch-style init) ----------------
def _linear_params(key, fan_in, fan_out):
    kw, kb = jax.random.split(key)
    bound = 1.0 / math.sqrt(fan_in)
    w = jax.random.uniform(kw, (fan_out, fan_in), jnp.float32, -bound, bound)
    b = jax.random.uniform(kb, (fan_out,), jnp.float32, -bound, bound)
    return w, b   # PyTorch layout [out, in]


def init_params(key):
    keys = jax.random.split(key, 2 + L)
    emb = jax.random.normal(keys[0], (V, D), jnp.float32)

    wout, bout = _linear_params(keys[1], D, V)
    # pre-transpose to [in, out] and pad the vocab (lane) axis to 128.
    wout_p = jnp.zeros((D, VP), jnp.float32).at[:, :V].set(jnp.transpose(wout))
    bout_p = jnp.full((1, VP), -1e30, jnp.float32).at[0, :V].set(bout)

    inv_scale = 1.0 / math.sqrt(Dh)

    def heads_cols(wt):      # wt: [D_in, D_out] -> [H, D_in, Dh]
        return jnp.stack([wt[:, h * Dh:(h + 1) * Dh] for h in range(H)], axis=0)

    def heads_bias(b):       # b: [D_out] -> [H, 1, Dh]
        return jnp.stack([b[h * Dh:(h + 1) * Dh].reshape(1, Dh) for h in range(H)],
                         axis=0)

    names = ["wqh", "bqh", "wkh", "bkh", "wvh", "bvh", "woh", "bo",
             "g1", "be1", "w1", "b1", "w2", "b2", "g2", "be2"]
    stacks = {k: [] for k in names}
    for l in range(L):
        lk = jax.random.split(keys[2 + l], 6)
        wq, bq = _linear_params(lk[0], D, D)
        wk, bk = _linear_params(lk[1], D, D)
        wv, bv = _linear_params(lk[2], D, D)
        wo, bo = _linear_params(lk[3], D, D)
        w1, b1 = _linear_params(lk[4], D, FF)
        w2, b2 = _linear_params(lk[5], FF, D)

        # Q weights/bias carry the folded 1/sqrt(Dh) score scale.
        stacks["wqh"].append(heads_cols(jnp.transpose(wq)) * inv_scale)   # [H, D, Dh]
        stacks["bqh"].append(heads_bias(bq) * inv_scale)                  # [H, 1, Dh]
        stacks["wkh"].append(heads_cols(jnp.transpose(wk)))
        stacks["bkh"].append(heads_bias(bk))
        stacks["wvh"].append(heads_cols(jnp.transpose(wv)))
        stacks["bvh"].append(heads_bias(bv))
        # output projection, split along its input (= concat-of-heads) axis
        woT = jnp.transpose(wo)                                           # [D, D]
        stacks["woh"].append(
            jnp.stack([woT[h * Dh:(h + 1) * Dh, :] for h in range(H)], axis=0))  # [H, Dh, D]
        stacks["bo"].append(bo.reshape(1, D))
        stacks["g1"].append(jnp.ones((1, D), jnp.float32))
        stacks["be1"].append(jnp.zeros((1, D), jnp.float32))
        stacks["w1"].append(jnp.transpose(w1))                            # [D, FF]
        stacks["b1"].append(b1.reshape(1, FF))
        stacks["w2"].append(jnp.transpose(w2))                            # [FF, D]
        stacks["b2"].append(b2.reshape(1, D))
        stacks["g2"].append(jnp.ones((1, D), jnp.float32))
        stacks["be2"].append(jnp.zeros((1, D), jnp.float32))

    params = {"emb": emb, "wout": wout_p, "bout": bout_p}
    for k in names:
        params[k] = jnp.stack(stacks[k], axis=0)   # stacked over layers
    return params


if __name__ == "__main__":
    key = jax.random.PRNGKey(0)
    kp, kid = jax.random.split(key)
    params = init_params(kp)

    input_sequence = jax.random.randint(kid, (B, S), 0, V, dtype=jnp.int32)
    # causal ("subsequent") mask, 1 = attend, 0 = masked
    causal = jnp.tril(jnp.ones((S, S), jnp.float32))
    mask = jnp.broadcast_to(causal[None, None, :, :], (B, 1, S, S))

    out = full_transformer_forward(params, input_sequence, mask)
    out = jax.block_until_ready(out)

    assert out.shape == (B, S, V)
    # log_softmax rows must (approximately) exponentiate-sum to 1
    assert bool(jnp.all(jnp.abs(jnp.sum(jnp.exp(out), axis=-1) - 1.0) < 1e-3))
    print("KERNEL_OK")
</pallas_src>

<mosaic_0001>
module attributes {stable_mosaic.version = 11 : i64} {
  func.func @_fused_transformer_kernel(%arg0: i32, %arg1: memref<16x32xf32, #tpu.memory_space<vmem>>, %arg2: memref<2x8x8xf32, #tpu.memory_space<vmem>>, %arg3: memref<2x4x32x8xf32, #tpu.memory_space<vmem>>, %arg4: memref<2x4x1x8xf32, #tpu.memory_space<vmem>>, %arg5: memref<2x4x32x8xf32, #tpu.memory_space<vmem>>, %arg6: memref<2x4x1x8xf32, #tpu.memory_space<vmem>>, %arg7: memref<2x4x32x8xf32, #tpu.memory_space<vmem>>, %arg8: memref<2x4x1x8xf32, #tpu.memory_space<vmem>>, %arg9: memref<2x4x8x32xf32, #tpu.memory_space<vmem>>, %arg10: memref<2x1x32xf32, #tpu.memory_space<vmem>>, %arg11: memref<2x1x32xf32, #tpu.memory_space<vmem>>, %arg12: memref<2x1x32xf32, #tpu.memory_space<vmem>>, %arg13: memref<2x32x64xf32, #tpu.memory_space<vmem>>, %arg14: memref<2x1x64xf32, #tpu.memory_space<vmem>>, %arg15: memref<2x64x32xf32, #tpu.memory_space<vmem>>, %arg16: memref<2x1x32xf32, #tpu.memory_space<vmem>>, %arg17: memref<2x1x32xf32, #tpu.memory_space<vmem>>, %arg18: memref<2x1x32xf32, #tpu.memory_space<vmem>>, %arg19: memref<32x128xf32, #tpu.memory_space<vmem>>, %arg20: memref<1x128xf32, #tpu.memory_space<vmem>>, %arg21: memref<16x128xf32, #tpu.memory_space<vmem>>) attributes {dimension_semantics = [#tpu.dimension_semantics<arbitrary>], iteration_bounds = array<i64: 1>, scalar_prefetch = 0 : i64, scratch_operands = 0 : i64, tpu.core_type = #tpu.core_type<tc>, window_params = [{pipeline_mode = #tpu.pipeline_mode<synchronous>, transform_indices = @transform_0, window_bounds = array<i64: 16, 32>}, {pipeline_mode = #tpu.pipeline_mode<synchronous>, transform_indices = @transform_1, window_bounds = array<i64: 2, 8, 8>}, {pipeline_mode = #tpu.pipeline_mode<synchronous>, transform_indices = @transform_2, window_bounds = array<i64: 2, 4, 32, 8>}, {pipeline_mode = #tpu.pipeline_mode<synchronous>, transform_indices = @transform_3, window_bounds = array<i64: 2, 4, 1, 8>}, {pipeline_mode = #tpu.pipeline_mode<synchronous>, transform_indices = @transform_4, window_bounds = array<i64: 2, 4, 32, 8>}, {pipeline_mode = #tpu.pipeline_mode<synchronous>, transform_indices = @transform_5, window_bounds = array<i64: 2, 4, 1, 8>}, {pipeline_mode = #tpu.pipeline_mode<synchronous>, transform_indices = @transform_6, window_bounds = array<i64: 2, 4, 32, 8>}, {pipeline_mode = #tpu.pipeline_mode<synchronous>, transform_indices = @transform_7, window_bounds = array<i64: 2, 4, 1, 8>}, {pipeline_mode = #tpu.pipeline_mode<synchronous>, transform_indices = @transform_8, window_bounds = array<i64: 2, 4, 8, 32>}, {pipeline_mode = #tpu.pipeline_mode<synchronous>, transform_indices = @transform_9, window_bounds = array<i64: 2, 1, 32>}, {pipeline_mode = #tpu.pipeline_mode<synchronous>, transform_indices = @transform_10, window_bounds = array<i64: 2, 1, 32>}, {pipeline_mode = #tpu.pipeline_mode<synchronous>, transform_indices = @transform_11, window_bounds = array<i64: 2, 1, 32>}, {pipeline_mode = #tpu.pipeline_mode<synchronous>, transform_indices = @transform_12, window_bounds = array<i64: 2, 32, 64>}, {pipeline_mode = #tpu.pipeline_mode<synchronous>, transform_indices = @transform_13, window_bounds = array<i64: 2, 1, 64>}, {pipeline_mode = #tpu.pipeline_mode<synchronous>, transform_indices = @transform_14, window_bounds = array<i64: 2, 64, 32>}, {pipeline_mode = #tpu.pipeline_mode<synchronous>, transform_indices = @transform_15, window_bounds = array<i64: 2, 1, 32>}, {pipeline_mode = #tpu.pipeline_mode<synchronous>, transform_indices = @transform_16, window_bounds = array<i64: 2, 1, 32>}, {pipeline_mode = #tpu.pipeline_mode<synchronous>, transform_indices = @transform_17, window_bounds = array<i64: 2, 1, 32>}, {pipeline_mode = #tpu.pipeline_mode<synchronous>, transform_indices = @transform_18, window_bounds = array<i64: 32, 128>}, {pipeline_mode = #tpu.pipeline_mode<synchronous>, transform_indices = @transform_19, window_bounds = array<i64: 1, 128>}, {pipeline_mode = #tpu.pipeline_mode<synchronous>, transform_indices = @transform_20, window_bounds = array<i64: 16, 128>}]} {
    %c0 = arith.constant 0 : index
    %c0_0 = arith.constant 0 : index
    %0 = vector.load %arg1[%c0, %c0_0] : memref<16x32xf32, #tpu.memory_space<vmem>>, vector<16x32xf32>
    %c0_1 = arith.constant 0 : index
    %c0_2 = arith.constant 0 : index
    %c0_3 = arith.constant 0 : index
    %1 = vector.load %arg2[%c0_1, %c0_2, %c0_3] : memref<2x8x8xf32, #tpu.memory_space<vmem>>, vector<2x8x8xf32>
    %cst = arith.constant 0.000000e+00 : f32
    %2 = vector.broadcast %cst : f32 to vector<16x32xf32>
    %c0_4 = arith.constant 0 : index
    %c0_5 = arith.constant 0 : index
    %c0_6 = arith.constant 0 : index
    %c0_7 = arith.constant 0 : index
    %3 = vector.load %arg3[%c0_4, %c0_5, %c0_6, %c0_7] : memref<2x4x32x8xf32, #tpu.memory_space<vmem>>, vector<1x1x32x8xf32>
    %4 = vector.shape_cast %3 : vector<1x1x32x8xf32> to vector<32x8xf32>
    %cst_8 = arith.constant dense<0.000000e+00> : vector<16x8xf32>
    %5 = tpu.matmul %0, %4, %cst_8 {dimension_numbers = #tpu.dot_dimension_numbers<[1], [0], [0], [1], [0, 0, 1, 1], [], []>} : vector<16x32xf32>, vector<32x8xf32>, vector<16x8xf32> -> vector<16x8xf32>
    %c0_9 = arith.constant 0 : index
    %c0_10 = arith.constant 0 : index
    %c0_11 = arith.constant 0 : index
    %c0_12 = arith.constant 0 : index
    %6 = vector.load %arg4[%c0_9, %c0_10, %c0_11, %c0_12] : memref<2x4x1x8xf32, #tpu.memory_space<vmem>>, vector<1x1x1x8xf32>
    %7 = vector.shape_cast %6 : vector<1x1x1x8xf32> to vector<1x8xf32>
    %8 = vector.broadcast %7 : vector<1x8xf32> to vector<16x8xf32>
    %9 = arith.addf %5, %8 : vector<16x8xf32>
    %c0_13 = arith.constant 0 : index
    %c0_14 = arith.constant 0 : index
    %c0_15 = arith.constant 0 : index
    %c0_16 = arith.constant 0 : index
    %10 = vector.load %arg5[%c0_13, %c0_14, %c0_15, %c0_16] : memref<2x4x32x8xf32, #tpu.memory_space<vmem>>, vector<1x1x32x8xf32>
    %11 = vector.shape_cast %10 : vector<1x1x32x8xf32> to vector<32x8xf32>
    %cst_17 = arith.constant dense<0.000000e+00> : vector<16x8xf32>
    %12 = tpu.matmul %0, %11, %cst_17 {dimension_numbers = #tpu.dot_dimension_numbers<[1], [0], [0], [1], [0, 0, 1, 1], [], []>} : vector<16x32xf32>, vector<32x8xf32>, vector<16x8xf32> -> vector<16x8xf32>
    %c0_18 = arith.constant 0 : index
    %c0_19 = arith.constant 0 : index
    %c0_20 = arith.constant 0 : index
    %c0_21 = arith.constant 0 : index
    %13 = vector.load %arg6[%c0_18, %c0_19, %c0_20, %c0_21] : memref<2x4x1x8xf32, #tpu.memory_space<vmem>>, vector<1x1x1x8xf32>
    %14 = vector.shape_cast %13 : vector<1x1x1x8xf32> to vector<1x8xf32>
    %15 = vector.broadcast %14 : vector<1x8xf32> to vector<16x8xf32>
    %16 = arith.addf %12, %15 : vector<16x8xf32>
    %c0_22 = arith.constant 0 : index
    %c0_23 = arith.constant 0 : index
    %c0_24 = arith.constant 0 : index
    %c0_25 = arith.constant 0 : index
    %17 = vector.load %arg7[%c0_22, %c0_23, %c0_24, %c0_25] : memref<2x4x32x8xf32, #tpu.memory_space<vmem>>, vector<1x1x32x8xf32>
    %18 = vector.shape_cast %17 : vector<1x1x32x8xf32> to vector<32x8xf32>
    %cst_26 = arith.constant dense<0.000000e+00> : vector<16x8xf32>
    %19 = tpu.matmul %0, %18, %cst_26 {dimension_numbers = #tpu.dot_dimension_numbers<[1], [0], [0], [1], [0, 0, 1, 1], [], []>} : vector<16x32xf32>, vector<32x8xf32>, vector<16x8xf32> -> vector<16x8xf32>
    %c0_27 = arith.constant 0 : index
    %c0_28 = arith.constant 0 : index
    %c0_29 = arith.constant 0 : index
    %c0_30 = arith.constant 0 : index
    %20 = vector.load %arg8[%c0_27, %c0_28, %c0_29, %c0_30] : memref<2x4x1x8xf32, #tpu.memory_space<vmem>>, vector<1x1x1x8xf32>
    %21 = vector.shape_cast %20 : vector<1x1x1x8xf32> to vector<1x8xf32>
    %22 = vector.broadcast %21 : vector<1x8xf32> to vector<16x8xf32>
    %23 = arith.addf %19, %22 : vector<16x8xf32>
    %24 = vector.shape_cast %9 : vector<16x8xf32> to vector<2x8x8xf32>
    %25 = vector.shape_cast %16 : vector<16x8xf32> to vector<2x8x8xf32>
    %26 = vector.shape_cast %23 : vector<16x8xf32> to vector<2x8x8xf32>
    "tpu.trace_start"() <{level = 10 : i32, message = "bqd,bkd->bqk"}> : () -> ()
    %cst_31 = arith.constant dense<0.000000e+00> : vector<2x8x8xf32>
    %27 = tpu.matmul %24, %25, %cst_31 {dimension_numbers = #tpu.dot_dimension_numbers<[2], [2], [1], [1], [0, 0, 0, 1, 1, 1], [0], [0]>} : vector<2x8x8xf32>, vector<2x8x8xf32>, vector<2x8x8xf32> -> vector<2x8x8xf32>
    "tpu.trace_stop"() : () -> ()
    %28 = arith.addf %27, %1 : vector<2x8x8xf32>
    %cst_32 = arith.constant dense<0xFF800000> : vector<2x8xf32>
    %29 = vector.multi_reduction <maximumf>, %28, %cst_32 [2] : vector<2x8x8xf32> to vector<2x8xf32>
    %30 = vector.shape_cast %29 : vector<2x8xf32> to vector<2x8x1xf32>
    %31 = vector.broadcast %30 : vector<2x8x1xf32> to vector<2x8x8xf32>
    %32 = arith.subf %28, %31 : vector<2x8x8xf32>
    %33 = math.exp %32 : vector<2x8x8xf32>
    %cst_33 = arith.constant dense<0.000000e+00> : vector<2x8xf32>
    %34 = vector.multi_reduction <add>, %33, %cst_33 [2] : vector<2x8x8xf32> to vector<2x8xf32>
    %35 = vector.shape_cast %34 : vector<2x8xf32> to vector<2x8x1xf32>
    %36 = tpu.reciprocal %35 {approx = true} : vector<2x8x1xf32> -> vector<2x8x1xf32>
    %37 = vector.broadcast %36 : vector<2x8x1xf32> to vector<2x8x8xf32>
    %38 = arith.mulf %33, %37 : vector<2x8x8xf32>
    "tpu.trace_start"() <{level = 10 : i32, message = "bqk,bkd->bqd"}> : () -> ()
    %cst_34 = arith.constant dense<0.000000e+00> : vector<2x8x8xf32>
    %39 = tpu.matmul %38, %26, %cst_34 {dimension_numbers = #tpu.dot_dimension_numbers<[2], [1], [1], [2], [0, 0, 0, 1, 1, 2], [0], [0]>} : vector<2x8x8xf32>, vector<2x8x8xf32>, vector<2x8x8xf32> -> vector<2x8x8xf32>
    "tpu.trace_stop"() : () -> ()
    %40 = vector.shape_cast %39 : vector<2x8x8xf32> to vector<16x8xf32>
    %c0_35 = arith.constant 0 : index
    %c0_36 = arith.constant 0 : index
    %c0_37 = arith.constant 0 : index
    %c0_38 = arith.constant 0 : index
    %41 = vector.load %arg9[%c0_35, %c0_36, %c0_37, %c0_38] : memref<2x4x8x32xf32, #tpu.memory_space<vmem>>, vector<1x1x8x32xf32>
    %42 = vector.shape_cast %41 : vector<1x1x8x32xf32> to vector<8x32xf32>
    %cst_39 = arith.constant dense<0.000000e+00> : vector<16x32xf32>
    %43 = tpu.matmul %40, %42, %cst_39 {dimension_numbers = #tpu.dot_dimension_numbers<[1], [0], [0], [1], [0, 0, 1, 1], [], []>} : vector<16x8xf32>, vector<8x32xf32>, vector<16x32xf32> -> vector<16x32xf32>
    %44 = arith.addf %2, %43 : vector<16x32xf32>
    %c0_40 = arith.constant 0 : index
    %c1 = arith.constant 1 : index
    %c0_41 = arith.constant 0 : index
    %c0_42 = arith.constant 0 : index
    %45 = vector.load %arg3[%c0_40, %c1, %c0_41, %c0_42] : memref<2x4x32x8xf32, #tpu.memory_space<vmem>>, vector<1x1x32x8xf32>
    %46 = vector.shape_cast %45 : vector<1x1x32x8xf32> to vector<32x8xf32>
    %cst_43 = arith.constant dense<0.000000e+00> : vector<16x8xf32>
    %47 = tpu.matmul %0, %46, %cst_43 {dimension_numbers = #tpu.dot_dimension_numbers<[1], [0], [0], [1], [0, 0, 1, 1], [], []>} : vector<16x32xf32>, vector<32x8xf32>, vector<16x8xf32> -> vector<16x8xf32>
    %c0_44 = arith.constant 0 : index
    %c1_45 = arith.constant 1 : index
    %c0_46 = arith.constant 0 : index
    %c0_47 = arith.constant 0 : index
    %48 = vector.load %arg4[%c0_44, %c1_45, %c0_46, %c0_47] : memref<2x4x1x8xf32, #tpu.memory_space<vmem>>, vector<1x1x1x8xf32>
    %49 = vector.shape_cast %48 : vector<1x1x1x8xf32> to vector<1x8xf32>
    %50 = vector.broadcast %49 : vector<1x8xf32> to vector<16x8xf32>
    %51 = arith.addf %47, %50 : vector<16x8xf32>
    %c0_48 = arith.constant 0 : index
    %c1_49 = arith.constant 1 : index
    %c0_50 = arith.constant 0 : index
    %c0_51 = arith.constant 0 : index
    %52 = vector.load %arg5[%c0_48, %c1_49, %c0_50, %c0_51] : memref<2x4x32x8xf32, #tpu.memory_space<vmem>>, vector<1x1x32x8xf32>
    %53 = vector.shape_cast %52 : vector<1x1x32x8xf32> to vector<32x8xf32>
    %cst_52 = arith.constant dense<0.000000e+00> : vector<16x8xf32>
    %54 = tpu.matmul %0, %53, %cst_52 {dimension_numbers = #tpu.dot_dimension_numbers<[1], [0], [0], [1], [0, 0, 1, 1], [], []>} : vector<16x32xf32>, vector<32x8xf32>, vector<16x8xf32> -> vector<16x8xf32>
    %c0_53 = arith.constant 0 : index
    %c1_54 = arith.constant 1 : index
    %c0_55 = arith.constant 0 : index
    %c0_56 = arith.constant 0 : index
    %55 = vector.load %arg6[%c0_53, %c1_54, %c0_55, %c0_56] : memref<2x4x1x8xf32, #tpu.memory_space<vmem>>, vector<1x1x1x8xf32>
    %56 = vector.shape_cast %55 : vector<1x1x1x8xf32> to vector<1x8xf32>
    %57 = vector.broadcast %56 : vector<1x8xf32> to vector<16x8xf32>
    %58 = arith.addf %54, %57 : vector<16x8xf32>
    %c0_57 = arith.constant 0 : index
    %c1_58 = arith.constant 1 : index
    %c0_59 = arith.constant 0 : index
    %c0_60 = arith.constant 0 : index
    %59 = vector.load %arg7[%c0_57, %c1_58, %c0_59, %c0_60] : memref<2x4x32x8xf32, #tpu.memory_space<vmem>>, vector<1x1x32x8xf32>
    %60 = vector.shape_cast %59 : vector<1x1x32x8xf32> to vector<32x8xf32>
    %cst_61 = arith.constant dense<0.000000e+00> : vector<16x8xf32>
    %61 = tpu.matmul %0, %60, %cst_61 {dimension_numbers = #tpu.dot_dimension_numbers<[1], [0], [0], [1], [0, 0, 1, 1], [], []>} : vector<16x32xf32>, vector<32x8xf32>, vector<16x8xf32> -> vector<16x8xf32>
    %c0_62 = arith.constant 0 : index
    %c1_63 = arith.constant 1 : index
    %c0_64 = arith.constant 0 : index
    %c0_65 = arith.constant 0 : index
    %62 = vector.load %arg8[%c0_62, %c1_63, %c0_64, %c0_65] : memref<2x4x1x8xf32, #tpu.memory_space<vmem>>, vector<1x1x1x8xf32>
    %63 = vector.shape_cast %62 : vector<1x1x1x8xf32> to vector<1x8xf32>
    %64 = vector.broadcast %63 : vector<1x8xf32> to vector<16x8xf32>
    %65 = arith.addf %61, %64 : vector<16x8xf32>
    %66 = vector.shape_cast %51 : vector<16x8xf32> to vector<2x8x8xf32>
    %67 = vector.shape_cast %58 : vector<16x8xf32> to vector<2x8x8xf32>
    %68 = vector.shape_cast %65 : vector<16x8xf32> to vector<2x8x8xf32>
    "tpu.trace_start"() <{level = 10 : i32, message = "bqd,bkd->bqk"}> : () -> ()
    %cst_66 = arith.constant dense<0.000000e+00> : vector<2x8x8xf32>
    %69 = tpu.matmul %66, %67, %cst_66 {dimension_numbers = #tpu.dot_dimension_numbers<[2], [2], [1], [1], [0, 0, 0, 1, 1, 1], [0], [0]>} : vector<2x8x8xf32>, vector<2x8x8xf32>, vector<2x8x8xf32> -> vector<2x8x8xf32>
    "tpu.trace_stop"() : () -> ()
    %70 = arith.addf %69, %1 : vector<2x8x8xf32>
    %cst_67 = arith.constant dense<0xFF800000> : vector<2x8xf32>
    %71 = vector.multi_reduction <maximumf>, %70, %cst_67 [2] : vector<2x8x8xf32> to vector<2x8xf32>
    %72 = vector.shape_cast %71 : vector<2x8xf32> to vector<2x8x1xf32>
    %73 = vector.broadcast %72 : vector<2x8x1xf32> to vector<2x8x8xf32>
    %74 = arith.subf %70, %73 : vector<2x8x8xf32>
    %75 = math.exp %74 : vector<2x8x8xf32>
    %cst_68 = arith.constant dense<0.000000e+00> : vector<2x8xf32>
    %76 = vector.multi_reduction <add>, %75, %cst_68 [2] : vector<2x8x8xf32> to vector<2x8xf32>
    %77 = vector.shape_cast %76 : vector<2x8xf32> to vector<2x8x1xf32>
    %78 = tpu.reciprocal %77 {approx = true} : vector<2x8x1xf32> -> vector<2x8x1xf32>
    %79 = vector.broadcast %78 : vector<2x8x1xf32> to vector<2x8x8xf32>
    %80 = arith.mulf %75, %79 : vector<2x8x8xf32>
    "tpu.trace_start"() <{level = 10 : i32, message = "bqk,bkd->bqd"}> : () -> ()
    %cst_69 = arith.constant dense<0.000000e+00> : vector<2x8x8xf32>
    %81 = tpu.matmul %80, %68, %cst_69 {dimension_numbers = #tpu.dot_dimension_numbers<[2], [1], [1], [2], [0, 0, 0, 1, 1, 2], [0], [0]>} : vector<2x8x8xf32>, vector<2x8x8xf32>, vector<2x8x8xf32> -> vector<2x8x8xf32>
    "tpu.trace_stop"() : () -> ()
    %82 = vector.shape_cast %81 : vector<2x8x8xf32> to vector<16x8xf32>
    %c0_70 = arith.constant 0 : index
    %c1_71 = arith.constant 1 : index
    %c0_72 = arith.constant 0 : index
    %c0_73 = arith.constant 0 : index
    %83 = vector.load %arg9[%c0_70, %c1_71, %c0_72, %c0_73] : memref<2x4x8x32xf32, #tpu.memory_space<vmem>>, vector<1x1x8x32xf32>
    %84 = vector.shape_cast %83 : vector<1x1x8x32xf32> to vector<8x32xf32>
    %cst_74 = arith.constant dense<0.000000e+00> : vector<16x32xf32>
    %85 = tpu.matmul %82, %84, %cst_74 {dimension_numbers = #tpu.dot_dimension_numbers<[1], [0], [0], [1], [0, 0, 1, 1], [], []>} : vector<16x8xf32>, vector<8x32xf32>, vector<16x32xf32> -> vector<16x32xf32>
    %86 = arith.addf %44, %85 : vector<16x32xf32>
    %c0_75 = arith.constant 0 : index
    %c2 = arith.constant 2 : index
    %c0_76 = arith.constant 0 : index
    %c0_77 = arith.constant 0 : index
    %87 = vector.load %arg3[%c0_75, %c2, %c0_76, %c0_77] : memref<2x4x32x8xf32, #tpu.memory_space<vmem>>, vector<1x1x32x8xf32>
    %88 = vector.shape_cast %87 : vector<1x1x32x8xf32> to vector<32x8xf32>
    %cst_78 = arith.constant dense<0.000000e+00> : vector<16x8xf32>
    %89 = tpu.matmul %0, %88, %cst_78 {dimension_numbers = #tpu.dot_dimension_numbers<[1], [0], [0], [1], [0, 0, 1, 1], [], []>} : vector<16x32xf32>, vector<32x8xf32>, vector<16x8xf32> -> vector<16x8xf32>
    %c0_79 = arith.constant 0 : index
    %c2_80 = arith.constant 2 : index
    %c0_81 = arith.constant 0 : index
    %c0_82 = arith.constant 0 : index
    %90 = vector.load %arg4[%c0_79, %c2_80, %c0_81, %c0_82] : memref<2x4x1x8xf32, #tpu.memory_space<vmem>>, vector<1x1x1x8xf32>
    %91 = vector.shape_cast %90 : vector<1x1x1x8xf32> to vector<1x8xf32>
    %92 = vector.broadcast %91 : vector<1x8xf32> to vector<16x8xf32>
    %93 = arith.addf %89, %92 : vector<16x8xf32>
    %c0_83 = arith.constant 0 : index
    %c2_84 = arith.constant 2 : index
    %c0_85 = arith.constant 0 : index
    %c0_86 = arith.constant 0 : index
    %94 = vector.load %arg5[%c0_83, %c2_84, %c0_85, %c0_86] : memref<2x4x32x8xf32, #tpu.memory_space<vmem>>, vector<1x1x32x8xf32>
    %95 = vector.shape_cast %94 : vector<1x1x32x8xf32> to vector<32x8xf32>
    %cst_87 = arith.constant dense<0.000000e+00> : vector<16x8xf32>
    %96 = tpu.matmul %0, %95, %cst_87 {dimension_numbers = #tpu.dot_dimension_numbers<[1], [0], [0], [1], [0, 0, 1, 1], [], []>} : vector<16x32xf32>, vector<32x8xf32>, vector<16x8xf32> -> vector<16x8xf32>
    %c0_88 = arith.constant 0 : index
    %c2_89 = arith.constant 2 : index
    %c0_90 = arith.constant 0 : index
    %c0_91 = arith.constant 0 : index
    %97 = vector.load %arg6[%c0_88, %c2_89, %c0_90, %c0_91] : memref<2x4x1x8xf32, #tpu.memory_space<vmem>>, vector<1x1x1x8xf32>
    %98 = vector.shape_cast %97 : vector<1x1x1x8xf32> to vector<1x8xf32>
    %99 = vector.broadcast %98 : vector<1x8xf32> to vector<16x8xf32>
    %100 = arith.addf %96, %99 : vector<16x8xf32>
    %c0_92 = arith.constant 0 : index
    %c2_93 = arith.constant 2 : index
    %c0_94 = arith.constant 0 : index
    %c0_95 = arith.constant 0 : index
    %101 = vector.load %arg7[%c0_92, %c2_93, %c0_94, %c0_95] : memref<2x4x32x8xf32, #tpu.memory_space<vmem>>, vector<1x1x32x8xf32>
    %102 = vector.shape_cast %101 : vector<1x1x32x8xf32> to vector<32x8xf32>
    %cst_96 = arith.constant dense<0.000000e+00> : vector<16x8xf32>
    %103 = tpu.matmul %0, %102, %cst_96 {dimension_numbers = #tpu.dot_dimension_numbers<[1], [0], [0], [1], [0, 0, 1, 1], [], []>} : vector<16x32xf32>, vector<32x8xf32>, vector<16x8xf32> -> vector<16x8xf32>
    %c0_97 = arith.constant 0 : index
    %c2_98 = arith.constant 2 : index
    %c0_99 = arith.constant 0 : index
    %c0_100 = arith.constant 0 : index
    %104 = vector.load %arg8[%c0_97, %c2_98, %c0_99, %c0_100] : memref<2x4x1x8xf32, #tpu.memory_space<vmem>>, vector<1x1x1x8xf32>
    %105 = vector.shape_cast %104 : vector<1x1x1x8xf32> to vector<1x8xf32>
    %106 = vector.broadcast %105 : vector<1x8xf32> to vector<16x8xf32>
    %107 = arith.addf %103, %106 : vector<16x8xf32>
    %108 = vector.shape_cast %93 : vector<16x8xf32> to vector<2x8x8xf32>
    %109 = vector.shape_cast %100 : vector<16x8xf32> to vector<2x8x8xf32>
    %110 = vector.shape_cast %107 : vector<16x8xf32> to vector<2x8x8xf32>
    "tpu.trace_start"() <{level = 10 : i32, message = "bqd,bkd->bqk"}> : () -> ()
    %cst_101 = arith.constant dense<0.000000e+00> : vector<2x8x8xf32>
    %111 = tpu.matmul %108, %109, %cst_101 {dimension_numbers = #tpu.dot_dimension_numbers<[2], [2], [1], [1], [0, 0, 0, 1, 1, 1], [0], [0]>} : vector<2x8x8xf32>, vector<2x8x8xf32>, vector<2x8x8xf32> -> vector<2x8x8xf32>
    "tpu.trace_stop"() : () -> ()
    %112 = arith.addf %111, %1 : vector<2x8x8xf32>
    %cst_102 = arith.constant dense<0xFF800000> : vector<2x8xf32>
    %113 = vector.multi_reduction <maximumf>, %112, %cst_102 [2] : vector<2x8x8xf32> to vector<2x8xf32>
    %114 = vector.shape_cast %113 : vector<2x8xf32> to vector<2x8x1xf32>
    %115 = vector.broadcast %114 : vector<2x8x1xf32> to vector<2x8x8xf32>
    %116 = arith.subf %112, %115 : vector<2x8x8xf32>
    %117 = math.exp %116 : vector<2x8x8xf32>
    %cst_103 = arith.constant dense<0.000000e+00> : vector<2x8xf32>
    %118 = vector.multi_reduction <add>, %117, %cst_103 [2] : vector<2x8x8xf32> to vector<2x8xf32>
    %119 = vector.shape_cast %118 : vector<2x8xf32> to vector<2x8x1xf32>
    %120 = tpu.reciprocal %119 {approx = true} : vector<2x8x1xf32> -> vector<2x8x1xf32>
    %121 = vector.broadcast %120 : vector<2x8x1xf32> to vector<2x8x8xf32>
    %122 = arith.mulf %117, %121 : vector<2x8x8xf32>
    "tpu.trace_start"() <{level = 10 : i32, message = "bqk,bkd->bqd"}> : () -> ()
    %cst_104 = arith.constant dense<0.000000e+00> : vector<2x8x8xf32>
    %123 = tpu.matmul %122, %110, %cst_104 {dimension_numbers = #tpu.dot_dimension_numbers<[2], [1], [1], [2], [0, 0, 0, 1, 1, 2], [0], [0]>} : vector<2x8x8xf32>, vector<2x8x8xf32>, vector<2x8x8xf32> -> vector<2x8x8xf32>
    "tpu.trace_stop"() : () -> ()
    %124 = vector.shape_cast %123 : vector<2x8x8xf32> to vector<16x8xf32>
    %c0_105 = arith.constant 0 : index
    %c2_106 = arith.constant 2 : index
    %c0_107 = arith.constant 0 : index
    %c0_108 = arith.constant 0 : index
    %125 = vector.load %arg9[%c0_105, %c2_106, %c0_107, %c0_108] : memref<2x4x8x32xf32, #tpu.memory_space<vmem>>, vector<1x1x8x32xf32>
    %126 = vector.shape_cast %125 : vector<1x1x8x32xf32> to vector<8x32xf32>
    %cst_109 = arith.constant dense<0.000000e+00> : vector<16x32xf32>
    %127 = tpu.matmul %124, %126, %cst_109 {dimension_numbers = #tpu.dot_dimension_numbers<[1], [0], [0], [1], [0, 0, 1, 1], [], []>} : vector<16x8xf32>, vector<8x32xf32>, vector<16x32xf32> -> vector<16x32xf32>
    %128 = arith.addf %86, %127 : vector<16x32xf32>
    %c0_110 = arith.constant 0 : index
    %c3 = arith.constant 3 : index
    %c0_111 = arith.constant 0 : index
    %c0_112 = arith.constant 0 : index
    %129 = vector.load %arg3[%c0_110, %c3, %c0_111, %c0_112] : memref<2x4x32x8xf32, #tpu.memory_space<vmem>>, vector<1x1x32x8xf32>
    %130 = vector.shape_cast %129 : vector<1x1x32x8xf32> to vector<32x8xf32>
    %cst_113 = arith.constant dense<0.000000e+00> : vector<16x8xf32>
    %131 = tpu.matmul %0, %130, %cst_113 {dimension_numbers = #tpu.dot_dimension_numbers<[1], [0], [0], [1], [0, 0, 1, 1], [], []>} : vector<16x32xf32>, vector<32x8xf32>, vector<16x8xf32> -> vector<16x8xf32>
    %c0_114 = arith.constant 0 : index
    %c3_115 = arith.constant 3 : index
    %c0_116 = arith.constant 0 : index
    %c0_117 = arith.constant 0 : index
    %132 = vector.load %arg4[%c0_114, %c3_115, %c0_116, %c0_117] : memref<2x4x1x8xf32, #tpu.memory_space<vmem>>, vector<1x1x1x8xf32>
    %133 = vector.shape_cast %132 : vector<1x1x1x8xf32> to vector<1x8xf32>
    %134 = vector.broadcast %133 : vector<1x8xf32> to vector<16x8xf32>
    %135 = arith.addf %131, %134 : vector<16x8xf32>
    %c0_118 = arith.constant 0 : index
    %c3_119 = arith.constant 3 : index
    %c0_120 = arith.constant 0 : index
    %c0_121 = arith.constant 0 : index
    %136 = vector.load %arg5[%c0_118, %c3_119, %c0_120, %c0_121] : memref<2x4x32x8xf32, #tpu.memory_space<vmem>>, vector<1x1x32x8xf32>
    %137 = vector.shape_cast %136 : vector<1x1x32x8xf32> to vector<32x8xf32>
    %cst_122 = arith.constant dense<0.000000e+00> : vector<16x8xf32>
    %138 = tpu.matmul %0, %137, %cst_122 {dimension_numbers = #tpu.dot_dimension_numbers<[1], [0], [0], [1], [0, 0, 1, 1], [], []>} : vector<16x32xf32>, vector<32x8xf32>, vector<16x8xf32> -> vector<16x8xf32>
    %c0_123 = arith.constant 0 : index
    %c3_124 = arith.constant 3 : index
    %c0_125 = arith.constant 0 : index
    %c0_126 = arith.constant 0 : index
    %139 = vector.load %arg6[%c0_123, %c3_124, %c0_125, %c0_126] : memref<2x4x1x8xf32, #tpu.memory_space<vmem>>, vector<1x1x1x8xf32>
    %140 = vector.shape_cast %139 : vector<1x1x1x8xf32> to vector<1x8xf32>
    %141 = vector.broadcast %140 : vector<1x8xf32> to vector<16x8xf32>
    %142 = arith.addf %138, %141 : vector<16x8xf32>
    %c0_127 = arith.constant 0 : index
    %c3_128 = arith.constant 3 : index
    %c0_129 = arith.constant 0 : index
    %c0_130 = arith.constant 0 : index
    %143 = vector.load %arg7[%c0_127, %c3_128, %c0_129, %c0_130] : memref<2x4x32x8xf32, #tpu.memory_space<vmem>>, vector<1x1x32x8xf32>
    %144 = vector.shape_cast %143 : vector<1x1x32x8xf32> to vector<32x8xf32>
    %cst_131 = arith.constant dense<0.000000e+00> : vector<16x8xf32>
    %145 = tpu.matmul %0, %144, %cst_131 {dimension_numbers = #tpu.dot_dimension_numbers<[1], [0], [0], [1], [0, 0, 1, 1], [], []>} : vector<16x32xf32>, vector<32x8xf32>, vector<16x8xf32> -> vector<16x8xf32>
    %c0_132 = arith.constant 0 : index
    %c3_133 = arith.constant 3 : index
    %c0_134 = arith.constant 0 : index
    %c0_135 = arith.constant 0 : index
    %146 = vector.load %arg8[%c0_132, %c3_133, %c0_134, %c0_135] : memref<2x4x1x8xf32, #tpu.memory_space<vmem>>, vector<1x1x1x8xf32>
    %147 = vector.shape_cast %146 : vector<1x1x1x8xf32> to vector<1x8xf32>
    %148 = vector.broadcast %147 : vector<1x8xf32> to vector<16x8xf32>
    %149 = arith.addf %145, %148 : vector<16x8xf32>
    %150 = vector.shape_cast %135 : vector<16x8xf32> to vector<2x8x8xf32>
    %151 = vector.shape_cast %142 : vector<16x8xf32> to vector<2x8x8xf32>
    %152 = vector.shape_cast %149 : vector<16x8xf32> to vector<2x8x8xf32>
    "tpu.trace_start"() <{level = 10 : i32, message = "bqd,bkd->bqk"}> : () -> ()
    %cst_136 = arith.constant dense<0.000000e+00> : vector<2x8x8xf32>
    %153 = tpu.matmul %150, %151, %cst_136 {dimension_numbers = #tpu.dot_dimension_numbers<[2], [2], [1], [1], [0, 0, 0, 1, 1, 1], [0], [0]>} : vector<2x8x8xf32>, vector<2x8x8xf32>, vector<2x8x8xf32> -> vector<2x8x8xf32>
    "tpu.trace_stop"() : () -> ()
    %154 = arith.addf %153, %1 : vector<2x8x8xf32>
    %cst_137 = arith.constant dense<0xFF800000> : vector<2x8xf32>
    %155 = vector.multi_reduction <maximumf>, %154, %cst_137 [2] : vector<2x8x8xf32> to vector<2x8xf32>
    %156 = vector.shape_cast %155 : vector<2x8xf32> to vector<2x8x1xf32>
    %157 = vector.broadcast %156 : vector<2x8x1xf32> to vector<2x8x8xf32>
    %158 = arith.subf %154, %157 : vector<2x8x8xf32>
    %159 = math.exp %158 : vector<2x8x8xf32>
    %cst_138 = arith.constant dense<0.000000e+00> : vector<2x8xf32>
    %160 = vector.multi_reduction <add>, %159, %cst_138 [2] : vector<2x8x8xf32> to vector<2x8xf32>
    %161 = vector.shape_cast %160 : vector<2x8xf32> to vector<2x8x1xf32>
    %162 = tpu.reciprocal %161 {approx = true} : vector<2x8x1xf32> -> vector<2x8x1xf32>
    %163 = vector.broadcast %162 : vector<2x8x1xf32> to vector<2x8x8xf32>
    %164 = arith.mulf %159, %163 : vector<2x8x8xf32>
    "tpu.trace_start"() <{level = 10 : i32, message = "bqk,bkd->bqd"}> : () -> ()
    %cst_139 = arith.constant dense<0.000000e+00> : vector<2x8x8xf32>
    %165 = tpu.matmul %164, %152, %cst_139 {dimension_numbers = #tpu.dot_dimension_numbers<[2], [1], [1], [2], [0, 0, 0, 1, 1, 2], [0], [0]>} : vector<2x8x8xf32>, vector<2x8x8xf32>, vector<2x8x8xf32> -> vector<2x8x8xf32>
    "tpu.trace_stop"() : () -> ()
    %166 = vector.shape_cast %165 : vector<2x8x8xf32> to vector<16x8xf32>
    %c0_140 = arith.constant 0 : index
    %c3_141 = arith.constant 3 : index
    %c0_142 = arith.constant 0 : index
    %c0_143 = arith.constant 0 : index
    %167 = vector.load %arg9[%c0_140, %c3_141, %c0_142, %c0_143] : memref<2x4x8x32xf32, #tpu.memory_space<vmem>>, vector<1x1x8x32xf32>
    %168 = vector.shape_cast %167 : vector<1x1x8x32xf32> to vector<8x32xf32>
    %cst_144 = arith.constant dense<0.000000e+00> : vector<16x32xf32>
    %169 = tpu.matmul %166, %168, %cst_144 {dimension_numbers = #tpu.dot_dimension_numbers<[1], [0], [0], [1], [0, 0, 1, 1], [], []>} : vector<16x8xf32>, vector<8x32xf32>, vector<16x32xf32> -> vector<16x32xf32>
    %170 = arith.addf %128, %169 : vector<16x32xf32>
    %171 = arith.addf %0, %170 : vector<16x32xf32>
    %c0_145 = arith.constant 0 : index
    %c0_146 = arith.constant 0 : index
    %c0_147 = arith.constant 0 : index
    %172 = vector.load %arg10[%c0_145, %c0_146, %c0_147] : memref<2x1x32xf32, #tpu.memory_space<vmem>>, vector<1x1x32xf32>
    %173 = vector.shape_cast %172 : vector<1x1x32xf32> to vector<1x32xf32>
    %174 = vector.broadcast %173 : vector<1x32xf32> to vector<16x32xf32>
    %175 = arith.addf %171, %174 : vector<16x32xf32>
    %c0_148 = arith.constant 0 : index
    %c0_149 = arith.constant 0 : index
    %c0_150 = arith.constant 0 : index
    %176 = vector.load %arg11[%c0_148, %c0_149, %c0_150] : memref<2x1x32xf32, #tpu.memory_space<vmem>>, vector<1x1x32xf32>
    %177 = vector.shape_cast %176 : vector<1x1x32xf32> to vector<1x32xf32>
    %c0_151 = arith.constant 0 : index
    %c0_152 = arith.constant 0 : index
    %c0_153 = arith.constant 0 : index
    %178 = vector.load %arg12[%c0_151, %c0_152, %c0_153] : memref<2x1x32xf32, #tpu.memory_space<vmem>>, vector<1x1x32xf32>
    %179 = vector.shape_cast %178 : vector<1x1x32xf32> to vector<1x32xf32>
    %cst_154 = arith.constant dense<0.000000e+00> : vector<16xf32>
    %180 = vector.multi_reduction <add>, %175, %cst_154 [1] : vector<16x32xf32> to vector<16xf32>
    %181 = vector.shape_cast %180 : vector<16xf32> to vector<16x1xf32>
    %cst_155 = arith.constant 3.200000e+01 : f32
    %182 = vector.broadcast %cst_155 : f32 to vector<16x1xf32>
    %183 = arith.divf %181, %182 : vector<16x1xf32>
    %184 = vector.broadcast %183 : vector<16x1xf32> to vector<16x32xf32>
    %185 = arith.subf %175, %184 : vector<16x32xf32>
    %186 = arith.mulf %185, %185 : vector<16x32xf32>
    %cst_156 = arith.constant dense<0.000000e+00> : vector<16xf32>
    %187 = vector.multi_reduction <add>, %186, %cst_156 [1] : vector<16x32xf32> to vector<16xf32>
    %188 = vector.shape_cast %187 : vector<16xf32> to vector<16x1xf32>
    %cst_157 = arith.constant 3.200000e+01 : f32
    %189 = vector.broadcast %cst_157 : f32 to vector<16x1xf32>
    %190 = arith.divf %188, %189 : vector<16x1xf32>
    %191 = vector.broadcast %183 : vector<16x1xf32> to vector<16x32xf32>
    %192 = arith.subf %175, %191 : vector<16x32xf32>
    %cst_158 = arith.constant 9.99999974E-6 : f32
    %193 = vector.broadcast %cst_158 : f32 to vector<16x1xf32>
    %194 = arith.addf %190, %193 : vector<16x1xf32>
    %195 = math.rsqrt %194 : vector<16x1xf32>
    %196 = vector.broadcast %195 : vector<16x1xf32> to vector<16x32xf32>
    %197 = arith.mulf %192, %196 : vector<16x32xf32>
    %198 = vector.broadcast %177 : vector<1x32xf32> to vector<16x32xf32>
    %199 = arith.mulf %197, %198 : vector<16x32xf32>
    %200 = vector.broadcast %179 : vector<1x32xf32> to vector<16x32xf32>
    %201 = arith.addf %199, %200 : vector<16x32xf32>
    %c0_159 = arith.constant 0 : index
    %c0_160 = arith.constant 0 : index
    %c0_161 = arith.constant 0 : index
    %202 = vector.load %arg13[%c0_159, %c0_160, %c0_161] : memref<2x32x64xf32, #tpu.memory_space<vmem>>, vector<1x32x64xf32>
    %203 = vector.shape_cast %202 : vector<1x32x64xf32> to vector<32x64xf32>
    %cst_162 = arith.constant dense<0.000000e+00> : vector<16x64xf32>
    %204 = tpu.matmul %201, %203, %cst_162 {dimension_numbers = #tpu.dot_dimension_numbers<[1], [0], [0], [1], [0, 0, 1, 1], [], []>} : vector<16x32xf32>, vector<32x64xf32>, vector<16x64xf32> -> vector<16x64xf32>
    %c0_163 = arith.constant 0 : index
    %c0_164 = arith.constant 0 : index
    %c0_165 = arith.constant 0 : index
    %205 = vector.load %arg14[%c0_163, %c0_164, %c0_165] : memref<2x1x64xf32, #tpu.memory_space<vmem>>, vector<1x1x64xf32>
    %206 = vector.shape_cast %205 : vector<1x1x64xf32> to vector<1x64xf32>
    %207 = vector.broadcast %206 : vector<1x64xf32> to vector<16x64xf32>
    %208 = arith.addf %204, %207 : vector<16x64xf32>
    %cst_166 = arith.constant 0.000000e+00 : f32
    %209 = vector.broadcast %cst_166 : f32 to vector<16x64xf32>
    %210 = arith.maximumf %208, %209 : vector<16x64xf32>
    %c0_167 = arith.constant 0 : index
    %c0_168 = arith.constant 0 : index
    %c0_169 = arith.constant 0 : index
    %211 = vector.load %arg15[%c0_167, %c0_168, %c0_169] : memref<2x64x32xf32, #tpu.memory_space<vmem>>, vector<1x64x32xf32>
    %212 = vector.shape_cast %211 : vector<1x64x32xf32> to vector<64x32xf32>
    %cst_170 = arith.constant dense<0.000000e+00> : vector<16x32xf32>
    %213 = tpu.matmul %210, %212, %cst_170 {dimension_numbers = #tpu.dot_dimension_numbers<[1], [0], [0], [1], [0, 0, 1, 1], [], []>} : vector<16x64xf32>, vector<64x32xf32>, vector<16x32xf32> -> vector<16x32xf32>
    %c0_171 = arith.constant 0 : index
    %c0_172 = arith.constant 0 : index
    %c0_173 = arith.constant 0 : index
    %214 = vector.load %arg16[%c0_171, %c0_172, %c0_173] : memref<2x1x32xf32, #tpu.memory_space<vmem>>, vector<1x1x32xf32>
    %215 = vector.shape_cast %214 : vector<1x1x32xf32> to vector<1x32xf32>
    %216 = vector.broadcast %215 : vector<1x32xf32> to vector<16x32xf32>
    %217 = arith.addf %213, %216 : vector<16x32xf32>
    %218 = arith.addf %201, %217 : vector<16x32xf32>
    %c0_174 = arith.constant 0 : index
    %c0_175 = arith.constant 0 : index
    %c0_176 = arith.constant 0 : index
    %219 = vector.load %arg17[%c0_174, %c0_175, %c0_176] : memref<2x1x32xf32, #tpu.memory_space<vmem>>, vector<1x1x32xf32>
    %220 = vector.shape_cast %219 : vector<1x1x32xf32> to vector<1x32xf32>
    %c0_177 = arith.constant 0 : index
    %c0_178 = arith.constant 0 : index
    %c0_179 = arith.constant 0 : index
    %221 = vector.load %arg18[%c0_177, %c0_178, %c0_179] : memref<2x1x32xf32, #tpu.memory_space<vmem>>, vector<1x1x32xf32>
    %222 = vector.shape_cast %221 : vector<1x1x32xf32> to vector<1x32xf32>
    %cst_180 = arith.constant dense<0.000000e+00> : vector<16xf32>
    %223 = vector.multi_reduction <add>, %218, %cst_180 [1] : vector<16x32xf32> to vector<16xf32>
    %224 = vector.shape_cast %223 : vector<16xf32> to vector<16x1xf32>
    %cst_181 = arith.constant 3.200000e+01 : f32
    %225 = vector.broadcast %cst_181 : f32 to vector<16x1xf32>
    %226 = arith.divf %224, %225 : vector<16x1xf32>
    %227 = vector.broadcast %226 : vector<16x1xf32> to vector<16x32xf32>
    %228 = arith.subf %218, %227 : vector<16x32xf32>
    %229 = arith.mulf %228, %228 : vector<16x32xf32>
    %cst_182 = arith.constant dense<0.000000e+00> : vector<16xf32>
    %230 = vector.multi_reduction <add>, %229, %cst_182 [1] : vector<16x32xf32> to vector<16xf32>
    %231 = vector.shape_cast %230 : vector<16xf32> to vector<16x1xf32>
    %cst_183 = arith.constant 3.200000e+01 : f32
    %232 = vector.broadcast %cst_183 : f32 to vector<16x1xf32>
    %233 = arith.divf %231, %232 : vector<16x1xf32>
    %234 = vector.broadcast %226 : vector<16x1xf32> to vector<16x32xf32>
    %235 = arith.subf %218, %234 : vector<16x32xf32>
    %cst_184 = arith.constant 9.99999974E-6 : f32
    %236 = vector.broadcast %cst_184 : f32 to vector<16x1xf32>
    %237 = arith.addf %233, %236 : vector<16x1xf32>
    %238 = math.rsqrt %237 : vector<16x1xf32>
    %239 = vector.broadcast %238 : vector<16x1xf32> to vector<16x32xf32>
    %240 = arith.mulf %235, %239 : vector<16x32xf32>
    %241 = vector.broadcast %220 : vector<1x32xf32> to vector<16x32xf32>
    %242 = arith.mulf %240, %241 : vector<16x32xf32>
    %243 = vector.broadcast %222 : vector<1x32xf32> to vector<16x32xf32>
    %244 = arith.addf %242, %243 : vector<16x32xf32>
    %cst_185 = arith.constant 0.000000e+00 : f32
    %245 = vector.broadcast %cst_185 : f32 to vector<16x32xf32>
    %c1_186 = arith.constant 1 : index
    %c0_187 = arith.constant 0 : index
    %c0_188 = arith.constant 0 : index
    %c0_189 = arith.constant 0 : index
    %246 = vector.load %arg3[%c1_186, %c0_187, %c0_188, %c0_189] : memref<2x4x32x8xf32, #tpu.memory_space<vmem>>, vector<1x1x32x8xf32>
    %247 = vector.shape_cast %246 : vector<1x1x32x8xf32> to vector<32x8xf32>
    %cst_190 = arith.constant dense<0.000000e+00> : vector<16x8xf32>
    %248 = tpu.matmul %244, %247, %cst_190 {dimension_numbers = #tpu.dot_dimension_numbers<[1], [0], [0], [1], [0, 0, 1, 1], [], []>} : vector<16x32xf32>, vector<32x8xf32>, vector<16x8xf32> -> vector<16x8xf32>
    %c1_191 = arith.constant 1 : index
    %c0_192 = arith.constant 0 : index
    %c0_193 = arith.constant 0 : index
    %c0_194 = arith.constant 0 : index
    %249 = vector.load %arg4[%c1_191, %c0_192, %c0_193, %c0_194] : memref<2x4x1x8xf32, #tpu.memory_space<vmem>>, vector<1x1x1x8xf32>
    %250 = vector.shape_cast %249 : vector<1x1x1x8xf32> to vector<1x8xf32>
    %251 = vector.broadcast %250 : vector<1x8xf32> to vector<16x8xf32>
    %252 = arith.addf %248, %251 : vector<16x8xf32>
    %c1_195 = arith.constant 1 : index
    %c0_196 = arith.constant 0 : index
    %c0_197 = arith.constant 0 : index
    %c0_198 = arith.constant 0 : index
    %253 = vector.load %arg5[%c1_195, %c0_196, %c0_197, %c0_198] : memref<2x4x32x8xf32, #tpu.memory_space<vmem>>, vector<1x1x32x8xf32>
    %254 = vector.shape_cast %253 : vector<1x1x32x8xf32> to vector<32x8xf32>
    %cst_199 = arith.constant dense<0.000000e+00> : vector<16x8xf32>
    %255 = tpu.matmul %244, %254, %cst_199 {dimension_numbers = #tpu.dot_dimension_numbers<[1], [0], [0], [1], [0, 0, 1, 1], [], []>} : vector<16x32xf32>, vector<32x8xf32>, vector<16x8xf32> -> vector<16x8xf32>
    %c1_200 = arith.constant 1 : index
    %c0_201 = arith.constant 0 : index
    %c0_202 = arith.constant 0 : index
    %c0_203 = arith.constant 0 : index
    %256 = vector.load %arg6[%c1_200, %c0_201, %c0_202, %c0_203] : memref<2x4x1x8xf32, #tpu.memory_space<vmem>>, vector<1x1x1x8xf32>
    %257 = vector.shape_cast %256 : vector<1x1x1x8xf32> to vector<1x8xf32>
    %258 = vector.broadcast %257 : vector<1x8xf32> to vector<16x8xf32>
    %259 = arith.addf %255, %258 : vector<16x8xf32>
    %c1_204 = arith.constant 1 : index
    %c0_205 = arith.constant 0 : index
    %c0_206 = arith.constant 0 : index
    %c0_207 = arith.constant 0 : index
    %260 = vector.load %arg7[%c1_204, %c0_205, %c0_206, %c0_207] : memref<2x4x32x8xf32, #tpu.memory_space<vmem>>, vector<1x1x32x8xf32>
    %261 = vector.shape_cast %260 : vector<1x1x32x8xf32> to vector<32x8xf32>
    %cst_208 = arith.constant dense<0.000000e+00> : vector<16x8xf32>
    %262 = tpu.matmul %244, %261, %cst_208 {dimension_numbers = #tpu.dot_dimension_numbers<[1], [0], [0], [1], [0, 0, 1, 1], [], []>} : vector<16x32xf32>, vector<32x8xf32>, vector<16x8xf32> -> vector<16x8xf32>
    %c1_209 = arith.constant 1 : index
    %c0_210 = arith.constant 0 : index
    %c0_211 = arith.constant 0 : index
    %c0_212 = arith.constant 0 : index
    %263 = vector.load %arg8[%c1_209, %c0_210, %c0_211, %c0_212] : memref<2x4x1x8xf32, #tpu.memory_space<vmem>>, vector<1x1x1x8xf32>
    %264 = vector.shape_cast %263 : vector<1x1x1x8xf32> to vector<1x8xf32>
    %265 = vector.broadcast %264 : vector<1x8xf32> to vector<16x8xf32>
    %266 = arith.addf %262, %265 : vector<16x8xf32>
    %267 = vector.shape_cast %252 : vector<16x8xf32> to vector<2x8x8xf32>
    %268 = vector.shape_cast %259 : vector<16x8xf32> to vector<2x8x8xf32>
    %269 = vector.shape_cast %266 : vector<16x8xf32> to vector<2x8x8xf32>
    "tpu.trace_start"() <{level = 10 : i32, message = "bqd,bkd->bqk"}> : () -> ()
    %cst_213 = arith.constant dense<0.000000e+00> : vector<2x8x8xf32>
    %270 = tpu.matmul %267, %268, %cst_213 {dimension_numbers = #tpu.dot_dimension_numbers<[2], [2], [1], [1], [0, 0, 0, 1, 1, 1], [0], [0]>} : vector<2x8x8xf32>, vector<2x8x8xf32>, vector<2x8x8xf32> -> vector<2x8x8xf32>
    "tpu.trace_stop"() : () -> ()
    %271 = arith.addf %270, %1 : vector<2x8x8xf32>
    %cst_214 = arith.constant dense<0xFF800000> : vector<2x8xf32>
    %272 = vector.multi_reduction <maximumf>, %271, %cst_214 [2] : vector<2x8x8xf32> to vector<2x8xf32>
    %273 = vector.shape_cast %272 : vector<2x8xf32> to vector<2x8x1xf32>
    %274 = vector.broadcast %273 : vector<2x8x1xf32> to vector<2x8x8xf32>
    %275 = arith.subf %271, %274 : vector<2x8x8xf32>
    %276 = math.exp %275 : vector<2x8x8xf32>
    %cst_215 = arith.constant dense<0.000000e+00> : vector<2x8xf32>
    %277 = vector.multi_reduction <add>, %276, %cst_215 [2] : vector<2x8x8xf32> to vector<2x8xf32>
    %278 = vector.shape_cast %277 : vector<2x8xf32> to vector<2x8x1xf32>
    %279 = tpu.reciprocal %278 {approx = true} : vector<2x8x1xf32> -> vector<2x8x1xf32>
    %280 = vector.broadcast %279 : vector<2x8x1xf32> to vector<2x8x8xf32>
    %281 = arith.mulf %276, %280 : vector<2x8x8xf32>
    "tpu.trace_start"() <{level = 10 : i32, message = "bqk,bkd->bqd"}> : () -> ()
    %cst_216 = arith.constant dense<0.000000e+00> : vector<2x8x8xf32>
    %282 = tpu.matmul %281, %269, %cst_216 {dimension_numbers = #tpu.dot_dimension_numbers<[2], [1], [1], [2], [0, 0, 0, 1, 1, 2], [0], [0]>} : vector<2x8x8xf32>, vector<2x8x8xf32>, vector<2x8x8xf32> -> vector<2x8x8xf32>
    "tpu.trace_stop"() : () -> ()
    %283 = vector.shape_cast %282 : vector<2x8x8xf32> to vector<16x8xf32>
    %c1_217 = arith.constant 1 : index
    %c0_218 = arith.constant 0 : index
    %c0_219 = arith.constant 0 : index
    %c0_220 = arith.constant 0 : index
    %284 = vector.load %arg9[%c1_217, %c0_218, %c0_219, %c0_220] : memref<2x4x8x32xf32, #tpu.memory_space<vmem>>, vector<1x1x8x32xf32>
    %285 = vector.shape_cast %284 : vector<1x1x8x32xf32> to vector<8x32xf32>
    %cst_221 = arith.constant dense<0.000000e+00> : vector<16x32xf32>
    %286 = tpu.matmul %283, %285, %cst_221 {dimension_numbers = #tpu.dot_dimension_numbers<[1], [0], [0], [1], [0, 0, 1, 1], [], []>} : vector<16x8xf32>, vector<8x32xf32>, vector<16x32xf32> -> vector<16x32xf32>
    %287 = arith.addf %245, %286 : vector<16x32xf32>
    %c1_222 = arith.constant 1 : index
    %c1_223 = arith.constant 1 : index
    %c0_224 = arith.constant 0 : index
    %c0_225 = arith.constant 0 : index
    %288 = vector.load %arg3[%c1_222, %c1_223, %c0_224, %c0_225] : memref<2x4x32x8xf32, #tpu.memory_space<vmem>>, vector<1x1x32x8xf32>
    %289 = vector.shape_cast %288 : vector<1x1x32x8xf32> to vector<32x8xf32>
    %cst_226 = arith.constant dense<0.000000e+00> : vector<16x8xf32>
    %290 = tpu.matmul %244, %289, %cst_226 {dimension_numbers = #tpu.dot_dimension_numbers<[1], [0], [0], [1], [0, 0, 1, 1], [], []>} : vector<16x32xf32>, vector<32x8xf32>, vector<16x8xf32> -> vector<16x8xf32>
    %c1_227 = arith.constant 1 : index
    %c1_228 = arith.constant 1 : index
    %c0_229 = arith.constant 0 : index
    %c0_230 = arith.constant 0 : index
    %291 = vector.load %arg4[%c1_227, %c1_228, %c0_229, %c0_230] : memref<2x4x1x8xf32, #tpu.memory_space<vmem>>, vector<1x1x1x8xf32>
    %292 = vector.shape_cast %291 : vector<1x1x1x8xf32> to vector<1x8xf32>
    %293 = vector.broadcast %292 : vector<1x8xf32> to vector<16x8xf32>
    %294 = arith.addf %290, %293 : vector<16x8xf32>
    %c1_231 = arith.constant 1 : index
    %c1_232 = arith.constant 1 : index
    %c0_233 = arith.constant 0 : index
    %c0_234 = arith.constant 0 : index
    %295 = vector.load %arg5[%c1_231, %c1_232, %c0_233, %c0_234] : memref<2x4x32x8xf32, #tpu.memory_space<vmem>>, vector<1x1x32x8xf32>
    %296 = vector.shape_cast %295 : vector<1x1x32x8xf32> to vector<32x8xf32>
    %cst_235 = arith.constant dense<0.000000e+00> : vector<16x8xf32>
    %297 = tpu.matmul %244, %296, %cst_235 {dimension_numbers = #tpu.dot_dimension_numbers<[1], [0], [0], [1], [0, 0, 1, 1], [], []>} : vector<16x32xf32>, vector<32x8xf32>, vector<16x8xf32> -> vector<16x8xf32>
    %c1_236 = arith.constant 1 : index
    %c1_237 = arith.constant 1 : index
    %c0_238 = arith.constant 0 : index
    %c0_239 = arith.constant 0 : index
    %298 = vector.load %arg6[%c1_236, %c1_237, %c0_238, %c0_239] : memref<2x4x1x8xf32, #tpu.memory_space<vmem>>, vector<1x1x1x8xf32>
    %299 = vector.shape_cast %298 : vector<1x1x1x8xf32> to vector<1x8xf32>
    %300 = vector.broadcast %299 : vector<1x8xf32> to vector<16x8xf32>
    %301 = arith.addf %297, %300 : vector<16x8xf32>
    %c1_240 = arith.constant 1 : index
    %c1_241 = arith.constant 1 : index
    %c0_242 = arith.constant 0 : index
    %c0_243 = arith.constant 0 : index
    %302 = vector.load %arg7[%c1_240, %c1_241, %c0_242, %c0_243] : memref<2x4x32x8xf32, #tpu.memory_space<vmem>>, vector<1x1x32x8xf32>
    %303 = vector.shape_cast %302 : vector<1x1x32x8xf32> to vector<32x8xf32>
    %cst_244 = arith.constant dense<0.000000e+00> : vector<16x8xf32>
    %304 = tpu.matmul %244, %303, %cst_244 {dimension_numbers = #tpu.dot_dimension_numbers<[1], [0], [0], [1], [0, 0, 1, 1], [], []>} : vector<16x32xf32>, vector<32x8xf32>, vector<16x8xf32> -> vector<16x8xf32>
    %c1_245 = arith.constant 1 : index
    %c1_246 = arith.constant 1 : index
    %c0_247 = arith.constant 0 : index
    %c0_248 = arith.constant 0 : index
    %305 = vector.load %arg8[%c1_245, %c1_246, %c0_247, %c0_248] : memref<2x4x1x8xf32, #tpu.memory_space<vmem>>, vector<1x1x1x8xf32>
    %306 = vector.shape_cast %305 : vector<1x1x1x8xf32> to vector<1x8xf32>
    %307 = vector.broadcast %306 : vector<1x8xf32> to vector<16x8xf32>
    %308 = arith.addf %304, %307 : vector<16x8xf32>
    %309 = vector.shape_cast %294 : vector<16x8xf32> to vector<2x8x8xf32>
    %310 = vector.shape_cast %301 : vector<16x8xf32> to vector<2x8x8xf32>
    %311 = vector.shape_cast %308 : vector<16x8xf32> to vector<2x8x8xf32>
    "tpu.trace_start"() <{level = 10 : i32, message = "bqd,bkd->bqk"}> : () -> ()
    %cst_249 = arith.constant dense<0.000000e+00> : vector<2x8x8xf32>
    %312 = tpu.matmul %309, %310, %cst_249 {dimension_numbers = #tpu.dot_dimension_numbers<[2], [2], [1], [1], [0, 0, 0, 1, 1, 1], [0], [0]>} : vector<2x8x8xf32>, vector<2x8x8xf32>, vector<2x8x8xf32> -> vector<2x8x8xf32>
    "tpu.trace_stop"() : () -> ()
    %313 = arith.addf %312, %1 : vector<2x8x8xf32>
    %cst_250 = arith.constant dense<0xFF800000> : vector<2x8xf32>
    %314 = vector.multi_reduction <maximumf>, %313, %cst_250 [2] : vector<2x8x8xf32> to vector<2x8xf32>
    %315 = vector.shape_cast %314 : vector<2x8xf32> to vector<2x8x1xf32>
    %316 = vector.broadcast %315 : vector<2x8x1xf32> to vector<2x8x8xf32>
    %317 = arith.subf %313, %316 : vector<2x8x8xf32>
    %318 = math.exp %317 : vector<2x8x8xf32>
    %cst_251 = arith.constant dense<0.000000e+00> : vector<2x8xf32>
    %319 = vector.multi_reduction <add>, %318, %cst_251 [2] : vector<2x8x8xf32> to vector<2x8xf32>
    %320 = vector.shape_cast %319 : vector<2x8xf32> to vector<2x8x1xf32>
    %321 = tpu.reciprocal %320 {approx = true} : vector<2x8x1xf32> -> vector<2x8x1xf32>
    %322 = vector.broadcast %321 : vector<2x8x1xf32> to vector<2x8x8xf32>
    %323 = arith.mulf %318, %322 : vector<2x8x8xf32>
    "tpu.trace_start"() <{level = 10 : i32, message = "bqk,bkd->bqd"}> : () -> ()
    %cst_252 = arith.constant dense<0.000000e+00> : vector<2x8x8xf32>
    %324 = tpu.matmul %323, %311, %cst_252 {dimension_numbers = #tpu.dot_dimension_numbers<[2], [1], [1], [2], [0, 0, 0, 1, 1, 2], [0], [0]>} : vector<2x8x8xf32>, vector<2x8x8xf32>, vector<2x8x8xf32> -> vector<2x8x8xf32>
    "tpu.trace_stop"() : () -> ()
    %325 = vector.shape_cast %324 : vector<2x8x8xf32> to vector<16x8xf32>
    %c1_253 = arith.constant 1 : index
    %c1_254 = arith.constant 1 : index
    %c0_255 = arith.constant 0 : index
    %c0_256 = arith.constant 0 : index
    %326 = vector.load %arg9[%c1_253, %c1_254, %c0_255, %c0_256] : memref<2x4x8x32xf32, #tpu.memory_space<vmem>>, vector<1x1x8x32xf32>
    %327 = vector.shape_cast %326 : vector<1x1x8x32xf32> to vector<8x32xf32>
    %cst_257 = arith.constant dense<0.000000e+00> : vector<16x32xf32>
    %328 = tpu.matmul %325, %327, %cst_257 {dimension_numbers = #tpu.dot_dimension_numbers<[1], [0], [0], [1], [0, 0, 1, 1], [], []>} : vector<16x8xf32>, vector<8x32xf32>, vector<16x32xf32> -> vector<16x32xf32>
    %329 = arith.addf %287, %328 : vector<16x32xf32>
    %c1_258 = arith.constant 1 : index
    %c2_259 = arith.constant 2 : index
    %c0_260 = arith.constant 0 : index
    %c0_261 = arith.constant 0 : index
    %330 = vector.load %arg3[%c1_258, %c2_259, %c0_260, %c0_261] : memref<2x4x32x8xf32, #tpu.memory_space<vmem>>, vector<1x1x32x8xf32>
    %331 = vector.shape_cast %330 : vector<1x1x32x8xf32> to vector<32x8xf32>
    %cst_262 = arith.constant dense<0.000000e+00> : vector<16x8xf32>
    %332 = tpu.matmul %244, %331, %cst_262 {dimension_numbers = #tpu.dot_dimension_numbers<[1], [0], [0], [1], [0, 0, 1, 1], [], []>} : vector<16x32xf32>, vector<32x8xf32>, vector<16x8xf32> -> vector<16x8xf32>
    %c1_263 = arith.constant 1 : index
    %c2_264 = arith.constant 2 : index
    %c0_265 = arith.constant 0 : index
    %c0_266 = arith.constant 0 : index
    %333 = vector.load %arg4[%c1_263, %c2_264, %c0_265, %c0_266] : memref<2x4x1x8xf32, #tpu.memory_space<vmem>>, vector<1x1x1x8xf32>
    %334 = vector.shape_cast %333 : vector<1x1x1x8xf32> to vector<1x8xf32>
    %335 = vector.broadcast %334 : vector<1x8xf32> to vector<16x8xf32>
    %336 = arith.addf %332, %335 : vector<16x8xf32>
    %c1_267 = arith.constant 1 : index
    %c2_268 = arith.constant 2 : index
    %c0_269 = arith.constant 0 : index
    %c0_270 = arith.constant 0 : index
    %337 = vector.load %arg5[%c1_267, %c2_268, %c0_269, %c0_270] : memref<2x4x32x8xf32, #tpu.memory_space<vmem>>, vector<1x1x32x8xf32>
    %338 = vector.shape_cast %337 : vector<1x1x32x8xf32> to vector<32x8xf32>
    %cst_271 = arith.constant dense<0.000000e+00> : vector<16x8xf32>
    %339 = tpu.matmul %244, %338, %cst_271 {dimension_numbers = #tpu.dot_dimension_numbers<[1], [0], [0], [1], [0, 0, 1, 1], [], []>} : vector<16x32xf32>, vector<32x8xf32>, vector<16x8xf32> -> vector<16x8xf32>
    %c1_272 = arith.constant 1 : index
    %c2_273 = arith.constant 2 : index
    %c0_274 = arith.constant 0 : index
    %c0_275 = arith.constant 0 : index
    %340 = vector.load %arg6[%c1_272, %c2_273, %c0_274, %c0_275] : memref<2x4x1x8xf32, #tpu.memory_space<vmem>>, vector<1x1x1x8xf32>
    %341 = vector.shape_cast %340 : vector<1x1x1x8xf32> to vector<1x8xf32>
    %342 = vector.broadcast %341 : vector<1x8xf32> to vector<16x8xf32>
    %343 = arith.addf %339, %342 : vector<16x8xf32>
    %c1_276 = arith.constant 1 : index
    %c2_277 = arith.constant 2 : index
    %c0_278 = arith.constant 0 : index
    %c0_279 = arith.constant 0 : index
    %344 = vector.load %arg7[%c1_276, %c2_277, %c0_278, %c0_279] : memref<2x4x32x8xf32, #tpu.memory_space<vmem>>, vector<1x1x32x8xf32>
    %345 = vector.shape_cast %344 : vector<1x1x32x8xf32> to vector<32x8xf32>
    %cst_280 = arith.constant dense<0.000000e+00> : vector<16x8xf32>
    %346 = tpu.matmul %244, %345, %cst_280 {dimension_numbers = #tpu.dot_dimension_numbers<[1], [0], [0], [1], [0, 0, 1, 1], [], []>} : vector<16x32xf32>, vector<32x8xf32>, vector<16x8xf32> -> vector<16x8xf32>
    %c1_281 = arith.constant 1 : index
    %c2_282 = arith.constant 2 : index
    %c0_283 = arith.constant 0 : index
    %c0_284 = arith.constant 0 : index
    %347 = vector.load %arg8[%c1_281, %c2_282, %c0_283, %c0_284] : memref<2x4x1x8xf32, #tpu.memory_space<vmem>>, vector<1x1x1x8xf32>
    %348 = vector.shape_cast %347 : vector<1x1x1x8xf32> to vector<1x8xf32>
    %349 = vector.broadcast %348 : vector<1x8xf32> to vector<16x8xf32>
    %350 = arith.addf %346, %349 : vector<16x8xf32>
    %351 = vector.shape_cast %336 : vector<16x8xf32> to vector<2x8x8xf32>
    %352 = vector.shape_cast %343 : vector<16x8xf32> to vector<2x8x8xf32>
    %353 = vector.shape_cast %350 : vector<16x8xf32> to vector<2x8x8xf32>
    "tpu.trace_start"() <{level = 10 : i32, message = "bqd,bkd->bqk"}> : () -> ()
    %cst_285 = arith.constant dense<0.000000e+00> : vector<2x8x8xf32>
    %354 = tpu.matmul %351, %352, %cst_285 {dimension_numbers = #tpu.dot_dimension_numbers<[2], [2], [1], [1], [0, 0, 0, 1, 1, 1], [0], [0]>} : vector<2x8x8xf32>, vector<2x8x8xf32>, vector<2x8x8xf32> -> vector<2x8x8xf32>
    "tpu.trace_stop"() : () -> ()
    %355 = arith.addf %354, %1 : vector<2x8x8xf32>
    %cst_286 = arith.constant dense<0xFF800000> : vector<2x8xf32>
    %356 = vector.multi_reduction <maximumf>, %355, %cst_286 [2] : vector<2x8x8xf32> to vector<2x8xf32>
    %357 = vector.shape_cast %356 : vector<2x8xf32> to vector<2x8x1xf32>
    %358 = vector.broadcast %357 : vector<2x8x1xf32> to vector<2x8x8xf32>
    %359 = arith.subf %355, %358 : vector<2x8x8xf32>
    %360 = math.exp %359 : vector<2x8x8xf32>
    %cst_287 = arith.constant dense<0.000000e+00> : vector<2x8xf32>
    %361 = vector.multi_reduction <add>, %360, %cst_287 [2] : vector<2x8x8xf32> to vector<2x8xf32>
    %362 = vector.shape_cast %361 : vector<2x8xf32> to vector<2x8x1xf32>
    %363 = tpu.reciprocal %362 {approx = true} : vector<2x8x1xf32> -> vector<2x8x1xf32>
    %364 = vector.broadcast %363 : vector<2x8x1xf32> to vector<2x8x8xf32>
    %365 = arith.mulf %360, %364 : vector<2x8x8xf32>
    "tpu.trace_start"() <{level = 10 : i32, message = "bqk,bkd->bqd"}> : () -> ()
    %cst_288 = arith.constant dense<0.000000e+00> : vector<2x8x8xf32>
    %366 = tpu.matmul %365, %353, %cst_288 {dimension_numbers = #tpu.dot_dimension_numbers<[2], [1], [1], [2], [0, 0, 0, 1, 1, 2], [0], [0]>} : vector<2x8x8xf32>, vector<2x8x8xf32>, vector<2x8x8xf32> -> vector<2x8x8xf32>
    "tpu.trace_stop"() : () -> ()
    %367 = vector.shape_cast %366 : vector<2x8x8xf32> to vector<16x8xf32>
    %c1_289 = arith.constant 1 : index
    %c2_290 = arith.constant 2 : index
    %c0_291 = arith.constant 0 : index
    %c0_292 = arith.constant 0 : index
    %368 = vector.load %arg9[%c1_289, %c2_290, %c0_291, %c0_292] : memref<2x4x8x32xf32, #tpu.memory_space<vmem>>, vector<1x1x8x32xf32>
    %369 = vector.shape_cast %368 : vector<1x1x8x32xf32> to vector<8x32xf32>
    %cst_293 = arith.constant dense<0.000000e+00> : vector<16x32xf32>
    %370 = tpu.matmul %367, %369, %cst_293 {dimension_numbers = #tpu.dot_dimension_numbers<[1], [0], [0], [1], [0, 0, 1, 1], [], []>} : vector<16x8xf32>, vector<8x32xf32>, vector<16x32xf32> -> vector<16x32xf32>
    %371 = arith.addf %329, %370 : vector<16x32xf32>
    %c1_294 = arith.constant 1 : index
    %c3_295 = arith.constant 3 : index
    %c0_296 = arith.constant 0 : index
    %c0_297 = arith.constant 0 : index
    %372 = vector.load %arg3[%c1_294, %c3_295, %c0_296, %c0_297] : memref<2x4x32x8xf32, #tpu.memory_space<vmem>>, vector<1x1x32x8xf32>
    %373 = vector.shape_cast %372 : vector<1x1x32x8xf32> to vector<32x8xf32>
    %cst_298 = arith.constant dense<0.000000e+00> : vector<16x8xf32>
    %374 = tpu.matmul %244, %373, %cst_298 {dimension_numbers = #tpu.dot_dimension_numbers<[1], [0], [0], [1], [0, 0, 1, 1], [], []>} : vector<16x32xf32>, vector<32x8xf32>, vector<16x8xf32> -> vector<16x8xf32>
    %c1_299 = arith.constant 1 : index
    %c3_300 = arith.constant 3 : index
    %c0_301 = arith.constant 0 : index
    %c0_302 = arith.constant 0 : index
    %375 = vector.load %arg4[%c1_299, %c3_300, %c0_301, %c0_302] : memref<2x4x1x8xf32, #tpu.memory_space<vmem>>, vector<1x1x1x8xf32>
    %376 = vector.shape_cast %375 : vector<1x1x1x8xf32> to vector<1x8xf32>
    %377 = vector.broadcast %376 : vector<1x8xf32> to vector<16x8xf32>
    %378 = arith.addf %374, %377 : vector<16x8xf32>
    %c1_303 = arith.constant 1 : index
    %c3_304 = arith.constant 3 : index
    %c0_305 = arith.constant 0 : index
    %c0_306 = arith.constant 0 : index
    %379 = vector.load %arg5[%c1_303, %c3_304, %c0_305, %c0_306] : memref<2x4x32x8xf32, #tpu.memory_space<vmem>>, vector<1x1x32x8xf32>
    %380 = vector.shape_cast %379 : vector<1x1x32x8xf32> to vector<32x8xf32>
    %cst_307 = arith.constant dense<0.000000e+00> : vector<16x8xf32>
    %381 = tpu.matmul %244, %380, %cst_307 {dimension_numbers = #tpu.dot_dimension_numbers<[1], [0], [0], [1], [0, 0, 1, 1], [], []>} : vector<16x32xf32>, vector<32x8xf32>, vector<16x8xf32> -> vector<16x8xf32>
    %c1_308 = arith.constant 1 : index
    %c3_309 = arith.constant 3 : index
    %c0_310 = arith.constant 0 : index
    %c0_311 = arith.constant 0 : index
    %382 = vector.load %arg6[%c1_308, %c3_309, %c0_310, %c0_311] : memref<2x4x1x8xf32, #tpu.memory_space<vmem>>, vector<1x1x1x8xf32>
    %383 = vector.shape_cast %382 : vector<1x1x1x8xf32> to vector<1x8xf32>
    %384 = vector.broadcast %383 : vector<1x8xf32> to vector<16x8xf32>
    %385 = arith.addf %381, %384 : vector<16x8xf32>
    %c1_312 = arith.constant 1 : index
    %c3_313 = arith.constant 3 : index
    %c0_314 = arith.constant 0 : index
    %c0_315 = arith.constant 0 : index
    %386 = vector.load %arg7[%c1_312, %c3_313, %c0_314, %c0_315] : memref<2x4x32x8xf32, #tpu.memory_space<vmem>>, vector<1x1x32x8xf32>
    %387 = vector.shape_cast %386 : vector<1x1x32x8xf32> to vector<32x8xf32>
    %cst_316 = arith.constant dense<0.000000e+00> : vector<16x8xf32>
    %388 = tpu.matmul %244, %387, %cst_316 {dimension_numbers = #tpu.dot_dimension_numbers<[1], [0], [0], [1], [0, 0, 1, 1], [], []>} : vector<16x32xf32>, vector<32x8xf32>, vector<16x8xf32> -> vector<16x8xf32>
    %c1_317 = arith.constant 1 : index
    %c3_318 = arith.constant 3 : index
    %c0_319 = arith.constant 0 : index
    %c0_320 = arith.constant 0 : index
    %389 = vector.load %arg8[%c1_317, %c3_318, %c0_319, %c0_320] : memref<2x4x1x8xf32, #tpu.memory_space<vmem>>, vector<1x1x1x8xf32>
    %390 = vector.shape_cast %389 : vector<1x1x1x8xf32> to vector<1x8xf32>
    %391 = vector.broadcast %390 : vector<1x8xf32> to vector<16x8xf32>
    %392 = arith.addf %388, %391 : vector<16x8xf32>
    %393 = vector.shape_cast %378 : vector<16x8xf32> to vector<2x8x8xf32>
    %394 = vector.shape_cast %385 : vector<16x8xf32> to vector<2x8x8xf32>
    %395 = vector.shape_cast %392 : vector<16x8xf32> to vector<2x8x8xf32>
    "tpu.trace_start"() <{level = 10 : i32, message = "bqd,bkd->bqk"}> : () -> ()
    %cst_321 = arith.constant dense<0.000000e+00> : vector<2x8x8xf32>
    %396 = tpu.matmul %393, %394, %cst_321 {dimension_numbers = #tpu.dot_dimension_numbers<[2], [2], [1], [1], [0, 0, 0, 1, 1, 1], [0], [0]>} : vector<2x8x8xf32>, vector<2x8x8xf32>, vector<2x8x8xf32> -> vector<2x8x8xf32>
    "tpu.trace_stop"() : () -> ()
    %397 = arith.addf %396, %1 : vector<2x8x8xf32>
    %cst_322 = arith.constant dense<0xFF800000> : vector<2x8xf32>
    %398 = vector.multi_reduction <maximumf>, %397, %cst_322 [2] : vector<2x8x8xf32> to vector<2x8xf32>
    %399 = vector.shape_cast %398 : vector<2x8xf32> to vector<2x8x1xf32>
    %400 = vector.broadcast %399 : vector<2x8x1xf32> to vector<2x8x8xf32>
    %401 = arith.subf %397, %400 : vector<2x8x8xf32>
    %402 = math.exp %401 : vector<2x8x8xf32>
    %cst_323 = arith.constant dense<0.000000e+00> : vector<2x8xf32>
    %403 = vector.multi_reduction <add>, %402, %cst_323 [2] : vector<2x8x8xf32> to vector<2x8xf32>
    %404 = vector.shape_cast %403 : vector<2x8xf32> to vector<2x8x1xf32>
    %405 = tpu.reciprocal %404 {approx = true} : vector<2x8x1xf32> -> vector<2x8x1xf32>
    %406 = vector.broadcast %405 : vector<2x8x1xf32> to vector<2x8x8xf32>
    %407 = arith.mulf %402, %406 : vector<2x8x8xf32>
    "tpu.trace_start"() <{level = 10 : i32, message = "bqk,bkd->bqd"}> : () -> ()
    %cst_324 = arith.constant dense<0.000000e+00> : vector<2x8x8xf32>
    %408 = tpu.matmul %407, %395, %cst_324 {dimension_numbers = #tpu.dot_dimension_numbers<[2], [1], [1], [2], [0, 0, 0, 1, 1, 2], [0], [0]>} : vector<2x8x8xf32>, vector<2x8x8xf32>, vector<2x8x8xf32> -> vector<2x8x8xf32>
    "tpu.trace_stop"() : () -> ()
    %409 = vector.shape_cast %408 : vector<2x8x8xf32> to vector<16x8xf32>
    %c1_325 = arith.constant 1 : index
    %c3_326 = arith.constant 3 : index
    %c0_327 = arith.constant 0 : index
    %c0_328 = arith.constant 0 : index
    %410 = vector.load %arg9[%c1_325, %c3_326, %c0_327, %c0_328] : memref<2x4x8x32xf32, #tpu.memory_space<vmem>>, vector<1x1x8x32xf32>
    %411 = vector.shape_cast %410 : vector<1x1x8x32xf32> to vector<8x32xf32>
    %cst_329 = arith.constant dense<0.000000e+00> : vector<16x32xf32>
    %412 = tpu.matmul %409, %411, %cst_329 {dimension_numbers = #tpu.dot_dimension_numbers<[1], [0], [0], [1], [0, 0, 1, 1], [], []>} : vector<16x8xf32>, vector<8x32xf32>, vector<16x32xf32> -> vector<16x32xf32>
    %413 = arith.addf %371, %412 : vector<16x32xf32>
    %414 = arith.addf %244, %413 : vector<16x32xf32>
    %c1_330 = arith.constant 1 : index
    %c0_331 = arith.constant 0 : index
    %c0_332 = arith.constant 0 : index
    %415 = vector.load %arg10[%c1_330, %c0_331, %c0_332] : memref<2x1x32xf32, #tpu.memory_space<vmem>>, vector<1x1x32xf32>
    %416 = vector.shape_cast %415 : vector<1x1x32xf32> to vector<1x32xf32>
    %417 = vector.broadcast %416 : vector<1x32xf32> to vector<16x32xf32>
    %418 = arith.addf %414, %417 : vector<16x32xf32>
    %c1_333 = arith.constant 1 : index
    %c0_334 = arith.constant 0 : index
    %c0_335 = arith.constant 0 : index
    %419 = vector.load %arg11[%c1_333, %c0_334, %c0_335] : memref<2x1x32xf32, #tpu.memory_space<vmem>>, vector<1x1x32xf32>
    %420 = vector.shape_cast %419 : vector<1x1x32xf32> to vector<1x32xf32>
    %c1_336 = arith.constant 1 : index
    %c0_337 = arith.constant 0 : index
    %c0_338 = arith.constant 0 : index
    %421 = vector.load %arg12[%c1_336, %c0_337, %c0_338] : memref<2x1x32xf32, #tpu.memory_space<vmem>>, vector<1x1x32xf32>
    %422 = vector.shape_cast %421 : vector<1x1x32xf32> to vector<1x32xf32>
    %cst_339 = arith.constant dense<0.000000e+00> : vector<16xf32>
    %423 = vector.multi_reduction <add>, %418, %cst_339 [1] : vector<16x32xf32> to vector<16xf32>
    %424 = vector.shape_cast %423 : vector<16xf32> to vector<16x1xf32>
    %cst_340 = arith.constant 3.200000e+01 : f32
    %425 = vector.broadcast %cst_340 : f32 to vector<16x1xf32>
    %426 = arith.divf %424, %425 : vector<16x1xf32>
    %427 = vector.broadcast %426 : vector<16x1xf32> to vector<16x32xf32>
    %428 = arith.subf %418, %427 : vector<16x32xf32>
    %429 = arith.mulf %428, %428 : vector<16x32xf32>
    %cst_341 = arith.constant dense<0.000000e+00> : vector<16xf32>
    %430 = vector.multi_reduction <add>, %429, %cst_341 [1] : vector<16x32xf32> to vector<16xf32>
    %431 = vector.shape_cast %430 : vector<16xf32> to vector<16x1xf32>
    %cst_342 = arith.constant 3.200000e+01 : f32
    %432 = vector.broadcast %cst_342 : f32 to vector<16x1xf32>
    %433 = arith.divf %431, %432 : vector<16x1xf32>
    %434 = vector.broadcast %426 : vector<16x1xf32> to vector<16x32xf32>
    %435 = arith.subf %418, %434 : vector<16x32xf32>
    %cst_343 = arith.constant 9.99999974E-6 : f32
    %436 = vector.broadcast %cst_343 : f32 to vector<16x1xf32>
    %437 = arith.addf %433, %436 : vector<16x1xf32>
    %438 = math.rsqrt %437 : vector<16x1xf32>
    %439 = vector.broadcast %438 : vector<16x1xf32> to vector<16x32xf32>
    %440 = arith.mulf %435, %439 : vector<16x32xf32>
    %441 = vector.broadcast %420 : vector<1x32xf32> to vector<16x32xf32>
    %442 = arith.mulf %440, %441 : vector<16x32xf32>
    %443 = vector.broadcast %422 : vector<1x32xf32> to vector<16x32xf32>
    %444 = arith.addf %442, %443 : vector<16x32xf32>
    %c1_344 = arith.constant 1 : index
    %c0_345 = arith.constant 0 : index
    %c0_346 = arith.constant 0 : index
    %445 = vector.load %arg13[%c1_344, %c0_345, %c0_346] : memref<2x32x64xf32, #tpu.memory_space<vmem>>, vector<1x32x64xf32>
    %446 = vector.shape_cast %445 : vector<1x32x64xf32> to vector<32x64xf32>
    %cst_347 = arith.constant dense<0.000000e+00> : vector<16x64xf32>
    %447 = tpu.matmul %444, %446, %cst_347 {dimension_numbers = #tpu.dot_dimension_numbers<[1], [0], [0], [1], [0, 0, 1, 1], [], []>} : vector<16x32xf32>, vector<32x64xf32>, vector<16x64xf32> -> vector<16x64xf32>
    %c1_348 = arith.constant 1 : index
    %c0_349 = arith.constant 0 : index
    %c0_350 = arith.constant 0 : index
    %448 = vector.load %arg14[%c1_348, %c0_349, %c0_350] : memref<2x1x64xf32, #tpu.memory_space<vmem>>, vector<1x1x64xf32>
    %449 = vector.shape_cast %448 : vector<1x1x64xf32> to vector<1x64xf32>
    %450 = vector.broadcast %449 : vector<1x64xf32> to vector<16x64xf32>
    %451 = arith.addf %447, %450 : vector<16x64xf32>
    %cst_351 = arith.constant 0.000000e+00 : f32
    %452 = vector.broadcast %cst_351 : f32 to vector<16x64xf32>
    %453 = arith.maximumf %451, %452 : vector<16x64xf32>
    %c1_352 = arith.constant 1 : index
    %c0_353 = arith.constant 0 : index
    %c0_354 = arith.constant 0 : index
    %454 = vector.load %arg15[%c1_352, %c0_353, %c0_354] : memref<2x64x32xf32, #tpu.memory_space<vmem>>, vector<1x64x32xf32>
    %455 = vector.shape_cast %454 : vector<1x64x32xf32> to vector<64x32xf32>
    %cst_355 = arith.constant dense<0.000000e+00> : vector<16x32xf32>
    %456 = tpu.matmul %453, %455, %cst_355 {dimension_numbers = #tpu.dot_dimension_numbers<[1], [0], [0], [1], [0, 0, 1, 1], [], []>} : vector<16x64xf32>, vector<64x32xf32>, vector<16x32xf32> -> vector<16x32xf32>
    %c1_356 = arith.constant 1 : index
    %c0_357 = arith.constant 0 : index
    %c0_358 = arith.constant 0 : index
    %457 = vector.load %arg16[%c1_356, %c0_357, %c0_358] : memref<2x1x32xf32, #tpu.memory_space<vmem>>, vector<1x1x32xf32>
    %458 = vector.shape_cast %457 : vector<1x1x32xf32> to vector<1x32xf32>
    %459 = vector.broadcast %458 : vector<1x32xf32> to vector<16x32xf32>
    %460 = arith.addf %456, %459 : vector<16x32xf32>
    %461 = arith.addf %444, %460 : vector<16x32xf32>
    %c1_359 = arith.constant 1 : index
    %c0_360 = arith.constant 0 : index
    %c0_361 = arith.constant 0 : index
    %462 = vector.load %arg17[%c1_359, %c0_360, %c0_361] : memref<2x1x32xf32, #tpu.memory_space<vmem>>, vector<1x1x32xf32>
    %463 = vector.shape_cast %462 : vector<1x1x32xf32> to vector<1x32xf32>
    %c1_362 = arith.constant 1 : index
    %c0_363 = arith.constant 0 : index
    %c0_364 = arith.constant 0 : index
    %464 = vector.load %arg18[%c1_362, %c0_363, %c0_364] : memref<2x1x32xf32, #tpu.memory_space<vmem>>, vector<1x1x32xf32>
    %465 = vector.shape_cast %464 : vector<1x1x32xf32> to vector<1x32xf32>
    %cst_365 = arith.constant dense<0.000000e+00> : vector<16xf32>
    %466 = vector.multi_reduction <add>, %461, %cst_365 [1] : vector<16x32xf32> to vector<16xf32>
    %467 = vector.shape_cast %466 : vector<16xf32> to vector<16x1xf32>
    %cst_366 = arith.constant 3.200000e+01 : f32
    %468 = vector.broadcast %cst_366 : f32 to vector<16x1xf32>
    %469 = arith.divf %467, %468 : vector<16x1xf32>
    %470 = vector.broadcast %469 : vector<16x1xf32> to vector<16x32xf32>
    %471 = arith.subf %461, %470 : vector<16x32xf32>
    %472 = arith.mulf %471, %471 : vector<16x32xf32>
    %cst_367 = arith.constant dense<0.000000e+00> : vector<16xf32>
    %473 = vector.multi_reduction <add>, %472, %cst_367 [1] : vector<16x32xf32> to vector<16xf32>
    %474 = vector.shape_cast %473 : vector<16xf32> to vector<16x1xf32>
    %cst_368 = arith.constant 3.200000e+01 : f32
    %475 = vector.broadcast %cst_368 : f32 to vector<16x1xf32>
    %476 = arith.divf %474, %475 : vector<16x1xf32>
    %477 = vector.broadcast %469 : vector<16x1xf32> to vector<16x32xf32>
    %478 = arith.subf %461, %477 : vector<16x32xf32>
    %cst_369 = arith.constant 9.99999974E-6 : f32
    %479 = vector.broadcast %cst_369 : f32 to vector<16x1xf32>
    %480 = arith.addf %476, %479 : vector<16x1xf32>
    %481 = math.rsqrt %480 : vector<16x1xf32>
    %482 = vector.broadcast %481 : vector<16x1xf32> to vector<16x32xf32>
    %483 = arith.mulf %478, %482 : vector<16x32xf32>
    %484 = vector.broadcast %463 : vector<1x32xf32> to vector<16x32xf32>
    %485 = arith.mulf %483, %484 : vector<16x32xf32>
    %486 = vector.broadcast %465 : vector<1x32xf32> to vector<16x32xf32>
    %487 = arith.addf %485, %486 : vector<16x32xf32>
    %c0_370 = arith.constant 0 : index
    %c0_371 = arith.constant 0 : index
    %488 = vector.load %arg19[%c0_370, %c0_371] : memref<32x128xf32, #tpu.memory_space<vmem>>, vector<32x128xf32>
    %cst_372 = arith.constant dense<0.000000e+00> : vector<16x128xf32>
    %489 = tpu.matmul %487, %488, %cst_372 {dimension_numbers = #tpu.dot_dimension_numbers<[1], [0], [0], [1], [0, 0, 1, 1], [], []>} : vector<16x32xf32>, vector<32x128xf32>, vector<16x128xf32> -> vector<16x128xf32>
    %c0_373 = arith.constant 0 : index
    %c0_374 = arith.constant 0 : index
    %490 = vector.load %arg20[%c0_373, %c0_374] : memref<1x128xf32, #tpu.memory_space<vmem>>, vector<1x128xf32>
    %491 = vector.broadcast %490 : vector<1x128xf32> to vector<16x128xf32>
    %492 = arith.addf %489, %491 : vector<16x128xf32>
    %cst_375 = arith.constant dense<0xFF800000> : vector<16xf32>
    %493 = vector.multi_reduction <maximumf>, %492, %cst_375 [1] : vector<16x128xf32> to vector<16xf32>
    %494 = vector.shape_cast %493 : vector<16xf32> to vector<16x1xf32>
    %495 = vector.broadcast %494 : vector<16x1xf32> to vector<16x128xf32>
    %496 = arith.subf %492, %495 : vector<16x128xf32>
    %497 = math.exp %496 : vector<16x128xf32>
    %cst_376 = arith.constant dense<0.000000e+00> : vector<16xf32>
    %498 = vector.multi_reduction <add>, %497, %cst_376 [1] : vector<16x128xf32> to vector<16xf32>
    %499 = vector.shape_cast %498 : vector<16xf32> to vector<16x1xf32>
    %500 = math.log %499 : vector<16x1xf32>
    %501 = vector.broadcast %500 : vector<16x1xf32> to vector<16x128xf32>
    %502 = arith.subf %496, %501 : vector<16x128xf32>
    %c0_377 = arith.constant 0 : index
    %c0_378 = arith.constant 0 : index
    %503 = vector.load %arg21[%c0_377, %c0_378] : memref<16x128xf32, #tpu.memory_space<vmem>>, vector<16x128xf32>
    tpu.vector_store %arg21[%c0_377, %c0_378], %502 {strides = array<i32>} : memref<16x128xf32, #tpu.memory_space<vmem>>, vector<16x128xf32>,
    return
  }
  func.func @transform_0(%arg0: i32) -> (i32, i32) {
    %c0_i32 = arith.constant 0 : i32
    %c0_i32_0 = arith.constant 0 : i32
    %c0_i32_1 = arith.constant 0 : i32
    return %c0_i32, %c0_i32_0 : i32, i32
  }
  func.func @transform_1(%arg0: i32) -> (i32, i32, i32) {
    %c0_i32 = arith.constant 0 : i32
    %c0_i32_0 = arith.constant 0 : i32
    %c0_i32_1 = arith.constant 0 : i32
    %c0_i32_2 = arith.constant 0 : i32
    return %c0_i32, %c0_i32_0, %c0_i32_1 : i32, i32, i32
  }
  func.func @transform_2(%arg0: i32) -> (i32, i32, i32, i32) {
    %c0_i32 = arith.constant 0 : i32
    %c0_i32_0 = arith.constant 0 : i32
    %c0_i32_1 = arith.constant 0 : i32
    %c0_i32_2 = arith.constant 0 : i32
    %c0_i32_3 = arith.constant 0 : i32
    return %c0_i32, %c0_i32_0, %c0_i32_1, %c0_i32_2 : i32, i32, i32, i32
  }
  func.func @transform_3(%arg0: i32) -> (i32, i32, i32, i32) {
    %c0_i32 = arith.constant 0 : i32
    %c0_i32_0 = arith.constant 0 : i32
    %c0_i32_1 = arith.constant 0 : i32
    %c0_i32_2 = arith.constant 0 : i32
    %c0_i32_3 = arith.constant 0 : i32
    return %c0_i32, %c0_i32_0, %c0_i32_1, %c0_i32_2 : i32, i32, i32, i32
  }
  func.func @transform_4(%arg0: i32) -> (i32, i32, i32, i32) {
    %c0_i32 = arith.constant 0 : i32
    %c0_i32_0 = arith.constant 0 : i32
    %c0_i32_1 = arith.constant 0 : i32
    %c0_i32_2 = arith.constant 0 : i32
    %c0_i32_3 = arith.constant 0 : i32
    return %c0_i32, %c0_i32_0, %c0_i32_1, %c0_i32_2 : i32, i32, i32, i32
  }
  func.func @transform_5(%arg0: i32) -> (i32, i32, i32, i32) {
    %c0_i32 = arith.constant 0 : i32
    %c0_i32_0 = arith.constant 0 : i32
    %c0_i32_1 = arith.constant 0 : i32
    %c0_i32_2 = arith.constant 0 : i32
    %c0_i32_3 = arith.constant 0 : i32
    return %c0_i32, %c0_i32_0, %c0_i32_1, %c0_i32_2 : i32, i32, i32, i32
  }
  func.func @transform_6(%arg0: i32) -> (i32, i32, i32, i32) {
    %c0_i32 = arith.constant 0 : i32
    %c0_i32_0 = arith.constant 0 : i32
    %c0_i32_1 = arith.constant 0 : i32
    %c0_i32_2 = arith.constant 0 : i32
    %c0_i32_3 = arith.constant 0 : i32
    return %c0_i32, %c0_i32_0, %c0_i32_1, %c0_i32_2 : i32, i32, i32, i32
  }
  func.func @transform_7(%arg0: i32) -> (i32, i32, i32, i32) {
    %c0_i32 = arith.constant 0 : i32
    %c0_i32_0 = arith.constant 0 : i32
    %c0_i32_1 = arith.constant 0 : i32
    %c0_i32_2 = arith.constant 0 : i32
    %c0_i32_3 = arith.constant 0 : i32
    return %c0_i32, %c0_i32_0, %c0_i32_1, %c0_i32_2 : i32, i32, i32, i32
  }
  func.func @transform_8(%arg0: i32) -> (i32, i32, i32, i32) {
    %c0_i32 = arith.constant 0 : i32
    %c0_i32_0 = arith.constant 0 : i32
    %c0_i32_1 = arith.constant 0 : i32
    %c0_i32_2 = arith.constant 0 : i32
    %c0_i32_3 = arith.constant 0 : i32
    return %c0_i32, %c0_i32_0, %c0_i32_1, %c0_i32_2 : i32, i32, i32, i32
  }
  func.func @transform_9(%arg0: i32) -> (i32, i32, i32) {
    %c0_i32 = arith.constant 0 : i32
    %c0_i32_0 = arith.constant 0 : i32
    %c0_i32_1 = arith.constant 0 : i32
    %c0_i32_2 = arith.constant 0 : i32
    return %c0_i32, %c0_i32_0, %c0_i32_1 : i32, i32, i32
  }
  func.func @transform_10(%arg0: i32) -> (i32, i32, i32) {
    %c0_i32 = arith.constant 0 : i32
    %c0_i32_0 = arith.constant 0 : i32
    %c0_i32_1 = arith.constant 0 : i32
    %c0_i32_2 = arith.constant 0 : i32
    return %c0_i32, %c0_i32_0, %c0_i32_1 : i32, i32, i32
  }
  func.func @transform_11(%arg0: i32) -> (i32, i32, i32) {
    %c0_i32 = arith.constant 0 : i32
    %c0_i32_0 = arith.constant 0 : i32
    %c0_i32_1 = arith.constant 0 : i32
    %c0_i32_2 = arith.constant 0 : i32
    return %c0_i32, %c0_i32_0, %c0_i32_1 : i32, i32, i32
  }
  func.func @transform_12(%arg0: i32) -> (i32, i32, i32) {
    %c0_i32 = arith.constant 0 : i32
    %c0_i32_0 = arith.constant 0 : i32
    %c0_i32_1 = arith.constant 0 : i32
    %c0_i32_2 = arith.constant 0 : i32
    return %c0_i32, %c0_i32_0, %c0_i32_1 : i32, i32, i32
  }
  func.func @transform_13(%arg0: i32) -> (i32, i32, i32) {
    %c0_i32 = arith.constant 0 : i32
    %c0_i32_0 = arith.constant 0 : i32
    %c0_i32_1 = arith.constant 0 : i32
    %c0_i32_2 = arith.constant 0 : i32
    return %c0_i32, %c0_i32_0, %c0_i32_1 : i32, i32, i32
  }
  func.func @transform_14(%arg0: i32) -> (i32, i32, i32) {
    %c0_i32 = arith.constant 0 : i32
    %c0_i32_0 = arith.constant 0 : i32
    %c0_i32_1 = arith.constant 0 : i32
    %c0_i32_2 = arith.constant 0 : i32
    return %c0_i32, %c0_i32_0, %c0_i32_1 : i32, i32, i32
  }
  func.func @transform_15(%arg0: i32) -> (i32, i32, i32) {
    %c0_i32 = arith.constant 0 : i32
    %c0_i32_0 = arith.constant 0 : i32
    %c0_i32_1 = arith.constant 0 : i32
    %c0_i32_2 = arith.constant 0 : i32
    return %c0_i32, %c0_i32_0, %c0_i32_1 : i32, i32, i32
  }
  func.func @transform_16(%arg0: i32) -> (i32, i32, i32) {
    %c0_i32 = arith.constant 0 : i32
    %c0_i32_0 = arith.constant 0 : i32
    %c0_i32_1 = arith.constant 0 : i32
    %c0_i32_2 = arith.constant 0 : i32
    return %c0_i32, %c0_i32_0, %c0_i32_1 : i32, i32, i32
  }
  func.func @transform_17(%arg0: i32) -> (i32, i32, i32) {
    %c0_i32 = arith.constant 0 : i32
    %c0_i32_0 = arith.constant 0 : i32
    %c0_i32_1 = arith.constant 0 : i32
    %c0_i32_2 = arith.constant 0 : i32
    return %c0_i32, %c0_i32_0, %c0_i32_1 : i32, i32, i32
  }
  func.func @transform_18(%arg0: i32) -> (i32, i32) {
    %c0_i32 = arith.constant 0 : i32
    %c0_i32_0 = arith.constant 0 : i32
    %c0_i32_1 = arith.constant 0 : i32
    return %c0_i32, %c0_i32_0 : i32, i32
  }
  func.func @transform_19(%arg0: i32) -> (i32, i32) {
    %c0_i32 = arith.constant 0 : i32
    %c0_i32_0 = arith.constant 0 : i32
    %c0_i32_1 = arith.constant 0 : i32
    return %c0_i32, %c0_i32_0 : i32, i32
  }
  func.func @transform_20(%arg0: i32) -> (i32, i32) {
    %c0_i32 = arith.constant 0 : i32
    %c0_i32_0 = arith.constant 0 : i32
    %c0_i32_1 = arith.constant 0 : i32
    return %c0_i32, %c0_i32_0 : i32, i32
  }
}

</mosaic_0001>

<bundles_post_ra>
// kernel: full_transformer_forward.1
= control target key start
LH: loop header
LB: loop body
LE: loop exit
PB: predicated region body
PF: predicated region fallthrough
CT: control target
= control target key end

     0   :  { %vm77_vm0 = vcmask 261120   ;;  %vm169_vm1 = vcmask 64512   ;;  %vm1196_vm9 = vcmask 523264   ;;  %s3903_s4 = inlined_call_operand.vmem [shape: f32[2,4,32,8], index: 4, kind: input, shape index: {}]   ;;  %s3904_s2 = inlined_call_operand.vmem [shape: f32[2,4,32,8], index: 2, kind: input, shape index: {}]   ;;  %s3905_s0 = inlined_call_operand.vmem [shape: f32[16,32], index: 0, kind: input, shape index: {}]   ;;  %s3906_s5 = inlined_call_operand.vmem [shape: f32[2,4,1,8], index: 5, kind: input, shape index: {}]   ;;  %s3907_s3 = inlined_call_operand.vmem [shape: f32[2,4,1,8], index: 3, kind: input, shape index: {}]   ;;  %s3908_s6 = inlined_call_operand.vmem [shape: f32[2,4,32,8], index: 6, kind: input, shape index: {}]   ;;  %s3909_s1 = inlined_call_operand.vmem [shape: f32[2,8,8], index: 1, kind: input, shape index: {}]   ;;  %s3910_s7 = inlined_call_operand.vmem [shape: f32[2,4,1,8], index: 7, kind: input, shape index: {}]   ;;  %s3911_s8 = inlined_call_operand.vmem [shape: f32[2,4,8,32], index: 8, kind: input, shape index: {}]   ;;  %s3912_s9 = inlined_call_operand.vmem [shape: f32[2,1,32], index: 9, kind: input, shape index: {}]   ;;  %s3913_s10 = inlined_call_operand.vmem [shape: f32[2,1,32], index: 10, kind: input, shape index: {}]   ;;  %s3914_s11 = inlined_call_operand.vmem [shape: f32[2,1,32], index: 11, kind: input, shape index: {}]   ;;  %s3915_s13 = inlined_call_operand.vmem [shape: f32[2,1,64], index: 13, kind: input, shape index: {}]   ;;  %s3916_s12 = inlined_call_operand.vmem [shape: f32[2,32,64], index: 12, kind: input, shape index: {}]   ;;  %s3917_s14 = inlined_call_operand.vmem [shape: f32[2,64,32], index: 14, kind: input, shape index: {}]   ;;  %s3918_s15 = inlined_call_operand.vmem [shape: f32[2,1,32], index: 15, kind: input, shape index: {}]   ;;  %s3919_s16 = inlined_call_operand.vmem [shape: f32[2,1,32], index: 16, kind: input, shape index: {}]   ;;  %s3920_s17 = inlined_call_operand.vmem [shape: f32[2,1,32], index: 17, kind: input, shape index: {}]   ;;  %s3921_s19 = inlined_call_operand.vmem [shape: f32[1,128], index: 19, kind: input, shape index: {}]   ;;  %s3922_s18 = inlined_call_operand.vmem [shape: f32[32,128], index: 18, kind: input, shape index: {}]   ;;  %s3923_s20 = inlined_call_operand.vmem [shape: f32[16,128], index: 20, kind: output, shape index: {}]  }
   0x1   :  { %3929 = sst [smem:[#allocation2_spill]] %s3903_s4  ;;  %v141_v20 = vld [vmem:[%s3908_s6 + $0x18] sm:$0xff]  ;;  %v140_v21 = vld [vmem:[%s3908_s6 + $0x10] sm:$0xff]  ;;  %v139_v22 = vld [vmem:[%s3908_s6 + $0x8] sm:$0xff] }
   0x2   :  { %3930 = sst [smem:[#allocation3_spill]] %s3904_s2  ;;  %v138_v23 = vld [vmem:[%s3908_s6] sm:$0xff]  ;;  %v3141_v28 = vld [vmem:[%s3909_s1 + $0x8] sm:$0xff] }
   0x3   :  { %3931 = sst [smem:[#allocation4_spill]] %s3905_s0  ;;  %v3134_v24 = vld [vmem:[%s3909_s1] sm:$0xff] }
   0x4   :  { %3932 = sst [smem:[#allocation5_spill]] %s3906_s5  ;;  %v2828_v50 = vld [vmem:[%s3910_s7] ss:$0 sm:$0xff] }
   0x5   :  { %3933 = sst [smem:[#allocation6_spill]] %s3907_s3 }
   0x6   :  { %s3934_s23 = sld [smem:[#allocation2_spill]] }
   0x7   :  { %s3935_s26 = sld [smem:[#allocation3_spill]] }
   0x8   :  { %s3936_s0 = sld [smem:[#allocation4_spill]] }
   0x9   :  { %s3937_s30 = sld [smem:[#allocation5_spill]] }
   0xa   :  { %s3938_s2 = sld [smem:[#allocation6_spill]] }
   0xc   :  { %v110_v0 = vld [vmem:[%s3934_s23 + $0x18] sm:$0xff]  ;;  %v109_v1 = vld [vmem:[%s3934_s23 + $0x10] sm:$0xff]  ;;  %v108_v4 = vld [vmem:[%s3934_s23 + $0x8] sm:$0xff] }
   0xd   :  { %v72_v2 = vld [vmem:[%s3935_s26 + $0x18] sm:$0xff]  ;;  %127 = vmatpush.msra.mxu1 %v110_v0  ;;  %v71_v3 = vld [vmem:[%s3935_s26 + $0x10] sm:$0xff]  ;;  %v70_v5 = vld [vmem:[%s3935_s26 + $0x8] sm:$0xff] }
   0xe   :  { %96 = vmatpush.msra.mxu0 %v72_v2  ;;  %2821 = vmatpush.msra.mxu2 %v72_v2  ;;  %v107_v6 = vld [vmem:[%s3934_s23] sm:$0xff]  ;;  %v3095_v9 = vld [vmem:[%s3936_s0 + $0x8] sm:$0xff]  ;;  %v2590_v32 = vld [vmem:[%s3934_s23 + $0x38] sm:$0xff] }
   0xf   :  { %128 = vmatpush.msra.mxu1 %v109_v1  ;;  %v3087_v7 = vld [vmem:[%s3936_s0] sm:$0xff]  ;;  %v2589_v33 = vld [vmem:[%s3934_s23 + $0x30] sm:$0xff]  ;;  %v2588_v34 = vld [vmem:[%s3934_s23 + $0x28] sm:$0xff] }
  0x10   :  { %97 = vmatpush.msra.mxu0 %v71_v3  ;;  %v69_v8 = vld [vmem:[%s3935_s26] sm:$0xff]  ;;  %2822 = vmatpush.msra.mxu2 %v71_v3  ;;  %v2583_v36 = vld [vmem:[%s3935_s26 + $0x38] sm:$0xff]  ;;  %v2582_v37 = vld [vmem:[%s3935_s26 + $0x30] sm:$0xff] }
  0x11   :  { %129 = vmatpush.msra.mxu1 %v108_v4  ;;  %v2827_v10 = vld [vmem:[%s3937_s30] ss:$0 sm:$0xff]  ;;  %v2581_v38 = vld [vmem:[%s3935_s26 + $0x28] sm:$0xff]  ;;  %v2829_v55 = vld [vmem:[%s3937_s30 + $0x1] ss:$0 sm:$0xff] }
  0x12   :  { %98 = vmatpush.msra.mxu0 %v70_v5  ;;  %2823 = vmatpush.msra.mxu2 %v70_v5  ;;  %v2826_v11 = vld [vmem:[%s3938_s2] ss:$0 sm:$0xff]  ;;  %v2830_v3 = vld [vmem:[%s3938_s2 + $0x1] ss:$0 sm:$0xff] }
  0x13   :  { %130 = vmatpush.msra.mxu1 %v107_v6  ;;  %v2587_v35 = vld [vmem:[%s3934_s23 + $0x20] sm:$0xff] }
  0x14   :  { %99 = vmatpush.msra.mxu0 %v69_v8  ;;  %2570 = vmatmul.msk.f32.vlgmr.msra.gmra.mxu1 %vm77_vm0, %v3087_v7  ;;  %v2580_v39 = vld [vmem:[%s3935_s26 + $0x20] sm:$0xff] }
  0x15   :  { %2568 = vmatmul.msk.f32.vlgmr.msra.gmra.mxu0 %vm77_vm0, %v3087_v7  ;;  %2824 = vmatpush.msra.mxu2 %v69_v8  ;;  %v290_v8 = vld [vmem:[%s3911_s8] sm:$0xff] }
  0x16   :  { %2569 = vmatmul.msk.f32.vlgmr.msra.gmra.mxu2 %vm77_vm0, %v3095_v9  ;;  %313 = vmatpush.msrb.mxu1 %v2583_v36 }
  0x17   :  { %158 = vmatpush.msrb.mxu2 %v141_v20  ;;  %v2595_v20 = vld [vmem:[%s3908_s6 + $0x28] sm:$0xff] }
  0x18   :  { %314 = vmatpush.msrb.mxu1 %v2582_v37 }
  0x19   :  { %159 = vmatpush.msrb.mxu2 %v140_v21  ;;  %v2594_v21 = vld [vmem:[%s3908_s6 + $0x20] sm:$0xff] }
  0x1a   :  { %315 = vmatpush.msrb.mxu1 %v2581_v38 }
  0x1b   :  { %160 = vmatpush.msrb.mxu2 %v139_v22 }
  0x1c   :  { %2571 = vmatmul.msk.f32.gmra.mxu1 %vm77_vm0, %v3095_v9 }
  0x1d   :  { %161 = vmatpush.msrb.mxu2 %v138_v23  ;;  %316 = vmatpush.msrb.mxu1 %v2580_v39  ;;  %v2622_v39 = vld [vmem:[%s3934_s23 + $0x58] sm:$0xff] }
  0x1e   :  { %2572 = vmatmul.msk.f32.vlgmr.msrb.gmra.mxu2 %vm77_vm0, %v3087_v7 }
  0x1f   :  { %346 = vmatpush.msra.mxu2 %v2590_v32 }
  0x21   :  { %347 = vmatpush.msra.mxu2 %v2589_v33 }
  0x23   :  { %348 = vmatpush.msra.mxu2 %v2588_v34  ;;  %v2831_v34 = vld [vmem:[%s3910_s7 + $0x1] ss:$0 sm:$0xff] }
  0x24   :  { %2585 = vmatmul.msk.f32.vlgmr.msrb.gmra.mxu1 %vm77_vm0, %v3087_v7 }
  0x25   :  { %349 = vmatpush.msra.mxu2 %v2587_v35 }
  0x26   :  { %2573 = vmatmul.msk.f32.gmra.mxu2 %vm77_vm0, %v3095_v9 }
  0x2c   :  { %2586 = vmatmul.msk.f32.gmra.mxu1 %vm77_vm0, %v3095_v9 }
  0x2e   :  { %2592 = vmatmul.msk.f32.vlgmr.msra.gmra.mxu2 %vm77_vm0, %v3087_v7 }
  0x36   :  { %2593 = vmatmul.msk.f32.gmra.mxu2 %vm77_vm0, %v3095_v9 }
  0x91   :  { %v132_v12 = vpop.f32.mrf.mxu1 }
  0x92   :  { %v101_v13 = vpop.f32.mrf.mxu0  ;;  %v133_v14 = vadd.f32 %v2827_v10, %v132_v12 }
  0x93   :  { %v102_v15 = vadd.f32 %v2826_v11, %v101_v13 }
  0x94   :  { %2574 = vmatpush.xpose.msk.msra.mxu3 %vm169_vm1, %v133_v14 }
  0x97   :  { %2575 = vmatmul.msk.f32.vlgmr.msra.gmra.mxu3 %vm169_vm1, %v102_v15 }
  0x99   :  { %v135_v16 = vpop.f32.mrf.mxu1  ;;  %v104_v17 = vpop.f32.mrf.mxu2 }
  0x9a   :  { %v136_v18 = vadd.f32 %v2827_v10, %v135_v16  ;;  %v105_v19 = vadd.f32 %v2826_v11, %v104_v17  ;;  %v2597_v10 = vld [vmem:[%s3908_s6 + $0x38] sm:$0xff]  ;;  %v2596_v11 = vld [vmem:[%s3908_s6 + $0x30] sm:$0xff] }
  0x9c   :  { %2576 = vmatpush.xpose.msk.msrb.mxu3 %vm169_vm1, %v136_v18 }
  0x9f   :  { %2577 = vmatmul.msk.f32.vlgmr.msrb.gmra.mxu3 %vm169_vm1, %v105_v19 }
  0xa1   :  { %v163_v51 = vpop.f32.mrf.mxu2  ;;  %v318_v2 = vpop.f32.mrf.mxu1 }
  0xa2   :  { %v164_v52 = vadd.f32 %v2828_v50, %v163_v51  ;;  %v319_v4 = vadd.f32 %v2830_v3, %v318_v2  ;;  %v2629_v2 = vld [vmem:[%s3908_s6 + $0x58] sm:$0xff] }
  0xa4   :  { %262 = vmatpush.msra.mxu3 %v164_v52 }
  0xa6   :  { %379 = vmatpush.msrb.mxu3 %v2597_v10 }
  0xa8   :  { %380 = vmatpush.msrb.mxu3 %v2596_v11 }
  0xa9   :  { %v166_v53 = vpop.f32.mrf.mxu2  ;;  %v321_v5 = vpop.f32.mrf.mxu1 }
  0xaa   :  { %v167_v54 = vadd.f32 %v2828_v50, %v166_v53  ;;  %v322_v6 = vadd.f32 %v2830_v3, %v321_v5  ;;  %381 = vmatpush.msrb.mxu3 %v2595_v20  ;;  %v2607_v53 = vld [vmem:[%s3911_s8 + $0x8] sm:$0xff]  ;;  %v2628_v3 = vld [vmem:[%s3908_s6 + $0x50] sm:$0xff] }
  0xab   :  { %v2627_v5 = vld [vmem:[%s3908_s6 + $0x48] sm:$0xff] }
  0xac   :  { %285 = vmatpush.msrb.mxu0 %v167_v54  ;;  %382 = vmatpush.msrb.mxu3 %v2594_v21 }
  0xb1   :  { %v351_v56 = vpop.f32.mrf.mxu2 }
  0xb2   :  { %v352_v57 = vadd.f32 %v2829_v55, %v351_v56  ;;  %v2832_v56 = vld [vmem:[%s3937_s30 + $0x2] ss:$0 sm:$0xff] }
  0xb4   :  { %2601 = vmatpush.xpose.msk.msra.mxu0 %vm169_vm1, %v352_v57  ;;  %v2833_v57 = vld [vmem:[%s3938_s2 + $0x2] ss:$0 sm:$0xff] }
  0xb9   :  { %v354_v62 = vpop.f32.mrf.mxu2 }
  0xba   :  { %v355_v0 = vadd.f32 %v2829_v55, %v354_v62 }
 0x11a   :  { %v193_v25 = vpop.f32.mrf.mxu3 }
 0x11b   :  { %v194_v26 = vadd.f32 %v193_v25, %v3134_v24 }
 0x11d   :  { %v222_v27 = vsel %vm169_vm1, %v194_v26, -inf }
 0x11e   :  { %223 = vmax.xlane.f32.xlu1 %v222_v27 }
 0x122   :  { %v219_v29 = vpop.f32.mrf.mxu3 }
 0x123   :  { %v220_v30 = vadd.f32 %v219_v29, %v3141_v28 }
 0x125   :  { %v225_v31 = vsel %vm169_vm1, %v220_v30, -inf }
 0x126   :  { %226 = vmax.xlane.f32.xlu0 %v225_v31 }
 0x191   :  { %v224_v40 = vpop.xlane.xlu1 %223 }
 0x192   :  { %v228_v41 = vsub.f32 %v194_v26, %v224_v40  ;;  %v2621_v40 = vld [vmem:[%s3934_s23 + $0x50] sm:$0xff] }
 0x194   :  { %v230_v42 = vmul.f32 1.442695, %v228_v41  ;;  %v2620_v41 = vld [vmem:[%s3934_s23 + $0x48] sm:$0xff] }
 0x196   :  { %2865 = vpow2.f32 %v230_v42  ;;  %v2619_v42 = vld [vmem:[%s3934_s23 + $0x40] sm:$0xff] }
 0x199   :  { %v227_v43 = vpop.xlane.xlu0 %226 }
 0x19a   :  { %v229_v44 = vsub.f32 %v220_v30, %v227_v43  ;;  %v2615_v43 = vld [vmem:[%s3935_s26 + $0x58] sm:$0xff] }
 0x19c   :  { %v2866_v45 = vpop.eup %2865  ;;  %v232_v46 = vmul.f32 1.442695, %v229_v44  ;;  %v2614_v44 = vld [vmem:[%s3935_s26 + $0x50] sm:$0xff] }
 0x19d   :  { %v234_v47 = vsel %vm169_vm1, %v2866_v45, 0.0 }
 0x19e   :  { %2867 = vpow2.f32 %v232_v46  ;;  %235 = vadd.xlane.f32.xlu1 %v234_v47  ;;  %v2612_v46 = vld [vmem:[%s3935_s26 + $0x40] sm:$0xff] }
 0x1a4   :  { %v2868_v48 = vpop.eup %2867 }
 0x1a5   :  { %v237_v49 = vsel %vm169_vm1, %v2868_v48, 0.0 }
 0x1a6   :  { %238 = vadd.xlane.f32.xlu0 %v237_v49 }
 0x211   :  { %v236_v58 = vpop.xlane.xlu1 %235 }
 0x212   :  { %2869 = vrcp.f32 %v236_v58 }
 0x218   :  { %v2870_v59 = vpop.eup %2869 }
 0x219   :  { %v242_v60 = vmul.f32 %v2870_v59, %v2866_v45  ;;  %v239_v61 = vpop.xlane.xlu0 %238  ;;  %v2613_v45 = vld [vmem:[%s3935_s26 + $0x48] sm:$0xff] }
 0x21a   :  { %2871 = vrcp.f32 %v239_v61 }
 0x21b   :  { %2578 = vmatmul.msk.f32.vlgmr.msra.gmra.mxu3 %vm169_vm1, %v242_v60 }
 0x21c   :  { %533 = vmatpush.msra.mxu3 %v2607_v53 }
 0x220   :  { %v2872_v63 = vpop.eup %2871 }
 0x221   :  { %v243_v1 = vmul.f32 %v2872_v63, %v2868_v48 }
 0x223   :  { %2579 = vmatmul.msk.f32.vlgmr.msrb.gmra.mxu0 %vm169_vm1, %v243_v1  ;;  %2599 = vmatmul.msk.f32.vlgmr.msrb.gmra.mxu3 %vm77_vm0, %v3087_v7 }
 0x224   :  { %2603 = vmatpush.xpose.msk.msrb.mxu0 %vm169_vm1, %v355_v0  ;;  %658 = vmatpush.msrb.mxu3 %v2629_v2 }
 0x226   :  { %659 = vmatpush.msrb.mxu3 %v2628_v3 }
 0x228   :  { %660 = vmatpush.msrb.mxu3 %v2627_v5 }
 0x22b   :  { %2602 = vmatmul.msk.f32.vlgmr.msra.gmra.mxu0 %vm169_vm1, %v319_v4  ;;  %2600 = vmatmul.msk.f32.gmra.mxu3 %vm77_vm0, %v3095_v9 }
 0x22c   :  { %562 = vmatpush.msra.mxu0 %v290_v8 }
 0x233   :  { %2604 = vmatmul.msk.f32.vlgmr.msrb.gmra.mxu0 %vm169_vm1, %v322_v6  ;;  %v2626_v6 = vld [vmem:[%s3908_s6 + $0x40] sm:$0xff] }
 0x234   :  { %661 = vmatpush.msrb.mxu3 %v2626_v6 }
 0x29e   :  { %v264_v12 = vpop.f32.mrf.mxu3 }
 0x29f   :  { %2610 = vmatmul.msk.f32.vlgmr.msra.gmra.mxu0 %vm169_vm1, %v264_v12 }
 0x2a0   :  { %v287_v13 = vpop.f32.mrf.mxu0 }
 0x2a6   :  { %v384_v35 = vpop.f32.mrf.mxu3 }
 0x2a7   :  { %2611 = vmatmul.msk.f32.gmra.mxu0 %vm169_vm1, %v287_v13  ;;  %v385_v36 = vadd.f32 %v2831_v34, %v384_v35  ;;  %v2645_v35 = vld [vmem:[%s3935_s26 + $0x78] sm:$0xff] }
 0x2a8   :  { %v413_v14 = vpop.f32.mrf.mxu0 }
 0x2a9   :  { %v414_v18 = vadd.f32 %v413_v14, %v3134_v24  ;;  %482 = vmatpush.msra.mxu1 %v385_v36  ;;  %v2650_v36 = vld [vmem:[%s3934_s23 + $0x68] sm:$0xff] }
 0x2ab   :  { %v442_v19 = vsel %vm169_vm1, %v414_v18, -inf  ;;  %592 = vmatpush.msrb.mxu1 %v2615_v43 }
 0x2ad   :  { %593 = vmatpush.msrb.mxu1 %v2614_v44 }
 0x2ae   :  { %v387_v37 = vpop.f32.mrf.mxu3 }
 0x2af   :  { %v388_v38 = vadd.f32 %v2831_v34, %v387_v37  ;;  %594 = vmatpush.msrb.mxu1 %v2613_v45  ;;  %v2651_v34 = vld [vmem:[%s3934_s23 + $0x70] sm:$0xff] }
 0x2b0   :  { %v439_v15 = vpop.f32.mrf.mxu0  ;;  %v2644_v37 = vld [vmem:[%s3935_s26 + $0x70] sm:$0xff] }
 0x2b1   :  { %v440_v16 = vadd.f32 %v439_v15, %v3141_v28  ;;  %505 = vmatpush.msrb.mxu2 %v388_v38  ;;  %595 = vmatpush.msrb.mxu1 %v2612_v46  ;;  %v2649_v38 = vld [vmem:[%s3934_s23 + $0x60] sm:$0xff] }
 0x2b3   :  { %v445_v17 = vsel %vm169_vm1, %v440_v16, -inf  ;;  %625 = vmatpush.msra.mxu2 %v2622_v39 }
 0x2b4   :  { %446 = vmax.xlane.f32.xlu2 %v445_v17 }
 0x2b5   :  { %626 = vmatpush.msra.mxu2 %v2621_v40  ;;  %v2643_v40 = vld [vmem:[%s3935_s26 + $0x68] sm:$0xff] }
 0x2b7   :  { %627 = vmatpush.msra.mxu2 %v2620_v41 }
 0x2b9   :  { %628 = vmatpush.msra.mxu2 %v2619_v42  ;;  %v2642_v42 = vld [vmem:[%s3935_s26 + $0x60] sm:$0xff] }
 0x2bc   :  { %443 = vmax.xlane.f32.xlu2 %v442_v19 }
 0x31c   :  { %v3279_v4 = vpop.f32.mrf.mxu0 }
 0x324   :  { %v3289_v8 = vpop.f32.mrf.mxu0 }
 0x327   :  { %v447_v22 = vpop.xlane.xlu2 %446 }
 0x328   :  { %v449_v23 = vsub.f32 %v440_v16, %v447_v22 }
 0x32a   :  { %v452_v25 = vmul.f32 1.442695, %v449_v23 }
 0x32c   :  { %2873 = vpow2.f32 %v452_v25 }
 0x32f   :  { %v444_v26 = vpop.xlane.xlu2 %443 }
 0x330   :  { %v448_v27 = vsub.f32 %v414_v18, %v444_v26 }
 0x332   :  { %v2874_v29 = vpop.eup %2873  ;;  %v450_v30 = vmul.f32 1.442695, %v448_v27 }
 0x333   :  { %v457_v31 = vsel %vm169_vm1, %v2874_v29, 0.0 }
 0x334   :  { %2875 = vpow2.f32 %v450_v30  ;;  %458 = vadd.xlane.f32.xlu0 %v457_v31  ;;  %v2834_v30 = vld [vmem:[%s3910_s7 + $0x2] ss:$0 sm:$0xff] }
 0x33a   :  { %v2876_v32 = vpop.eup %2875 }
 0x33b   :  { %v454_v33 = vsel %vm169_vm1, %v2876_v32, 0.0 }
 0x33c   :  { %455 = vadd.xlane.f32.xlu1 %v454_v33  ;;  %v2652_v33 = vld [vmem:[%s3934_s23 + $0x78] sm:$0xff] }
 0x3a7   :  { %v459_v47 = vpop.xlane.xlu0 %458 }
 0x3a8   :  { %2877 = vrcp.f32 %v459_v47 }
 0x3ae   :  { %v2878_v48 = vpop.eup %2877 }
 0x3af   :  { %v463_v49 = vmul.f32 %v2878_v48, %v2874_v29  ;;  %v456_v50 = vpop.xlane.xlu1 %455 }
 0x3b0   :  { %2879 = vrcp.f32 %v456_v50  ;;  %v2835_v50 = vld [vmem:[%s3937_s30 + $0x3] ss:$0 sm:$0xff] }
 0x3b1   :  { %2606 = vmatmul.msk.f32.vlgmr.msrb.gmra.mxu2 %vm169_vm1, %v463_v49  ;;  %v2639_v49 = vld [vmem:[%s3911_s8 + $0x10] sm:$0xff] }
 0x3b6   :  { %v2880_v51 = vpop.eup %2879 }
 0x3b7   :  { %v462_v52 = vmul.f32 %v2880_v51, %v2876_v32 }
 0x3b9   :  { %2605 = vmatmul.msk.f32.vlgmr.msra.gmra.mxu1 %vm169_vm1, %v462_v52  ;;  %2624 = vmatmul.msk.f32.vlgmr.msra.gmra.mxu2 %vm77_vm0, %v3087_v7 }
 0x3c1   :  { %2625 = vmatmul.msk.f32.gmra.mxu2 %vm77_vm0, %v3095_v9  ;;  %2617 = vmatmul.msk.f32.vlgmr.msrb.gmra.mxu1 %vm77_vm0, %v3087_v7 }
 0x3c9   :  { %2618 = vmatmul.msk.f32.gmra.mxu1 %vm77_vm0, %v3095_v9 }
 0x434   :  { %v507_v54 = vpop.f32.mrf.mxu2 }
 0x436   :  { %v484_v55 = vpop.f32.mrf.mxu1 }
 0x437   :  { %2608 = vmatmul.msk.f32.vlgmr.msra.gmra.mxu3 %vm169_vm1, %v484_v55 }
 0x438   :  { %877 = vmatpush.msra.mxu3 %v2652_v33 }
 0x43a   :  { %878 = vmatpush.msra.mxu3 %v2651_v34 }
 0x43c   :  { %v630_v58 = vpop.f32.mrf.mxu2  ;;  %879 = vmatpush.msra.mxu3 %v2650_v36 }
 0x43d   :  { %v631_v59 = vadd.f32 %v2832_v56, %v630_v58  ;;  %v2836_v58 = vld [vmem:[%s3938_s2 + $0x3] ss:$0 sm:$0xff] }
 0x43e   :  { %v597_v60 = vpop.f32.mrf.mxu1  ;;  %880 = vmatpush.msra.mxu3 %v2649_v38 }
 0x43f   :  { %2609 = vmatmul.msk.f32.gmra.mxu3 %vm169_vm1, %v507_v54  ;;  %v598_v61 = vadd.f32 %v2833_v57, %v597_v60  ;;  %2633 = vmatpush.xpose.msk.msrb.mxu0 %vm169_vm1, %v631_v59 }
 0x442   :  { %2634 = vmatmul.msk.f32.vlgmr.msrb.gmra.mxu0 %vm169_vm1, %v598_v61 }
 0x444   :  { %v633_v62 = vpop.f32.mrf.mxu2 }
 0x445   :  { %v634_v63 = vadd.f32 %v2832_v56, %v633_v62  ;;  %v2659_v62 = vld [vmem:[%s3908_s6 + $0x78] sm:$0xff] }
 0x446   :  { %v600_v0 = vpop.f32.mrf.mxu1 }
 0x447   :  { %v601_v1 = vadd.f32 %v2833_v57, %v600_v0  ;;  %2635 = vmatpush.xpose.msk.msra.mxu1 %vm169_vm1, %v634_v63  ;;  %2631 = vmatmul.msk.f32.vlgmr.msrb.gmra.mxu3 %vm77_vm0, %v3087_v7 }
 0x44a   :  { %2636 = vmatmul.msk.f32.vlgmr.msra.gmra.mxu1 %vm169_vm1, %v601_v1 }
 0x44b   :  { %812 = vmatpush.msrb.mxu1 %v2639_v49 }
 0x44f   :  { %2632 = vmatmul.msk.f32.gmra.mxu3 %vm77_vm0, %v3095_v9 }
 0x457   :  { %2654 = vmatmul.msk.f32.vlgmr.msra.gmra.mxu3 %vm77_vm0, %v3087_v7 }
 0x45f   :  { %2655 = vmatmul.msk.f32.gmra.mxu3 %vm77_vm0, %v3095_v9 }
 0x4ba   :  { %v535_v27 = vpop.f32.mrf.mxu3 }
 0x4bb   :  { %v565_v63 = vadd.f32 %v3279_v4, %v535_v27  ;;  %v2658_v4 = vld [vmem:[%s3908_s6 + $0x70] sm:$0xff] }
 0x4bf   :  { %v692_v10 = vpop.f32.mrf.mxu0 }
 0x4c0   :  { %v693_v11 = vadd.f32 %v692_v10, %v3134_v24 }
 0x4c2   :  { %v721_v12 = vsel %vm169_vm1, %v693_v11, -inf  ;;  %v3299_v29 = vpop.f32.mrf.mxu3 }
 0x4c3   :  { %722 = vmax.xlane.f32.xlu2 %v721_v12  ;;  %v568_v2 = vadd.f32 %v3289_v8, %v3299_v29  ;;  %v2657_v8 = vld [vmem:[%s3908_s6 + $0x68] sm:$0xff] }
 0x4c7   :  { %v718_v13 = vpop.f32.mrf.mxu1 }
 0x4c8   :  { %v719_v14 = vadd.f32 %v718_v13, %v3141_v28 }
 0x4ca   :  { %v724_v15 = vsel %vm169_vm1, %v719_v14, -inf  ;;  %v663_v31 = vpop.f32.mrf.mxu3 }
 0x4cb   :  { %725 = vmax.xlane.f32.xlu0 %v724_v15  ;;  %v664_v32 = vadd.f32 %v2834_v30, %v663_v31 }
 0x4cd   :  { %761 = vmatpush.msrb.mxu2 %v664_v32 }
 0x4cf   :  { %844 = vmatpush.msra.mxu2 %v2645_v35 }
 0x4d1   :  { %845 = vmatpush.msra.mxu2 %v2644_v37  ;;  %v2669_v37 = vld [vmem:[%s3911_s8 + $0x18] sm:$0xff] }
 0x4d2   :  { %v666_v39 = vpop.f32.mrf.mxu3 }
 0x4d3   :  { %v667_v41 = vadd.f32 %v2834_v30, %v666_v39  ;;  %846 = vmatpush.msra.mxu2 %v2643_v40 }
 0x4d5   :  { %784 = vmatpush.msra.mxu0 %v667_v41  ;;  %847 = vmatpush.msra.mxu2 %v2642_v42  ;;  %v2838_v42 = vld [vmem:[%s3912_s9] ss:$0 sm:$0xff] }
 0x4d7   :  { %910 = vmatpush.msrb.mxu0 %v2659_v62 }
 0x4d9   :  { %911 = vmatpush.msrb.mxu0 %v2658_v4  ;;  %v1189_v4 = vld [vmem:[%s3917_s14 + $0x28] sm:$0xff] }
 0x4da   :  { %v882_v51 = vpop.f32.mrf.mxu3 }
 0x4db   :  { %v883_v52 = vadd.f32 %v2835_v50, %v882_v51  ;;  %912 = vmatpush.msrb.mxu0 %v2657_v8  ;;  %v2957_v51 = vmov 32.0  }
 0x4dd   :  { %2663 = vmatpush.xpose.msk.msra.mxu1 %vm169_vm1, %v883_v52 }
 0x4e2   :  { %v885_v53 = vpop.f32.mrf.mxu3 }
 0x4e3   :  { %v886_v54 = vadd.f32 %v2835_v50, %v885_v53 }
 0x536   :  { %v723_v16 = vpop.xlane.xlu2 %722 }
 0x537   :  { %v727_v17 = vsub.f32 %v693_v11, %v723_v16 }
 0x539   :  { %v729_v18 = vmul.f32 1.442695, %v727_v17 }
 0x53b   :  { %2881 = vpow2.f32 %v729_v18 }
 0x53e   :  { %v726_v19 = vpop.xlane.xlu0 %725 }
 0x53f   :  { %v728_v20 = vsub.f32 %v719_v14, %v726_v19 }
 0x541   :  { %v2882_v21 = vpop.eup %2881  ;;  %v731_v22 = vmul.f32 1.442695, %v728_v20 }
 0x542   :  { %v733_v23 = vsel %vm169_vm1, %v2882_v21, 0.0 }
 0x543   :  { %2883 = vpow2.f32 %v731_v22  ;;  %734 = vadd.xlane.f32.xlu1 %v733_v23 }
 0x549   :  { %v2884_v25 = vpop.eup %2883 }
 0x54a   :  { %v736_v26 = vsel %vm169_vm1, %v2884_v25, 0.0 }
 0x54b   :  { %737 = vadd.xlane.f32.xlu2 %v736_v26 }
 0x5b6   :  { %v735_v43 = vpop.xlane.xlu1 %734 }
 0x5b7   :  { %2885 = vrcp.f32 %v735_v43 }
 0x5bd   :  { %v2886_v44 = vpop.eup %2885 }
 0x5be   :  { %v741_v45 = vmul.f32 %v2886_v44, %v2882_v21  ;;  %v738_v46 = vpop.xlane.xlu2 %737 }
 0x5bf   :  { %2887 = vrcp.f32 %v738_v46 }
 0x5c0   :  { %2637 = vmatmul.msk.f32.vlgmr.msrb.gmra.mxu2 %vm169_vm1, %v741_v45 }
 0x5c1   :  { %2665 = vmatpush.xpose.msk.msrb.mxu2 %vm169_vm1, %v886_v54 }
 0x5c5   :  { %v2888_v47 = vpop.eup %2887 }
 0x5c6   :  { %v742_v48 = vmul.f32 %v2888_v47, %v2884_v25  ;;  %v2837_v25 = vld [vmem:[%s3910_s7 + $0x3] ss:$0 sm:$0xff] }
 0x5c8   :  { %2638 = vmatmul.msk.f32.vlgmr.msra.gmra.mxu0 %vm169_vm1, %v742_v48  ;;  %2647 = vmatmul.msk.f32.vlgmr.msra.gmra.mxu2 %vm77_vm0, %v3087_v7 }
 0x5d0   :  { %2648 = vmatmul.msk.f32.gmra.mxu2 %vm77_vm0, %v3095_v9 }
 0x643   :  { %v763_v55 = vpop.f32.mrf.mxu2 }
 0x644   :  { %2640 = vmatmul.msk.f32.vlgmr.msrb.gmra.mxu1 %vm169_vm1, %v763_v55 }
 0x645   :  { %v786_v56 = vpop.f32.mrf.mxu0  ;;  %1064 = vmatpush.msrb.mxu1 %v2669_v37 }
 0x64b   :  { %v849_v57 = vpop.f32.mrf.mxu2 }
 0x64c   :  { %2641 = vmatmul.msk.f32.gmra.mxu1 %vm169_vm1, %v786_v56  ;;  %v850_v59 = vadd.f32 %v2836_v58, %v849_v57 }
 0x653   :  { %v852_v60 = vpop.f32.mrf.mxu2 }
 0x654   :  { %v853_v61 = vadd.f32 %v2836_v58, %v852_v60  ;;  %2664 = vmatmul.msk.f32.vlgmr.msra.gmra.mxu1 %vm169_vm1, %v850_v59 }
 0x656   :  { %2666 = vmatmul.msk.f32.vlgmr.msrb.gmra.mxu2 %vm169_vm1, %v853_v61 }
 0x6c1   :  { %v814_v0 = vpop.f32.mrf.mxu1 }
 0x6c2   :  { %v820_v1 = vadd.f32 %v814_v0, %v565_v63 }
 0x6c9   :  { %v817_v3 = vpop.f32.mrf.mxu1 }
 0x6ca   :  { %v3359_v5 = vadd.f32 %v817_v3, %v568_v2  ;;  %v1148_v2 = vld [vmem:[%s3916_s12 + $0x18] sm:$0xff]  ;;  %v1147_v3 = vld [vmem:[%s3916_s12 + $0x10] sm:$0xff] }
 0x6cb   :  { %1171 = vmatpush.msra.mxu2 %v1148_v2 }
 0x6cd   :  { %1172 = vmatpush.msra.mxu2 %v1147_v3 }
 0x6d1   :  { %v944_v6 = vpop.f32.mrf.mxu1 }
 0x6d2   :  { %v945_v10 = vadd.f32 %v944_v6, %v3134_v24  ;;  %v2656_v24 = vld [vmem:[%s3908_s6 + $0x60] sm:$0xff] }
 0x6d3   :  { %913 = vmatpush.msrb.mxu0 %v2656_v24  ;;  %v1145_v6 = vld [vmem:[%s3916_s12] sm:$0xff] }
 0x6d4   :  { %v973_v11 = vsel %vm169_vm1, %v945_v10, -inf  ;;  %2661 = vmatmul.msk.f32.vlgmr.msrb.gmra.mxu0 %vm77_vm0, %v3087_v7 }
 0x6d5   :  { %974 = vmax.xlane.f32.xlu0 %v973_v11 }
 0x6d9   :  { %v970_v12 = vpop.f32.mrf.mxu2 }
 0x6da   :  { %v971_v13 = vadd.f32 %v970_v12, %v3141_v28 }
 0x6dc   :  { %v976_v14 = vsel %vm169_vm1, %v971_v13, -inf  ;;  %2662 = vmatmul.msk.f32.gmra.mxu0 %vm77_vm0, %v3095_v9 }
 0x6dd   :  { %977 = vmax.xlane.f32.xlu1 %v976_v14  ;;  %v1190_v14 = vld [vmem:[%s3917_s14 + $0x30] sm:$0xff] }
 0x748   :  { %v975_v28 = vpop.xlane.xlu0 %974 }
 0x749   :  { %v979_v15 = vsub.f32 %v945_v10, %v975_v28  ;;  %v1188_v28 = vld [vmem:[%s3917_s14 + $0x20] sm:$0xff] }
 0x74b   :  { %v981_v16 = vmul.f32 1.442695, %v979_v15 }
 0x74d   :  { %2889 = vpow2.f32 %v981_v16 }
 0x750   :  { %v978_v17 = vpop.xlane.xlu1 %977 }
 0x751   :  { %v980_v18 = vsub.f32 %v971_v13, %v978_v17  ;;  %v915_v26 = vpop.f32.mrf.mxu0  ;;  %v1191_v13 = vld [vmem:[%s3917_s14 + $0x38] sm:$0xff] }
 0x752   :  { %v916_v27 = vadd.f32 %v2837_v25, %v915_v26  ;;  %v1187_v17 = vld [vmem:[%s3917_s14 + $0x18] sm:$0xff]  ;;  %v2839_v26 = vld [vmem:[%s3913_s10] ss:$0 sm:$0xff] }
 0x753   :  { %v2890_v19 = vpop.eup %2889  ;;  %v983_v20 = vmul.f32 1.442695, %v980_v18 }
 0x754   :  { %v985_v21 = vsel %vm169_vm1, %v2890_v19, 0.0  ;;  %1013 = vmatpush.msrb.mxu3 %v916_v27 }
 0x755   :  { %2891 = vpow2.f32 %v983_v20  ;;  %986 = vadd.xlane.f32.xlu2 %v985_v21 }
 0x756   :  { %1211 = vmatpush.msra.mxu3 %v1191_v13  ;;  %v2685_v13 = vld [vmem:[%s3934_s23 + $0x90] sm:$0xff] }
 0x758   :  { %1212 = vmatpush.msra.mxu3 %v1190_v14  ;;  %v2692_v14 = vld [vmem:[%s3908_s6 + $0x90] sm:$0xff] }
 0x759   :  { %v918_v29 = vpop.f32.mrf.mxu0 }
 0x75a   :  { %v919_v30 = vadd.f32 %v2837_v25, %v918_v29  ;;  %1213 = vmatpush.msra.mxu3 %v1189_v4  ;;  %v2677_v4 = vld [vmem:[%s3935_s26 + $0x88] sm:$0xff] }
 0x75b   :  { %v2892_v22 = vpop.eup %2891 }
 0x75c   :  { %v988_v23 = vsel %vm169_vm1, %v2892_v22, 0.0  ;;  %1036 = vmatpush.msra.mxu0 %v919_v30  ;;  %1214 = vmatpush.msra.mxu3 %v1188_v28  ;;  %v2676_v28 = vld [vmem:[%s3935_s26 + $0x80] sm:$0xff] }
 0x75d   :  { %989 = vadd.xlane.f32.xlu0 %v988_v23 }
 0x75e   :  { %1215 = vmatpush.msra.mxu3 %v1187_v17 }
 0x7c8   :  { %v987_v31 = vpop.xlane.xlu2 %986 }
 0x7c9   :  { %2893 = vrcp.f32 %v987_v31  ;;  %v2840_v31 = vld [vmem:[%s3914_s11] ss:$0 sm:$0xff] }
 0x7cf   :  { %v2894_v32 = vpop.eup %2893 }
 0x7d0   :  { %v993_v33 = vmul.f32 %v2894_v32, %v2890_v19  ;;  %v990_v34 = vpop.xlane.xlu0 %989 }
 0x7d1   :  { %2895 = vrcp.f32 %v990_v34 }
 0x7d2   :  { %2667 = vmatmul.msk.f32.vlgmr.msrb.gmra.mxu3 %vm169_vm1, %v993_v33  ;;  %2897 = vrcp.f32 %v2957_v51  ;;  %v2842_v51 = vld [vmem:[%s3918_s15] ss:$0 sm:$0xff] }
 0x7d7   :  { %v2896_v35 = vpop.eup %2895 }
 0x7d8   :  { %v994_v36 = vmul.f32 %v2896_v35, %v2892_v22  ;;  %v2898_v52 = vpop.eup %2897 }
 0x7d9   :  { %v1091_v53 = vmul.f32 32.0, %v2898_v52  ;;  %vm1095_vm2 = vweird.f32 %v2898_v52 }
 0x7da   :  { %2668 = vmatmul.msk.f32.vlgmr.msra.gmra.mxu0 %vm169_vm1, %v994_v36 }
 0x7db   :  { %v1092_v54 = vsub.f32 1.0, %v1091_v53 }
 0x7dd   :  { %v1093_v55 = vmul.f32 %v2898_v52, %v1092_v54 }
 0x855   :  { %v1015_v38 = vpop.f32.mrf.mxu3 }
 0x856   :  { %2670 = vmatmul.msk.f32.vlgmr.msrb.gmra.mxu1 %vm169_vm1, %v1015_v38 }
 0x857   :  { %v1038_v39 = vpop.f32.mrf.mxu0 }
 0x85e   :  { %2671 = vmatmul.msk.f32.gmra.mxu1 %vm169_vm1, %v1038_v39 }
 0x8d3   :  { %v1066_v40 = vpop.f32.mrf.mxu1 }
 0x8d4   :  { %v1072_v41 = vadd.f32 %v1066_v40, %v820_v1 }
 0x8d6   :  { %v1074_v43 = vadd.f32 %v1072_v41, %v3087_v7  ;;  %v1094_v7 = vadd.f32 %v2898_v52, %v1093_v55  ;;  %v1186_v41 = vld [vmem:[%s3917_s14 + $0x10] sm:$0xff] }
 0x8d7   :  { %1216 = vmatpush.msra.mxu3 %v1186_v41 }
 0x8d8   :  { %v1080_v44 = vadd.f32 %v2838_v42, %v1074_v43  ;;  %v3398_v56 = vsel %vm1095_vm2, %v2898_v52, %v1094_v7  ;;  %v1184_v43 = vld [vmem:[%s3917_s14] sm:$0xff] }
 0x8da   :  { %v1084_v45 = vsel %vm77_vm0, %v1080_v44, 0.0 }
 0x8db   :  { %1085 = vadd.xlane.f32.xlu1 %v1084_v45  ;;  %v1069_v46 = vpop.f32.mrf.mxu1 }
 0x8dc   :  { %v1073_v47 = vadd.f32 %v1069_v46, %v3359_v5  ;;  %v1146_v5 = vld [vmem:[%s3916_s12 + $0x8] sm:$0xff] }
 0x8dd   :  { %1173 = vmatpush.msra.mxu2 %v1146_v5 }
 0x8de   :  { %v1075_v48 = vadd.f32 %v1073_v47, %v3095_v9 }
 0x8df   :  { %1174 = vmatpush.msra.mxu2 %v1145_v6  ;;  %v2679_v6 = vld [vmem:[%s3935_s26 + $0x98] sm:$0xff] }
 0x8e0   :  { %v1081_v49 = vadd.f32 %v2838_v42, %v1075_v48  ;;  %v1185_v42 = vld [vmem:[%s3917_s14 + $0x8] sm:$0xff]  ;;  %1312 = vmatpush.msrb.mxu0 %v2679_v6 }
 0x8e1   :  { %1217 = vmatpush.msra.mxu3 %v1185_v42 }
 0x8e2   :  { %v1087_v50 = vsel %vm77_vm0, %v1081_v49, 0.0 }
 0x8e3   :  { %1088 = vadd.xlane.f32.xlu2 %v1087_v50  ;;  %1218 = vmatpush.msra.mxu3 %v1184_v43 }
 0x94e   :  { %v1086_v57 = vpop.xlane.xlu1 %1085 }
 0x94f   :  { %v1097_v58 = vmul.f32 %v3398_v56, %v1086_v57 }
 0x951   :  { %v1099_v59 = vsub.f32 %v1080_v44, %v1097_v58  ;;  %v2841_v44 = vld [vmem:[%s3915_s13] ss:$0 sm:$0xff] }
 0x953   :  { %v1101_v60 = vmul.f32 %v1099_v59, %v1099_v59 }
 0x955   :  { %v1103_v9 = vsel %vm77_vm0, %v1101_v60, 0.0 }
 0x956   :  { %1104 = vadd.xlane.f32.xlu0 %v1103_v9  ;;  %v1089_v61 = vpop.xlane.xlu2 %1088 }
 0x957   :  { %v1098_v62 = vmul.f32 %v3398_v56, %v1089_v61 }
 0x959   :  { %v1100_v63 = vsub.f32 %v1081_v49, %v1098_v62 }
 0x95b   :  { %v1102_v0 = vmul.f32 %v1100_v63, %v1100_v63 }
 0x95d   :  { %v1106_v1 = vsel %vm77_vm0, %v1102_v0, 0.0 }
 0x95e   :  { %1107 = vadd.xlane.f32.xlu1 %v1106_v1 }
 0x9c9   :  { %v1105_v10 = vpop.xlane.xlu0 %1104 }
 0x9ca   :  { %v1109_v11 = vmul.f32 %v1105_v10, %v3398_v56  ;;  %v2686_v10 = vld [vmem:[%s3934_s23 + $0x98] sm:$0xff] }
 0x9cb   :  { %1345 = vmatpush.msra.mxu1 %v2686_v10  ;;  %v3582_v10 = vld [vmem:[%s3909_s1] sm:$0xff] }
 0x9cc   :  { %v1111_v12 = vadd.f32 1e-05, %v1109_v11  ;;  %v2693_v11 = vld [vmem:[%s3908_s6 + $0x98] sm:$0xff] }
 0x9cd   :  { %1378 = vmatpush.msrb.mxu2 %v2693_v11  ;;  %1346 = vmatpush.msra.mxu1 %v2685_v13 }
 0x9ce   :  { %2899 = vrsqrt.f32 %v1111_v12  ;;  %vm1119_vm4 = vweird.f32 %v1111_v12 }
 0x9cf   :  { %1379 = vmatpush.msrb.mxu2 %v2692_v14  ;;  %v3589_v14 = vld [vmem:[%s3909_s1 + $0x8] sm:$0xff] }
 0x9d1   :  { %v1108_v8 = vpop.xlane.xlu1 %1107 }
 0x9d2   :  { %v1110_v24 = vmul.f32 %v1108_v8, %v3398_v56  ;;  %v2684_v8 = vld [vmem:[%s3934_s23 + $0x88] sm:$0xff] }
 0x9d3   :  { %1347 = vmatpush.msra.mxu1 %v2684_v8 }
 0x9d4   :  { %v2900_v15 = vpop.eup %2899  ;;  %v1112_v16 = vadd.f32 1e-05, %v1110_v24  ;;  %v2691_v24 = vld [vmem:[%s3908_s6 + $0x88] sm:$0xff] }
 0x9d5   :  { %v1114_v18 = vmul.f32 %v2900_v15, %v1111_v12  ;;  %vm1120_vm3 = vweird.f32 %v2900_v15  ;;  %v2678_v12 = vld [vmem:[%s3935_s26 + $0x90] sm:$0xff]  ;;  %1380 = vmatpush.msrb.mxu2 %v2691_v24  ;;  %v2849_v24 = vld [vmem:[%s3937_s30 + $0x5] ss:$0 sm:$0xff] }
 0x9d6   :  { %2901 = vrsqrt.f32 %v1112_v16  ;;  %vm1121_vm5 = vmor %vm1119_vm4, %vm1120_vm3  ;;  %vm1129_vm7 = vweird.f32 %v1112_v16  ;;  %1313 = vmatpush.msrb.mxu0 %v2678_v12 }
 0x9d7   :  { %v1115_v19 = vmul.f32 %v2900_v15, %v1114_v18 }
 0x9d8   :  { %1314 = vmatpush.msrb.mxu0 %v2677_v4 }
 0x9d9   :  { %v1116_v20 = vmul.f32 0.5, %v1115_v19 }
 0x9da   :  { %1315 = vmatpush.msrb.mxu0 %v2676_v28 }
 0x9db   :  { %v1117_v21 = vsub.f32 1.5, %v1116_v20  ;;  %v2707_v20 = vld [vmem:[%s3935_s26 + $0xb8] sm:$0xff] }
 0x9dc   :  { %v2902_v22 = vpop.eup %2901 }
 0x9dd   :  { %v1118_v23 = vmul.f32 %v2900_v15, %v1117_v21  ;;  %v1124_v25 = vmul.f32 %v2902_v22, %v1112_v16  ;;  %vm1130_vm6 = vweird.f32 %v2902_v22  ;;  %v2690_v16 = vld [vmem:[%s3908_s6 + $0x80] sm:$0xff]  ;;  %v2706_v21 = vld [vmem:[%s3935_s26 + $0xb0] sm:$0xff] }
 0x9de   :  { %vm1131_vm8 = vmor %vm1129_vm7, %vm1130_vm6  ;;  %1381 = vmatpush.msrb.mxu2 %v2690_v16 }
 0x9df   :  { %v1122_v27 = vsel %vm1121_vm5, %v2900_v15, %v1118_v23  ;;  %v1125_v29 = vmul.f32 %v2902_v22, %v1124_v25  ;;  %v2683_v15 = vld [vmem:[%s3934_s23 + $0x80] sm:$0xff]  ;;  %v2705_v23 = vld [vmem:[%s3935_s26 + $0xa8] sm:$0xff] }
 0x9e0   :  { %v1133_v30 = vmul.f32 %v1122_v27, %v1099_v59  ;;  %1348 = vmatpush.msra.mxu1 %v2683_v15 }
 0x9e1   :  { %v1126_v32 = vmul.f32 0.5, %v1125_v29 }
 0x9e2   :  { %v1138_v33 = vmul.f32 %v2839_v26, %v1133_v30 }
 0x9e3   :  { %v1127_v34 = vsub.f32 1.5, %v1126_v32 }
 0x9e4   :  { %v1143_v35 = vadd.f32 %v2840_v31, %v1138_v33 }
 0x9e5   :  { %v1128_v36 = vmul.f32 %v2902_v22, %v1127_v34 }
 0x9e6   :  { %2672 = vmatmul.msk.f32.vlgmr.msra.gmra.mxu2 %vm77_vm0, %v1143_v35 }
 0x9e7   :  { %v1132_v37 = vsel %vm1131_vm8, %v2902_v22, %v1128_v36  ;;  %1533 = vmatpush.msra.mxu2 %v2707_v20 }
 0x9e8   :  { %v1134_v38 = vmul.f32 %v1132_v37, %v1100_v63  ;;  %v2843_v37 = vld [vmem:[%s3919_s16] ss:$0 sm:$0xff] }
 0x9e9   :  { %1534 = vmatpush.msra.mxu2 %v2706_v21 }
 0x9ea   :  { %v1139_v39 = vmul.f32 %v2839_v26, %v1134_v38  ;;  %v2704_v26 = vld [vmem:[%s3935_s26 + $0xa0] sm:$0xff] }
 0x9eb   :  { %1535 = vmatpush.msra.mxu2 %v2705_v23 }
 0x9ec   :  { %v1144_v40 = vadd.f32 %v2840_v31, %v1139_v39 }
 0x9ed   :  { %1536 = vmatpush.msra.mxu2 %v2704_v26 }
 0x9ee   :  { %2673 = vmatmul.msk.f32.gmra.mxu2 %vm77_vm0, %v1144_v40 }
 0xa69   :  { %v1176_v45 = vpop.f32.mrf.mxu2 }
 0xa6a   :  { %v1177_v46 = vadd.f32 %v2841_v44, %v1176_v45 }
 0xa6c   :  { %v1182_v47 = vmax.f32 %v1177_v46, 0.0 }
 0xa6e   :  { %2674 = vmatmul.msk.f32.vlgmr.msra.gmra.mxu3 %vm1196_vm9, %v1182_v47 }
 0xa71   :  { %v1179_v48 = vpop.f32.mrf.mxu2 }
 0xa72   :  { %v1180_v49 = vadd.f32 %v2841_v44, %v1179_v48 }
 0xa74   :  { %v1183_v50 = vmax.f32 %v1180_v49, 0.0 }
 0xa76   :  { %2675 = vmatmul.msk.f32.gmra.mxu3 %vm1196_vm9, %v1183_v50 }
 0xaf1   :  { %v1220_v52 = vpop.f32.mrf.mxu3 }
 0xaf2   :  { %v1221_v53 = vadd.f32 %v2842_v51, %v1220_v52  ;;  %v2845_v52 = vld [vmem:[%s3938_s2 + $0x4] ss:$0 sm:$0xff] }
 0xaf4   :  { %v1226_v54 = vadd.f32 %v1221_v53, %v1143_v35 }
 0xaf6   :  { %v1230_v55 = vsel %vm77_vm0, %v1226_v54, 0.0 }
 0xaf7   :  { %1231 = vadd.xlane.f32.xlu2 %v1230_v55 }
 0xaf9   :  { %v1223_v7 = vpop.f32.mrf.mxu3 }
 0xafa   :  { %v1224_v57 = vadd.f32 %v2842_v51, %v1223_v7  ;;  %v2846_v51 = vld [vmem:[%s3937_s30 + $0x4] ss:$0 sm:$0xff] }
 0xafc   :  { %v1227_v58 = vadd.f32 %v1224_v57, %v1144_v40  ;;  %v2844_v40 = vld [vmem:[%s3920_s17] ss:$0 sm:$0xff]  ;;  %v2847_v57 = vld [vmem:[%s3910_s7 + $0x4] ss:$0 sm:$0xff] }
 0xafe   :  { %v1233_v59 = vsel %vm77_vm0, %v1227_v58, 0.0 }
 0xaff   :  { %1234 = vadd.xlane.f32.xlu0 %v1233_v59 }
 0xb6a   :  { %v1232_v60 = vpop.xlane.xlu2 %1231 }
 0xb6b   :  { %v1236_v9 = vmul.f32 %v1232_v60, %v3398_v56 }
 0xb6d   :  { %v3461_v61 = vsub.f32 %v1226_v54, %v1236_v9 }
 0xb6f   :  { %v1240_v62 = vmul.f32 %v3461_v61, %v3461_v61 }
 0xb71   :  { %v1242_v63 = vsel %vm77_vm0, %v1240_v62, 0.0  ;;  %v2714_v62 = vld [vmem:[%s3934_s23 + $0xb8] sm:$0xff] }
 0xb72   :  { %v1235_v0 = vpop.xlane.xlu0 %1234  ;;  %1243 = vadd.xlane.f32.xlu1 %v1242_v63 }
 0xb73   :  { %v1237_v1 = vmul.f32 %v1235_v0, %v3398_v56  ;;  %v2713_v0 = vld [vmem:[%s3934_s23 + $0xb0] sm:$0xff] }
 0xb75   :  { %v3467_v2 = vsub.f32 %v1227_v58, %v1237_v1  ;;  %v2712_v1 = vld [vmem:[%s3934_s23 + $0xa8] sm:$0xff] }
 0xb77   :  { %v1241_v3 = vmul.f32 %v3467_v2, %v3467_v2 }
 0xb79   :  { %v1245_v5 = vsel %vm77_vm0, %v1241_v3, 0.0 }
 0xb7a   :  { %1246 = vadd.xlane.f32.xlu2 %v1245_v5  ;;  %v2711_v5 = vld [vmem:[%s3934_s23 + $0xa0] sm:$0xff] }
 0xbe5   :  { %v1244_v17 = vpop.xlane.xlu1 %1243 }
 0xbe6   :  { %v1248_v18 = vmul.f32 %v1244_v17, %v3398_v56 }
 0xbe8   :  { %v1250_v19 = vadd.f32 1e-05, %v1248_v18 }
 0xbea   :  { %2903 = vrsqrt.f32 %v1250_v19  ;;  %vm1258_vm11 = vweird.f32 %v1250_v19 }
 0xbed   :  { %v1247_v22 = vpop.xlane.xlu2 %1246 }
 0xbee   :  { %v1249_v25 = vmul.f32 %v1247_v22, %v3398_v56 }
 0xbf0   :  { %v2904_v27 = vpop.eup %2903  ;;  %v1251_v29 = vadd.f32 1e-05, %v1249_v25 }
 0xbf1   :  { %v1253_v30 = vmul.f32 %v2904_v27, %v1250_v19  ;;  %vm1259_vm10 = vweird.f32 %v2904_v27 }
 0xbf2   :  { %2905 = vrsqrt.f32 %v1251_v29  ;;  %vm1260_vm12 = vmor %vm1258_vm11, %vm1259_vm10  ;;  %vm1268_vm14 = vweird.f32 %v1251_v29 }
 0xbf3   :  { %v1254_v31 = vmul.f32 %v2904_v27, %v1253_v30  ;;  %v2719_v30 = vld [vmem:[%s3908_s6 + $0xa8] sm:$0xff] }
 0xbf5   :  { %v1255_v32 = vmul.f32 0.5, %v1254_v31  ;;  %v2718_v31 = vld [vmem:[%s3908_s6 + $0xa0] sm:$0xff] }
 0xbf7   :  { %v1256_v33 = vsub.f32 1.5, %v1255_v32 }
 0xbf8   :  { %v2906_v34 = vpop.eup %2905 }
 0xbf9   :  { %v1257_v35 = vmul.f32 %v2904_v27, %v1256_v33  ;;  %v1263_v36 = vmul.f32 %v2906_v34, %v1251_v29  ;;  %vm1269_vm13 = vweird.f32 %v2906_v34  ;;  %v2720_v29 = vld [vmem:[%s3908_s6 + $0xb0] sm:$0xff] }
 0xbfa   :  { %vm1270_vm15 = vmor %vm1268_vm14, %vm1269_vm13 }
 0xbfb   :  { %v1261_v38 = vsel %vm1260_vm12, %v2904_v27, %v1257_v35  ;;  %v1264_v39 = vmul.f32 %v2906_v34, %v1263_v36  ;;  %v2721_v27 = vld [vmem:[%s3908_s6 + $0xb8] sm:$0xff] }
 0xbfc   :  { %v1272_v41 = vmul.f32 %v1261_v38, %v3461_v61 }
 0xbfd   :  { %v1265_v42 = vmul.f32 0.5, %v1264_v39 }
 0xbfe   :  { %v1277_v43 = vmul.f32 %v2843_v37, %v1272_v41  ;;  %v2848_v41 = vld [vmem:[%s3938_s2 + $0x5] ss:$0 sm:$0xff] }
 0xbff   :  { %v1266_v44 = vsub.f32 1.5, %v1265_v42 }
 0xc00   :  { %v3529_v45 = vadd.f32 %v2844_v40, %v1277_v43 }
 0xc01   :  { %v1267_v46 = vmul.f32 %v2906_v34, %v1266_v44 }
 0xc02   :  { %2681 = vmatmul.msk.f32.vlgmr.msrb.gmra.mxu0 %vm77_vm0, %v3529_v45  ;;  %2688 = vmatmul.msk.f32.vlgmr.msra.gmra.mxu1 %vm77_vm0, %v3529_v45 }
 0xc03   :  { %v1271_v47 = vsel %vm1270_vm15, %v2906_v34, %v1267_v46  ;;  %2695 = vmatmul.msk.f32.vlgmr.msrb.gmra.mxu2 %vm77_vm0, %v3529_v45  ;;  %v2703_v46 = vld [vmem:[%s3911_s8 + $0x20] sm:$0xff] }
 0xc04   :  { %v1273_v48 = vmul.f32 %v1271_v47, %v3467_v2 }
 0xc06   :  { %v1278_v49 = vmul.f32 %v2843_v37, %v1273_v48  ;;  %v2850_v48 = vld [vmem:[%s3910_s7 + $0x5] ss:$0 sm:$0xff] }
 0xc08   :  { %v3538_v50 = vadd.f32 %v2844_v40, %v1278_v49 }
 0xc0a   :  { %2682 = vmatmul.msk.f32.gmra.mxu0 %vm77_vm0, %v3538_v50  ;;  %2689 = vmatmul.msk.f32.gmra.mxu1 %vm77_vm0, %v3538_v50 }
 0xc0b   :  { %2696 = vmatmul.msk.f32.gmra.mxu2 %vm77_vm0, %v3538_v50 }
 0xc13   :  { %2709 = vmatmul.msk.f32.vlgmr.msra.gmra.mxu2 %vm77_vm0, %v3529_v45 }
 0xc1b   :  { %2710 = vmatmul.msk.f32.gmra.mxu2 %vm77_vm0, %v3538_v50 }
 0xc7f   :  { %v1317_v53 = vpop.f32.mrf.mxu0  ;;  %v1350_v54 = vpop.f32.mrf.mxu1 }
 0xc80   :  { %v1351_v55 = vadd.f32 %v2846_v51, %v1350_v54  ;;  %v1318_v7 = vadd.f32 %v2845_v52, %v1317_v53 }
 0xc82   :  { %2697 = vmatpush.xpose.msk.msra.mxu0 %vm169_vm1, %v1351_v55 }
 0xc85   :  { %2698 = vmatmul.msk.f32.vlgmr.msra.gmra.mxu0 %vm169_vm1, %v1318_v7 }
 0xc86   :  { %v1383_v58 = vpop.f32.mrf.mxu2 }
 0xc87   :  { %v1384_v59 = vadd.f32 %v2847_v57, %v1383_v58  ;;  %v1353_v60 = vpop.f32.mrf.mxu1  ;;  %v1320_v9 = vpop.f32.mrf.mxu0 }
 0xc88   :  { %v1354_v61 = vadd.f32 %v2846_v51, %v1353_v60  ;;  %v1321_v63 = vadd.f32 %v2845_v52, %v1320_v9 }
 0xc89   :  { %1481 = vmatpush.msrb.mxu0 %v1384_v59 }
 0xc8a   :  { %2699 = vmatpush.xpose.msk.msrb.mxu3 %vm169_vm1, %v1354_v61 }
 0xc8b   :  { %1599 = vmatpush.msra.mxu0 %v2721_v27  ;;  %v2750_v27 = vld [vmem:[%s3908_s6 + $0xc0] sm:$0xff] }
 0xc8d   :  { %2700 = vmatmul.msk.f32.vlgmr.msrb.gmra.mxu3 %vm169_vm1, %v1321_v63  ;;  %1600 = vmatpush.msra.mxu0 %v2720_v29  ;;  %v2776_v29 = vld [vmem:[%s3934_s23 + $0xf8] sm:$0xff] }
 0xc8e   :  { %1566 = vmatpush.msra.mxu3 %v2714_v62  ;;  %v1386_v2 = vpop.f32.mrf.mxu2 }
 0xc8f   :  { %v1387_v3 = vadd.f32 %v2847_v57, %v1386_v2  ;;  %1601 = vmatpush.msra.mxu0 %v2719_v30 }
 0xc90   :  { %1567 = vmatpush.msra.mxu3 %v2713_v0 }
 0xc91   :  { %1504 = vmatpush.msrb.mxu1 %v1387_v3  ;;  %1602 = vmatpush.msra.mxu0 %v2718_v31  ;;  %v2775_v31 = vld [vmem:[%s3934_s23 + $0xf0] sm:$0xff] }
 0xc92   :  { %1568 = vmatpush.msra.mxu3 %v2712_v1 }
 0xc94   :  { %1569 = vmatpush.msra.mxu3 %v2711_v5 }
 0xc95   :  { %2716 = vmatmul.msk.f32.vlgmr.msra.gmra.mxu3 %vm77_vm0, %v3529_v45 }
 0xc96   :  { %v1538_v40 = vpop.f32.mrf.mxu2 }
 0xc97   :  { %v1539_v42 = vadd.f32 %v2848_v41, %v1538_v40 }
 0xc9d   :  { %2717 = vmatmul.msk.f32.gmra.mxu3 %vm77_vm0, %v3538_v50 }
 0xc9e   :  { %v1541_v43 = vpop.f32.mrf.mxu2 }
 0xc9f   :  { %v1542_v44 = vadd.f32 %v2848_v41, %v1541_v43 }
 0xd02   :  { %v1412_v6 = vpop.f32.mrf.mxu0 }
 0xd03   :  { %v1413_v11 = vadd.f32 %v3582_v10, %v1412_v6 }
 0xd05   :  { %v1441_v12 = vsel %vm169_vm1, %v1413_v11, -inf }
 0xd06   :  { %1442 = vmax.xlane.f32.xlu2 %v1441_v12  ;;  %v2738_v12 = vld [vmem:[%s3935_s26 + $0xd0] sm:$0xff] }
 0xd10   :  { %v1438_v13 = vpop.f32.mrf.mxu3 }
 0xd11   :  { %v1439_v4 = vadd.f32 %v3589_v14, %v1438_v13  ;;  %v2737_v13 = vld [vmem:[%s3935_s26 + $0xc8] sm:$0xff] }
 0xd13   :  { %v1444_v8 = vsel %vm169_vm1, %v1439_v4, -inf }
 0xd14   :  { %1445 = vmax.xlane.f32.xlu0 %v1444_v8  ;;  %v2746_v8 = vld [vmem:[%s3934_s23 + $0xd8] sm:$0xff] }
 0xd18   :  { %v1571_v28 = vpop.f32.mrf.mxu3 }
 0xd19   :  { %v1572_v15 = vadd.f32 %v2849_v24, %v1571_v28  ;;  %v2744_v28 = vld [vmem:[%s3934_s23 + $0xc8] sm:$0xff] }
 0xd1b   :  { %2725 = vmatpush.xpose.msk.msra.mxu1 %vm169_vm1, %v1572_v15  ;;  %v2743_v15 = vld [vmem:[%s3934_s23 + $0xc0] sm:$0xff] }
 0xd20   :  { %v1574_v36 = vpop.f32.mrf.mxu3 }
 0xd21   :  { %v1575_v39 = vadd.f32 %v2849_v24, %v1574_v36  ;;  %v2745_v24 = vld [vmem:[%s3934_s23 + $0xd0] sm:$0xff] }
 0xd79   :  { %v1443_v16 = vpop.xlane.xlu2 %1442 }
 0xd7a   :  { %v1447_v17 = vsub.f32 %v1413_v11, %v1443_v16  ;;  %v2739_v11 = vld [vmem:[%s3935_s26 + $0xd8] sm:$0xff] }
 0xd7c   :  { %v1449_v18 = vmul.f32 1.442695, %v1447_v17 }
 0xd7e   :  { %2907 = vpow2.f32 %v1449_v18 }
 0xd84   :  { %v2908_v19 = vpop.eup %2907 }
 0xd85   :  { %v1453_v20 = vsel %vm169_vm1, %v2908_v19, 0.0 }
 0xd86   :  { %1454 = vadd.xlane.f32.xlu0 %v1453_v20 }
 0xd87   :  { %v1446_v21 = vpop.xlane.xlu0 %1445 }
 0xd88   :  { %v1448_v22 = vsub.f32 %v1439_v4, %v1446_v21  ;;  %v2736_v4 = vld [vmem:[%s3935_s26 + $0xc0] sm:$0xff] }
 0xd8a   :  { %v1451_v23 = vmul.f32 1.442695, %v1448_v22  ;;  %v2731_v22 = vld [vmem:[%s3911_s8 + $0x28] sm:$0xff] }
 0xd8c   :  { %2909 = vpow2.f32 %v1451_v23  ;;  %v2753_v23 = vld [vmem:[%s3908_s6 + $0xd8] sm:$0xff] }
 0xd92   :  { %v2910_v25 = vpop.eup %2909 }
 0xd93   :  { %v1456_v26 = vsel %vm169_vm1, %v2910_v25, 0.0 }
 0xd94   :  { %1457 = vadd.xlane.f32.xlu1 %v1456_v26  ;;  %v2751_v26 = vld [vmem:[%s3908_s6 + $0xc8] sm:$0xff] }
 0xdf9   :  { %v1455_v32 = vpop.xlane.xlu0 %1454 }
 0xdfa   :  { %2911 = vrcp.f32 %v1455_v32  ;;  %v2774_v32 = vld [vmem:[%s3934_s23 + $0xe8] sm:$0xff] }
 0xe00   :  { %v2912_v33 = vpop.eup %2911 }
 0xe01   :  { %v1461_v34 = vmul.f32 %v2912_v33, %v2908_v19  ;;  %v2773_v33 = vld [vmem:[%s3934_s23 + $0xe0] sm:$0xff] }
 0xe03   :  { %2701 = vmatmul.msk.f32.vlgmr.msrb.gmra.mxu0 %vm169_vm1, %v1461_v34 }
 0xe04   :  { %1753 = vmatpush.msrb.mxu0 %v2731_v22 }
 0xe07   :  { %v1458_v35 = vpop.xlane.xlu1 %1457 }
 0xe08   :  { %2913 = vrcp.f32 %v1458_v35  ;;  %v2852_v35 = vld [vmem:[%s3937_s30 + $0x6] ss:$0 sm:$0xff] }
 0xe0b   :  { %2723 = vmatmul.msk.f32.vlgmr.msra.gmra.mxu0 %vm77_vm0, %v3529_v45 }
 0xe0c   :  { %1878 = vmatpush.msra.mxu0 %v2753_v23 }
 0xe0e   :  { %v2914_v37 = vpop.eup %2913 }
 0xe0f   :  { %v1462_v38 = vmul.f32 %v2914_v37, %v2910_v25  ;;  %v2752_v25 = vld [vmem:[%s3908_s6 + $0xd0] sm:$0xff]  ;;  %v2851_v37 = vld [vmem:[%s3938_s2 + $0x6] ss:$0 sm:$0xff] }
 0xe10   :  { %1879 = vmatpush.msra.mxu0 %v2752_v25 }
 0xe11   :  { %2702 = vmatmul.msk.f32.vlgmr.msrb.gmra.mxu1 %vm169_vm1, %v1462_v38 }
 0xe12   :  { %2727 = vmatpush.xpose.msk.msrb.mxu1 %vm169_vm1, %v1575_v39  ;;  %1880 = vmatpush.msra.mxu0 %v2751_v26 }
 0xe13   :  { %2724 = vmatmul.msk.f32.gmra.mxu0 %vm77_vm0, %v3538_v50 }
 0xe14   :  { %1881 = vmatpush.msra.mxu0 %v2750_v27 }
 0xe19   :  { %2726 = vmatmul.msk.f32.vlgmr.msra.gmra.mxu1 %vm169_vm1, %v1539_v42 }
 0xe1a   :  { %1782 = vmatpush.msra.mxu1 %v2703_v46 }
 0xe21   :  { %2728 = vmatmul.msk.f32.vlgmr.msrb.gmra.mxu1 %vm169_vm1, %v1542_v44 }
 0xe80   :  { %v1483_v47 = vpop.f32.mrf.mxu0 }
 0xe81   :  { %2734 = vmatmul.msk.f32.vlgmr.msra.gmra.mxu1 %vm169_vm1, %v1483_v47 }
 0xe88   :  { %v1604_v49 = vpop.f32.mrf.mxu0 }
 0xe89   :  { %v1605_v51 = vadd.f32 %v2850_v48, %v1604_v49 }
 0xe8b   :  { %1702 = vmatpush.msrb.mxu2 %v1605_v51 }
 0xe8d   :  { %1812 = vmatpush.msra.mxu2 %v2739_v11 }
 0xe8e   :  { %v1506_v52 = vpop.f32.mrf.mxu1 }
 0xe8f   :  { %2735 = vmatmul.msk.f32.gmra.mxu1 %vm169_vm1, %v1506_v52  ;;  %1813 = vmatpush.msra.mxu2 %v2738_v12 }
 0xe90   :  { %v1607_v53 = vpop.f32.mrf.mxu0 }
 0xe91   :  { %v1608_v54 = vadd.f32 %v2850_v48, %v1607_v53  ;;  %1814 = vmatpush.msra.mxu2 %v2737_v13  ;;  %v2763_v48 = vld [vmem:[%s3911_s8 + $0x30] sm:$0xff]  ;;  %v2853_v53 = vld [vmem:[%s3910_s7 + $0x6] ss:$0 sm:$0xff] }
 0xe93   :  { %1725 = vmatpush.msrb.mxu3 %v1608_v54  ;;  %1815 = vmatpush.msra.mxu2 %v2736_v4 }
 0xe95   :  { %1845 = vmatpush.msra.mxu3 %v2746_v8 }
 0xe96   :  { %v1633_v55 = vpop.f32.mrf.mxu1 }
 0xe97   :  { %v1634_v7 = vadd.f32 %v3582_v10, %v1633_v55  ;;  %1846 = vmatpush.msra.mxu3 %v2745_v24 }
 0xe99   :  { %v1662_v57 = vsel %vm169_vm1, %v1634_v7, -inf  ;;  %1847 = vmatpush.msra.mxu3 %v2744_v28  ;;  %v2769_v28 = vld [vmem:[%s3935_s26 + $0xf8] sm:$0xff] }
 0xe9a   :  { %1663 = vmax.xlane.f32.xlu2 %v1662_v57 }
 0xe9b   :  { %1848 = vmatpush.msra.mxu3 %v2743_v15  ;;  %v2768_v15 = vld [vmem:[%s3935_s26 + $0xf0] sm:$0xff] }
 0xe9e   :  { %v1659_v58 = vpop.f32.mrf.mxu1 }
 0xe9f   :  { %v1660_v59 = vadd.f32 %v3589_v14, %v1659_v58 }
 0xea1   :  { %v1665_v60 = vsel %vm169_vm1, %v1660_v59, -inf }
 0xea2   :  { %1666 = vmax.xlane.f32.xlu1 %v1665_v60 }
 0xefe   :  { %v3718_v46 = vpop.f32.mrf.mxu1 }
 0xf0c   :  { %v1787_v49 = vpop.f32.mrf.mxu1 }
 0xf0d   :  { %v1664_v9 = vpop.xlane.xlu2 %1663 }
 0xf0e   :  { %v1668_v61 = vsub.f32 %v1634_v7, %v1664_v9  ;;  %v2854_v9 = vld [vmem:[%s3937_s30 + $0x7] ss:$0 sm:$0xff] }
 0xf10   :  { %v1670_v62 = vmul.f32 1.442695, %v1668_v61 }
 0xf12   :  { %2915 = vpow2.f32 %v1670_v62 }
 0xf15   :  { %v1667_v63 = vpop.xlane.xlu1 %1666 }
 0xf16   :  { %v1669_v0 = vsub.f32 %v1660_v59, %v1667_v63 }
 0xf18   :  { %v2916_v1 = vpop.eup %2915  ;;  %v1672_v2 = vmul.f32 1.442695, %v1669_v0 }
 0xf19   :  { %v1674_v3 = vsel %vm169_vm1, %v2916_v1, 0.0 }
 0xf1a   :  { %2917 = vpow2.f32 %v1672_v2  ;;  %1675 = vadd.xlane.f32.xlu1 %v1674_v3 }
 0xf20   :  { %v2918_v5 = vpop.eup %2917 }
 0xf21   :  { %v1677_v6 = vsel %vm169_vm1, %v2918_v5, 0.0 }
 0xf22   :  { %1678 = vadd.xlane.f32.xlu0 %v1677_v6 }
 0xf8d   :  { %v1676_v16 = vpop.xlane.xlu1 %1675 }
 0xf8e   :  { %2919 = vrcp.f32 %v1676_v16  ;;  %v2767_v16 = vld [vmem:[%s3935_s26 + $0xe8] sm:$0xff] }
 0xf94   :  { %v2920_v17 = vpop.eup %2919 }
 0xf95   :  { %v1682_v18 = vmul.f32 %v2920_v17, %v2916_v1  ;;  %v1679_v19 = vpop.xlane.xlu0 %1678  ;;  %v2766_v17 = vld [vmem:[%s3935_s26 + $0xe0] sm:$0xff] }
 0xf96   :  { %2921 = vrcp.f32 %v1679_v19  ;;  %v2782_v19 = vld [vmem:[%s3908_s6 + $0xf0] sm:$0xff] }
 0xf97   :  { %2729 = vmatmul.msk.f32.vlgmr.msrb.gmra.mxu2 %vm169_vm1, %v1682_v18  ;;  %v2783_v18 = vld [vmem:[%s3908_s6 + $0xf8] sm:$0xff] }
 0xf9c   :  { %v2922_v20 = vpop.eup %2921 }
 0xf9d   :  { %v1683_v21 = vmul.f32 %v2922_v20, %v2918_v5  ;;  %v2781_v20 = vld [vmem:[%s3908_s6 + $0xe8] sm:$0xff] }
 0xf9f   :  { %2730 = vmatmul.msk.f32.vlgmr.msrb.gmra.mxu3 %vm169_vm1, %v1683_v21  ;;  %2741 = vmatmul.msk.f32.vlgmr.msra.gmra.mxu2 %vm77_vm0, %v3529_v45  ;;  %v2780_v21 = vld [vmem:[%s3908_s6 + $0xe0] sm:$0xff] }
 0xfa7   :  { %2742 = vmatmul.msk.f32.gmra.mxu2 %vm77_vm0, %v3538_v50  ;;  %2748 = vmatmul.msk.f32.vlgmr.msra.gmra.mxu3 %vm77_vm0, %v3529_v45 }
 0xfaf   :  { %2749 = vmatmul.msk.f32.gmra.mxu3 %vm77_vm0, %v3538_v50 }
0x101a   :  { %v1704_v30 = vpop.f32.mrf.mxu2 }
0x101b   :  { %2732 = vmatmul.msk.f32.vlgmr.msrb.gmra.mxu0 %vm169_vm1, %v1704_v30 }
0x101c   :  { %2097 = vmatpush.msrb.mxu0 %v2776_v29 }
0x101e   :  { %2098 = vmatpush.msrb.mxu0 %v2775_v31 }
0x1020   :  { %2099 = vmatpush.msrb.mxu0 %v2774_v32 }
0x1022   :  { %v1727_v34 = vpop.f32.mrf.mxu3  ;;  %2100 = vmatpush.msrb.mxu0 %v2773_v33  ;;  %v1817_v36 = vpop.f32.mrf.mxu2 }
0x1023   :  { %2733 = vmatmul.msk.f32.gmra.mxu0 %vm169_vm1, %v1727_v34  ;;  %v1818_v40 = vadd.f32 %v2851_v37, %v1817_v36  ;;  %v2856_v36 = vld [vmem:[%s3910_s7 + $0x7] ss:$0 sm:$0xff] }
0x102a   :  { %v1850_v38 = vpop.f32.mrf.mxu3  ;;  %v1820_v42 = vpop.f32.mrf.mxu2 }
0x102b   :  { %v1851_v39 = vadd.f32 %v2852_v35, %v1850_v38  ;;  %2755 = vmatmul.msk.f32.vlgmr.msra.gmra.mxu0 %vm77_vm0, %v3529_v45  ;;  %v1821_v44 = vadd.f32 %v2851_v37, %v1820_v42 }
0x102d   :  { %2757 = vmatpush.xpose.msk.msrb.mxu1 %vm169_vm1, %v1851_v39 }
0x1030   :  { %2758 = vmatmul.msk.f32.vlgmr.msrb.gmra.mxu1 %vm169_vm1, %v1818_v40 }
0x1032   :  { %v1853_v41 = vpop.f32.mrf.mxu3 }
0x1033   :  { %v1854_v43 = vadd.f32 %v2852_v35, %v1853_v41  ;;  %2756 = vmatmul.msk.f32.gmra.mxu0 %vm77_vm0, %v3538_v50  ;;  %v2855_v35 = vld [vmem:[%s3938_s2 + $0x7] ss:$0 sm:$0xff] }
0x1035   :  { %2759 = vmatpush.xpose.msk.msrb.mxu2 %vm169_vm1, %v1854_v43 }
0x1038   :  { %2760 = vmatmul.msk.f32.vlgmr.msrb.gmra.mxu2 %vm169_vm1, %v1821_v44 }
0x1039   :  { %2032 = vmatpush.msra.mxu2 %v2763_v48 }
0x103b   :  { %2778 = vmatmul.msk.f32.vlgmr.msrb.gmra.mxu0 %vm77_vm0, %v3529_v45 }
0x1043   :  { %2779 = vmatmul.msk.f32.gmra.mxu0 %vm77_vm0, %v3538_v50 }
0x1098   :  { %v3720_v47 = vpop.f32.mrf.mxu0 }
0x1099   :  { %v1785_v44 = vadd.f32 %v3718_v46, %v3720_v47 }
0x10a0   :  { %v1758_v51 = vpop.f32.mrf.mxu0 }
0x10a1   :  { %v3725_v52 = vadd.f32 %v1787_v49, %v1758_v51 }
0x10a8   :  { %v1883_v54 = vpop.f32.mrf.mxu0 }
0x10a9   :  { %v1884_v55 = vadd.f32 %v2853_v53, %v1883_v54 }
0x10ab   :  { %1981 = vmatpush.msrb.mxu3 %v1884_v55 }
0x10ad   :  { %v1912_v7 = vpop.f32.mrf.mxu1  ;;  %2064 = vmatpush.msra.mxu3 %v2769_v28 }
0x10ae   :  { %v1913_v57 = vadd.f32 %v3582_v10, %v1912_v7 }
0x10af   :  { %2065 = vmatpush.msra.mxu3 %v2768_v15 }
0x10b0   :  { %v1886_v58 = vpop.f32.mrf.mxu0  ;;  %v1941_v59 = vsel %vm169_vm1, %v1913_v57, -inf }
0x10b1   :  { %v1887_v60 = vadd.f32 %v2853_v53, %v1886_v58  ;;  %1942 = vmax.xlane.f32.xlu2 %v1941_v59  ;;  %2066 = vmatpush.msra.mxu3 %v2767_v16 }
0x10b3   :  { %2004 = vmatpush.msra.mxu1 %v1887_v60  ;;  %2067 = vmatpush.msra.mxu3 %v2766_v17 }
0x10b5   :  { %2130 = vmatpush.msrb.mxu1 %v2783_v18 }
0x10b7   :  { %2131 = vmatpush.msrb.mxu1 %v2782_v19 }
0x10b8   :  { %v2102_v61 = vpop.f32.mrf.mxu0 }
0x10b9   :  { %v2103_v62 = vadd.f32 %v2854_v9, %v2102_v61  ;;  %2132 = vmatpush.msrb.mxu1 %v2781_v20 }
0x10bb   :  { %v1938_v63 = vpop.f32.mrf.mxu2  ;;  %2787 = vmatpush.xpose.msk.msrb.mxu2 %vm169_vm1, %v2103_v62  ;;  %2133 = vmatpush.msrb.mxu1 %v2780_v21 }
0x10bc   :  { %v1939_v0 = vadd.f32 %v3589_v14, %v1938_v63 }
0x10be   :  { %v1944_v1 = vsel %vm169_vm1, %v1939_v0, -inf }
0x10bf   :  { %1945 = vmax.xlane.f32.xlu0 %v1944_v1 }
0x10c0   :  { %v2105_v23 = vpop.f32.mrf.mxu0 }
0x10c1   :  { %v2106_v27 = vadd.f32 %v2854_v9, %v2105_v23 }
0x1124   :  { %v1943_v2 = vpop.xlane.xlu2 %1942 }
0x1125   :  { %v1947_v3 = vsub.f32 %v1913_v57, %v1943_v2 }
0x1127   :  { %v1949_v5 = vmul.f32 1.442695, %v1947_v3 }
0x1129   :  { %2923 = vpow2.f32 %v1949_v5 }
0x112f   :  { %v2924_v6 = vpop.eup %2923 }
0x1130   :  { %v1953_v11 = vsel %vm169_vm1, %v2924_v6, 0.0 }
0x1131   :  { %1954 = vadd.xlane.f32.xlu1 %v1953_v11  ;;  %v2793_v11 = vld [vmem:[%s3911_s8 + $0x38] sm:$0xff] }
0x1132   :  { %v1946_v12 = vpop.xlane.xlu0 %1945 }
0x1133   :  { %v1948_v13 = vsub.f32 %v1939_v0, %v1946_v12 }
0x1135   :  { %v1951_v4 = vmul.f32 1.442695, %v1948_v13 }
0x1137   :  { %2925 = vpow2.f32 %v1951_v4 }
0x113d   :  { %v2926_v8 = vpop.eup %2925 }
0x113e   :  { %v1956_v24 = vsel %vm169_vm1, %v2926_v8, 0.0 }
0x113f   :  { %1957 = vadd.xlane.f32.xlu2 %v1956_v24  ;;  %v2857_v24 = vld [vmem:[%s3912_s9 + $0x1] ss:$0 sm:$0xff] }
0x11a4   :  { %v1955_v22 = vpop.xlane.xlu1 %1954 }
0x11a5   :  { %2927 = vrcp.f32 %v1955_v22 }
0x11ab   :  { %v2928_v25 = vpop.eup %2927 }
0x11ac   :  { %v1961_v26 = vmul.f32 %v2928_v25, %v2924_v6 }
0x11ae   :  { %2761 = vmatmul.msk.f32.vlgmr.msrb.gmra.mxu3 %vm169_vm1, %v1961_v26 }
0x11af   :  { %2789 = vmatpush.xpose.msk.msrb.mxu3 %vm169_vm1, %v2106_v27 }
0x11b2   :  { %v1958_v29 = vpop.xlane.xlu2 %1957 }
0x11b3   :  { %2929 = vrcp.f32 %v1958_v29 }
0x11b6   :  { %2771 = vmatmul.msk.f32.vlgmr.msra.gmra.mxu3 %vm77_vm0, %v3529_v45 }
0x11b9   :  { %v2930_v30 = vpop.eup %2929 }
0x11ba   :  { %v1962_v31 = vmul.f32 %v2930_v30, %v2926_v8 }
0x11bc   :  { %2762 = vmatmul.msk.f32.vlgmr.msra.gmra.mxu1 %vm169_vm1, %v1962_v31 }
0x11be   :  { %2772 = vmatmul.msk.f32.gmra.mxu3 %vm77_vm0, %v3538_v50 }
0x11c4   :  { %2785 = vmatmul.msk.f32.vlgmr.msrb.gmra.mxu1 %vm77_vm0, %v3529_v45 }
0x11cc   :  { %2786 = vmatmul.msk.f32.gmra.mxu1 %vm77_vm0, %v3538_v50 }
0x1231   :  { %v1983_v32 = vpop.f32.mrf.mxu3 }
0x1232   :  { %2764 = vmatmul.msk.f32.vlgmr.msra.gmra.mxu2 %vm169_vm1, %v1983_v32 }
0x1233   :  { %2284 = vmatpush.msra.mxu2 %v2793_v11  ;;  %v2806_v11 = vld [vmem:[%s3917_s14 + $0x40] sm:$0xff] }
0x1239   :  { %v2006_v33 = vpop.f32.mrf.mxu1  ;;  %v2069_v34 = vpop.f32.mrf.mxu3 }
0x123a   :  { %2765 = vmatmul.msk.f32.gmra.mxu2 %vm169_vm1, %v2006_v33  ;;  %v2070_v37 = vadd.f32 %v2855_v35, %v2069_v34  ;;  %v2801_v33 = vld [vmem:[%s3916_s12 + $0x30] sm:$0xff]  ;;  %v2800_v34 = vld [vmem:[%s3916_s12 + $0x28] sm:$0xff] }
0x1241   :  { %v2072_v38 = vpop.f32.mrf.mxu3  ;;  %v2135_v39 = vpop.f32.mrf.mxu1 }
0x1242   :  { %v2073_v40 = vadd.f32 %v2855_v35, %v2072_v38  ;;  %v2136_v41 = vadd.f32 %v2856_v36, %v2135_v39  ;;  %2788 = vmatmul.msk.f32.vlgmr.msrb.gmra.mxu2 %vm169_vm1, %v2070_v37  ;;  %v2799_v35 = vld [vmem:[%s3916_s12 + $0x20] sm:$0xff]  ;;  %v2813_v39 = vld [vmem:[%s3917_s14 + $0x78] sm:$0xff] }
0x1244   :  { %2790 = vmatmul.msk.f32.vlgmr.msrb.gmra.mxu3 %vm169_vm1, %v2073_v40  ;;  %2233 = vmatpush.msra.mxu0 %v2136_v41  ;;  %v2812_v40 = vld [vmem:[%s3917_s14 + $0x70] sm:$0xff]  ;;  %v2811_v41 = vld [vmem:[%s3917_s14 + $0x68] sm:$0xff] }
0x1246   :  { %2430 = vmatpush.msrb.mxu0 %v2813_v39 }
0x1248   :  { %2431 = vmatpush.msrb.mxu0 %v2812_v40 }
0x1249   :  { %v2138_v42 = vpop.f32.mrf.mxu1 }
0x124a   :  { %v2139_v43 = vadd.f32 %v2856_v36, %v2138_v42  ;;  %2432 = vmatpush.msrb.mxu0 %v2811_v41 }
0x124c   :  { %2256 = vmatpush.msra.mxu1 %v2139_v43 }
0x12b5   :  { %v2034_v48 = vpop.f32.mrf.mxu2 }
0x12b6   :  { %v2040_v49 = vadd.f32 %v2034_v48, %v1785_v44  ;;  %v2810_v44 = vld [vmem:[%s3917_s14 + $0x60] sm:$0xff] }
0x12b7   :  { %2433 = vmatpush.msrb.mxu0 %v2810_v44 }
0x12bd   :  { %v2037_v51 = vpop.f32.mrf.mxu2 }
0x12be   :  { %v2041_v53 = vadd.f32 %v2037_v51, %v3725_v52  ;;  %v2809_v51 = vld [vmem:[%s3917_s14 + $0x58] sm:$0xff] }
0x12bf   :  { %2434 = vmatpush.msrb.mxu0 %v2809_v51 }
0x12c5   :  { %v2164_v54 = vpop.f32.mrf.mxu2 }
0x12c6   :  { %v2165_v55 = vadd.f32 %v3582_v10, %v2164_v54 }
0x12c7   :  { %v2190_v7 = vpop.f32.mrf.mxu3 }
0x12c8   :  { %v2191_v57 = vadd.f32 %v3589_v14, %v2190_v7  ;;  %v2193_v58 = vsel %vm169_vm1, %v2165_v55, -inf }
0x12c9   :  { %2194 = vmax.xlane.f32.xlu0 %v2193_v58 }
0x12ca   :  { %v2196_v59 = vsel %vm169_vm1, %v2191_v57, -inf }
0x12cb   :  { %2197 = vmax.xlane.f32.xlu1 %v2196_v59 }
0x133c   :  { %v2195_v60 = vpop.xlane.xlu0 %2194 }
0x133d   :  { %v2199_v9 = vsub.f32 %v2165_v55, %v2195_v60  ;;  %v2858_v60 = vld [vmem:[%s3913_s10 + $0x1] ss:$0 sm:$0xff] }
0x133e   :  { %v2198_v46 = vpop.xlane.xlu1 %2197 }
0x133f   :  { %v2201_v47 = vmul.f32 1.442695, %v2199_v9  ;;  %v2200_v61 = vsub.f32 %v2191_v57, %v2198_v46 }
0x1341   :  { %2931 = vpow2.f32 %v2201_v47  ;;  %v2203_v62 = vmul.f32 1.442695, %v2200_v61  ;;  %v2859_v47 = vld [vmem:[%s3914_s11 + $0x1] ss:$0 sm:$0xff] }
0x1343   :  { %2933 = vpow2.f32 %v2203_v62 }
0x1347   :  { %v2932_v52 = vpop.eup %2931 }
0x1348   :  { %v2205_v10 = vsel %vm169_vm1, %v2932_v52, 0.0 }
0x1349   :  { %v2934_v63 = vpop.eup %2933  ;;  %2206 = vadd.xlane.f32.xlu2 %v2205_v10 }
0x134a   :  { %v2208_v14 = vsel %vm169_vm1, %v2934_v63, 0.0 }
0x134b   :  { %2209 = vadd.xlane.f32.xlu0 %v2208_v14 }
0x13bc   :  { %v2207_v0 = vpop.xlane.xlu2 %2206 }
0x13bd   :  { %2935 = vrcp.f32 %v2207_v0 }
0x13be   :  { %v2210_v1 = vpop.xlane.xlu0 %2209 }
0x13bf   :  { %2937 = vrcp.f32 %v2210_v1 }
0x13c3   :  { %v2936_v2 = vpop.eup %2935 }
0x13c4   :  { %v2213_v3 = vmul.f32 %v2936_v2, %v2932_v52 }
0x13c5   :  { %v2938_v5 = vpop.eup %2937 }
0x13c6   :  { %v2214_v6 = vmul.f32 %v2938_v5, %v2934_v63  ;;  %2791 = vmatmul.msk.f32.vlgmr.msra.gmra.mxu0 %vm169_vm1, %v2213_v3  ;;  %v2808_v5 = vld [vmem:[%s3917_s14 + $0x50] sm:$0xff] }
0x13c7   :  { %2435 = vmatpush.msrb.mxu0 %v2808_v5 }
0x13c8   :  { %2792 = vmatmul.msk.f32.vlgmr.msra.gmra.mxu1 %vm169_vm1, %v2214_v6  ;;  %v2807_v6 = vld [vmem:[%s3917_s14 + $0x48] sm:$0xff] }
0x13c9   :  { %2436 = vmatpush.msrb.mxu0 %v2807_v6 }
0x13cb   :  { %2437 = vmatpush.msrb.mxu0 %v2806_v11 }
0x1443   :  { %v2235_v12 = vpop.f32.mrf.mxu0 }
0x1444   :  { %2794 = vmatmul.msk.f32.vlgmr.msra.gmra.mxu2 %vm169_vm1, %v2235_v12  ;;  %v2860_v12 = vld [vmem:[%s3915_s13 + $0x1] ss:$0 sm:$0xff] }
0x1445   :  { %v2258_v13 = vpop.f32.mrf.mxu1 }
0x144c   :  { %2795 = vmatmul.msk.f32.gmra.mxu2 %vm169_vm1, %v2258_v13 }
0x14c7   :  { %v2286_v4 = vpop.f32.mrf.mxu2 }
0x14c8   :  { %v2292_v8 = vadd.f32 %v2286_v4, %v2040_v49 }
0x14ca   :  { %v2294_v28 = vadd.f32 %v2292_v8, %v3529_v45 }
0x14cc   :  { %v2301_v15 = vadd.f32 %v2857_v24, %v2294_v28 }
0x14ce   :  { %v2307_v16 = vsel %vm77_vm0, %v2301_v15, 0.0 }
0x14cf   :  { %2308 = vadd.xlane.f32.xlu1 %v2307_v16  ;;  %v2289_v17 = vpop.f32.mrf.mxu2  ;;  %v2861_v16 = vld [vmem:[%s3918_s15 + $0x1] ss:$0 sm:$0xff] }
0x14d0   :  { %v2293_v18 = vadd.f32 %v2289_v17, %v2041_v53 }
0x14d2   :  { %v2295_v19 = vadd.f32 %v2293_v18, %v3538_v50  ;;  %v2802_v50 = vld [vmem:[%s3916_s12 + $0x38] sm:$0xff] }
0x14d3   :  { %2389 = vmatpush.msra.mxu3 %v2802_v50 }
0x14d4   :  { %v2302_v20 = vadd.f32 %v2857_v24, %v2295_v19 }
0x14d5   :  { %2390 = vmatpush.msra.mxu3 %v2801_v33 }
0x14d6   :  { %v2310_v21 = vsel %vm77_vm0, %v2302_v20, 0.0 }
0x14d7   :  { %2311 = vadd.xlane.f32.xlu2 %v2310_v21  ;;  %2391 = vmatpush.msra.mxu3 %v2800_v34 }
0x14d9   :  { %2392 = vmatpush.msra.mxu3 %v2799_v35  ;;  %v2508_v35 = vld [vmem:[%s3922_s18 + $0x18] sm:$0xff] }
0x14da   :  { %2531 = vmatpush.msrb.mxu1 %v2508_v35 }
0x1542   :  { %v2309_v22 = vpop.xlane.xlu1 %2308 }
0x1543   :  { %v2313_v23 = vmul.f32 %v2309_v22, %v3398_v56 }
0x1545   :  { %v2315_v25 = vsub.f32 %v2301_v15, %v2313_v23 }
0x1547   :  { %v2317_v26 = vmul.f32 %v2315_v25, %v2315_v25 }
0x1549   :  { %v2319_v27 = vsel %vm77_vm0, %v2317_v26, 0.0 }
0x154a   :  { %2320 = vadd.xlane.f32.xlu0 %v2319_v27  ;;  %v2312_v45 = vpop.xlane.xlu2 %2311 }
0x154b   :  { %v2314_v29 = vmul.f32 %v2312_v45, %v3398_v56 }
0x154d   :  { %v2316_v30 = vsub.f32 %v2302_v20, %v2314_v29 }
0x154f   :  { %v2318_v31 = vmul.f32 %v2316_v30, %v2316_v30 }
0x1551   :  { %v2322_v32 = vsel %vm77_vm0, %v2318_v31, 0.0 }
0x1552   :  { %2323 = vadd.xlane.f32.xlu1 %v2322_v32 }
0x15bd   :  { %v2321_v36 = vpop.xlane.xlu0 %2320 }
0x15be   :  { %v2325_v37 = vmul.f32 %v2321_v36, %v3398_v56  ;;  %v2507_v36 = vld [vmem:[%s3922_s18 + $0x10] sm:$0xff] }
0x15bf   :  { %2532 = vmatpush.msrb.mxu1 %v2507_v36 }
0x15c0   :  { %v2327_v38 = vadd.f32 1e-05, %v2325_v37  ;;  %v2506_v37 = vld [vmem:[%s3922_s18 + $0x8] sm:$0xff] }
0x15c1   :  { %2533 = vmatpush.msrb.mxu1 %v2506_v37 }
0x15c2   :  { %2939 = vrsqrt.f32 %v2327_v38  ;;  %vm2335_vm2 = vweird.f32 %v2327_v38 }
0x15c5   :  { %v2324_v42 = vpop.xlane.xlu1 %2323 }
0x15c6   :  { %v2326_v43 = vmul.f32 %v2324_v42, %v3398_v56 }
0x15c8   :  { %v2940_v48 = vpop.eup %2939  ;;  %v2328_v49 = vadd.f32 1e-05, %v2326_v43 }
0x15c9   :  { %v2330_v53 = vmul.f32 %v2940_v48, %v2327_v38  ;;  %vm2336_vm1 = vweird.f32 %v2940_v48  ;;  %v2505_v38 = vld [vmem:[%s3922_s18] sm:$0xff] }
0x15ca   :  { %2941 = vrsqrt.f32 %v2328_v49  ;;  %vm2337_vm3 = vmor %vm2335_vm2, %vm2336_vm1  ;;  %vm2345_vm5 = vweird.f32 %v2328_v49  ;;  %2534 = vmatpush.msrb.mxu1 %v2505_v38 }
0x15cb   :  { %v2331_v54 = vmul.f32 %v2940_v48, %v2330_v53 }
0x15cd   :  { %v2332_v55 = vmul.f32 0.5, %v2331_v54 }
0x15cf   :  { %v2333_v7 = vsub.f32 1.5, %v2332_v55 }
0x15d0   :  { %v2942_v57 = vpop.eup %2941 }
0x15d1   :  { %v2334_v58 = vmul.f32 %v2940_v48, %v2333_v7  ;;  %v2340_v59 = vmul.f32 %v2942_v57, %v2328_v49  ;;  %vm2346_vm4 = vweird.f32 %v2942_v57 }
0x15d2   :  { %vm2347_vm6 = vmor %vm2345_vm5, %vm2346_vm4 }
0x15d3   :  { %v2338_v9 = vsel %vm2337_vm3, %v2940_v48, %v2334_v58  ;;  %v2341_v46 = vmul.f32 %v2942_v57, %v2340_v59  ;;  %v2862_v58 = vld [vmem:[%s3919_s16 + $0x1] ss:$0 sm:$0xff] }
0x15d4   :  { %v2349_v61 = vmul.f32 %v2338_v9, %v2315_v25 }
0x15d5   :  { %v2342_v62 = vmul.f32 0.5, %v2341_v46 }
0x15d6   :  { %v2354_v52 = vmul.f32 %v2858_v60, %v2349_v61 }
0x15d7   :  { %v2343_v10 = vsub.f32 1.5, %v2342_v62 }
0x15d8   :  { %v2359_v63 = vadd.f32 %v2859_v47, %v2354_v52 }
0x15d9   :  { %v2344_v14 = vmul.f32 %v2942_v57, %v2343_v10 }
0x15da   :  { %2804 = vmatmul.msk.f32.vlgmr.msra.gmra.mxu3 %vm77_vm0, %v2359_v63 }
0x15db   :  { %v2348_v0 = vsel %vm2347_vm6, %v2942_v57, %v2344_v14 }
0x15dc   :  { %v2350_v1 = vmul.f32 %v2348_v0, %v2316_v30 }
0x15de   :  { %v2355_v2 = vmul.f32 %v2858_v60, %v2350_v1  ;;  %v2864_v1 = vld [vmem:[%s3921_s19] ss:$0 sm:$0xff] }
0x15e0   :  { %v2360_v3 = vadd.f32 %v2859_v47, %v2355_v2 }
0x15e2   :  { %2805 = vmatmul.msk.f32.gmra.mxu3 %vm77_vm0, %v2360_v3 }
0x165d   :  { %v2394_v13 = vpop.f32.mrf.mxu3 }
0x165e   :  { %v2395_v4 = vadd.f32 %v2860_v12, %v2394_v13 }
0x1660   :  { %v2400_v8 = vmax.f32 %v2395_v4, 0.0 }
0x1662   :  { %2815 = vmatmul.msk.f32.vlgmr.msrb.gmra.mxu0 %vm1196_vm9, %v2400_v8 }
0x1665   :  { %v2397_v24 = vpop.f32.mrf.mxu3 }
0x1666   :  { %v2398_v28 = vadd.f32 %v2860_v12, %v2397_v24 }
0x1668   :  { %v2401_v15 = vmax.f32 %v2398_v28, 0.0 }
0x166a   :  { %2816 = vmatmul.msk.f32.gmra.mxu0 %vm1196_vm9, %v2401_v15 }
0x16df   :  { %v2439_v17 = vpop.f32.mrf.mxu0 }
0x16e0   :  { %v2440_v18 = vadd.f32 %v2861_v16, %v2439_v17 }
0x16e2   :  { %v2445_v19 = vadd.f32 %v2440_v18, %v2359_v63 }
0x16e4   :  { %v2451_v20 = vsel %vm77_vm0, %v2445_v19, 0.0 }
0x16e5   :  { %2452 = vadd.xlane.f32.xlu2 %v2451_v20 }
0x16e7   :  { %v2442_v21 = vpop.f32.mrf.mxu0 }
0x16e8   :  { %v2443_v22 = vadd.f32 %v2861_v16, %v2442_v21 }
0x16ea   :  { %v2446_v23 = vadd.f32 %v2443_v22, %v2360_v3 }
0x16ec   :  { %v2454_v25 = vsel %vm77_vm0, %v2446_v23, 0.0 }
0x16ed   :  { %2455 = vadd.xlane.f32.xlu0 %v2454_v25 }
0x1758   :  { %v2453_v26 = vpop.xlane.xlu2 %2452 }
0x1759   :  { %v2457_v27 = vmul.f32 %v2453_v26, %v3398_v56 }
0x175b   :  { %v2459_v45 = vsub.f32 %v2445_v19, %v2457_v27 }
0x175d   :  { %v2461_v29 = vmul.f32 %v2459_v45, %v2459_v45 }
0x175f   :  { %v2463_v30 = vsel %vm77_vm0, %v2461_v29, 0.0 }
0x1760   :  { %v2456_v31 = vpop.xlane.xlu0 %2455  ;;  %2464 = vadd.xlane.f32.xlu1 %v2463_v30 }
0x1761   :  { %v2458_v32 = vmul.f32 %v2456_v31, %v3398_v56 }
0x1763   :  { %v2460_v50 = vsub.f32 %v2446_v23, %v2458_v32 }
0x1765   :  { %v2462_v33 = vmul.f32 %v2460_v50, %v2460_v50 }
0x1767   :  { %v2466_v34 = vsel %vm77_vm0, %v2462_v33, 0.0 }
0x1768   :  { %2467 = vadd.xlane.f32.xlu2 %v2466_v34 }
0x17d3   :  { %v2465_v39 = vpop.xlane.xlu1 %2464 }
0x17d4   :  { %v2469_v40 = vmul.f32 %v2465_v39, %v3398_v56 }
0x17d6   :  { %v2471_v41 = vadd.f32 1e-05, %v2469_v40 }
0x17d8   :  { %2943 = vrsqrt.f32 %v2471_v41  ;;  %vm2479_vm8 = vweird.f32 %v2471_v41 }
0x17db   :  { %v2468_v42 = vpop.xlane.xlu2 %2467 }
0x17dc   :  { %v2470_v43 = vmul.f32 %v2468_v42, %v3398_v56  ;;  %v2863_v56 = vld [vmem:[%s3920_s17 + $0x1] ss:$0 sm:$0xff] }
0x17de   :  { %v2944_v44 = vpop.eup %2943  ;;  %v2472_v48 = vadd.f32 1e-05, %v2470_v43 }
0x17df   :  { %v2474_v49 = vmul.f32 %v2944_v44, %v2471_v41  ;;  %vm2480_vm7 = vweird.f32 %v2944_v44 }
0x17e0   :  { %2945 = vrsqrt.f32 %v2472_v48  ;;  %vm2481_vm9 = vmor %vm2479_vm8, %vm2480_vm7  ;;  %vm2489_vm11 = vweird.f32 %v2472_v48 }
0x17e1   :  { %v2475_v51 = vmul.f32 %v2944_v44, %v2474_v49 }
0x17e3   :  { %v2476_v53 = vmul.f32 0.5, %v2475_v51 }
0x17e5   :  { %v2477_v54 = vsub.f32 1.5, %v2476_v53 }
0x17e6   :  { %v2946_v55 = vpop.eup %2945 }
0x17e7   :  { %v2478_v7 = vmul.f32 %v2944_v44, %v2477_v54  ;;  %v2484_v57 = vmul.f32 %v2946_v55, %v2472_v48  ;;  %vm2490_vm10 = vweird.f32 %v2946_v55 }
0x17e8   :  { %vm2491_vm12 = vmor %vm2489_vm11, %vm2490_vm10 }
0x17e9   :  { %v2482_v59 = vsel %vm2481_vm9, %v2944_v44, %v2478_v7  ;;  %v2485_v60 = vmul.f32 %v2946_v55, %v2484_v57 }
0x17ea   :  { %v2493_v9 = vmul.f32 %v2482_v59, %v2459_v45 }
0x17eb   :  { %v2486_v46 = vmul.f32 0.5, %v2485_v60 }
0x17ec   :  { %v2498_v47 = vmul.f32 %v2862_v58, %v2493_v9 }
0x17ed   :  { %v2487_v61 = vsub.f32 1.5, %v2486_v46 }
0x17ee   :  { %v2503_v62 = vadd.f32 %v2863_v56, %v2498_v47 }
0x17ef   :  { %v2488_v52 = vmul.f32 %v2946_v55, %v2487_v61 }
0x17f0   :  { %2819 = vmatmul.msk.f32.vlgmr.msrb.gmra.mxu1 %vm77_vm0, %v2503_v62 }
0x17f1   :  { %v2492_v10 = vsel %vm2491_vm12, %v2946_v55, %v2488_v52 }
0x17f2   :  { %v2494_v63 = vmul.f32 %v2492_v10, %v2460_v50 }
0x17f4   :  { %v2499_v14 = vmul.f32 %v2862_v58, %v2494_v63 }
0x17f6   :  { %v2504_v0 = vadd.f32 %v2863_v56, %v2499_v14 }
0x17f8   :  { %2820 = vmatmul.msk.f32.gmra.mxu1 %vm77_vm0, %v2504_v0 }
0x186d   :  { %v2536_v2 = vpop.f32.mrf.mxu1 }
0x186e   :  { %v2537_v3 = vadd.f32 %v2864_v1, %v2536_v2 }
0x1870   :  { %2542 = vmax.xlane.f32.xlu0 %v2537_v3 }
0x1875   :  { %v2539_v5 = vpop.f32.mrf.mxu1 }
0x1876   :  { %v2540_v6 = vadd.f32 %v2864_v1, %v2539_v5 }
0x1878   :  { %2544 = vmax.xlane.f32.xlu1 %v2540_v6 }
0x18e3   :  { %v2543_v11 = vpop.xlane.xlu0 %2542 }
0x18e4   :  { %v2546_v12 = vsub.f32 %v2537_v3, %v2543_v11 }
0x18e6   :  { %v2548_v13 = vmul.f32 1.442695, %v2546_v12 }
0x18e8   :  { %2947 = vpow2.f32 %v2548_v13 }
0x18eb   :  { %v2545_v4 = vpop.xlane.xlu1 %2544 }
0x18ec   :  { %v2547_v8 = vsub.f32 %v2540_v6, %v2545_v4 }
0x18ee   :  { %v2948_v24 = vpop.eup %2947  ;;  %v2550_v28 = vmul.f32 1.442695, %v2547_v8 }
0x18ef   :  { %2552 = vadd.xlane.f32.xlu2 %v2948_v24 }
0x18f0   :  { %2949 = vpow2.f32 %v2550_v28 }
0x18f6   :  { %v2950_v15 = vpop.eup %2949 }
0x18f7   :  { %2554 = vadd.xlane.f32.xlu0 %v2950_v15 }
0x1962   :  { %v2553_v16 = vpop.xlane.xlu2 %2552 }
0x1963   :  { %2951 = vlog2.f32 %v2553_v16 }
0x1969   :  { %v2952_v17 = vpop.eup %2951 }
0x196a   :  { %v2557_v18 = vmul.f32 0.6931472, %v2952_v17  ;;  %v2555_v19 = vpop.xlane.xlu0 %2554 }
0x196b   :  { %2953 = vlog2.f32 %v2555_v19 }
0x196c   :  { %v2560_v20 = vsub.f32 %v2546_v12, %v2557_v18 }
0x196e   :  { %2562 = vst [vmem:[%s3923_s20] sm:$0xff] %v2560_v20 }
0x1971   :  { %v2954_v21 = vpop.eup %2953 }
0x1972   :  { %v2559_v22 = vmul.f32 0.6931472, %v2954_v21 }
0x1974   :  { %v2561_v23 = vsub.f32 %v2547_v8, %v2559_v22 }
0x1976   :  { %2563 = vst [vmem:[%s3923_s20 + $0x8] sm:$0xff] %v2561_v23 }

</bundles_post_ra>
